<compile_context>
chip_gen: v7x
topology: tpu7x:2x2x1
jax: 0.10.0
libtpu: 0.0.40
codegen_flags: <defaults>
</compile_context>

<pallas_src>
import jax
import jax.numpy as jnp
from jax import lax
from jax.experimental import pallas as pl
from jax.experimental.pallas import tpu as pltpu
import numpy as np

# ---- problem size ----------------------------------------------------------
B = 2           # batch
C = 4           # dim
H = W = 16      # spatial
KS = 7          # pa2 kernel size
PAD = KS // 2   # reflect padding = 3

HP = H + 2 * PAD               # 22 padded height
WP = W + 2 * PAD               # 22 padded width (= flattened row stride)
FLAT = HP * WP                 # 484 flattened padded pixels
LIN = 640                      # input row length (mult of 128, >= 6*22+6+384)
LOUT = 384                     # output work width (mult of 128, >= 16*22=352)
NROW = 2 * B * C               # 16 input plane rows (row = t*B*C + b*C + c)
NOUT = B * C                   # 8 output rows       (row = b*C + c)


def pixel_attention_kernel(p_ref, w_ref, b_ref, o_ref):
    # p_ref: (NROW, LIN)        reflect-padded flat planes, row stride WP
    # w_ref: (KS*KS, NROW, 128) per-row tap weights, pre-broadcast over lanes
    # b_ref: (NROW, LOUT)       lane-broadcast bias on the t=0 half, zeros on t=1
    # o_ref: (NOUT, LOUT)       flattened (stride WP) conv + sigmoid output
    nrep = LOUT // 128

    def tap(k):
        kh, kw = divmod(k, KS)
        d = kh * WP + kw                               # static flat lane offset
        wk = w_ref[k]                                  # (NROW, 128)
        wfull = jnp.concatenate([wk] * nrep, axis=-1)  # (NROW, LOUT): vreg copies
        return p_ref[:, d:d + LOUT] * wfull            # pure VPU multiply

    # Two independent accumulator chains; bias folded into chain 0's init.
    acc0 = b_ref[...] + tap(0)
    acc1 = tap(1)
    for k in range(2, KS * KS):
        if k & 1 == 0:
            acc0 = acc0 + tap(k)
        else:
            acc1 = acc1 + tap(k)
    acc = acc0 + acc1                                  # (NROW, LOUT)

    y = acc[:NOUT, :] + acc[NOUT:, :]                  # x-part + pattn1-part (+bias)

    # sigmoid: exp on the EUP, approx reciprocal (EUP) + one Newton step.
    t = 1.0 + jnp.exp(-y)
    r = pl.reciprocal(t, approx=True)
    r = r * (2.0 - t * r)
    o_ref[...] = r


def prepare_params(weight, bias):
    """One-time parameter prep, hoisted out of the forward hot path.

    weight: (C, 2, KS, KS)  torch layout of Conv2d(2C, C, 7, groups=C).weight
    bias:   (C,)
    Returns:
      wlane: (KS*KS, NROW, 128) f32, wlane[k, r, :] = weight[r % C, r // (B*C), k]
      bfold: (NROW, LOUT) f32, bias[c] broadcast on the t=0 rows, zeros on t=1 rows
    """
    w_tck = jnp.transpose(weight, (1, 0, 2, 3)).reshape(2, C, KS * KS)   # [t, c, k]
    w_rows = jnp.broadcast_to(w_tck[:, None], (2, B, C, KS * KS))
    w_rows = w_rows.reshape(NROW, KS * KS)                               # row = t*B*C + b*C + c
    wlane = jnp.broadcast_to(jnp.transpose(w_rows, (1, 0))[:, :, None],
                             (KS * KS, NROW, 128)).astype(jnp.float32)
    b_half = jnp.broadcast_to(jnp.tile(bias, (B,))[:, None], (NOUT, LOUT))
    bfold = jnp.concatenate(
        [b_half, jnp.zeros((NOUT, LOUT), b_half.dtype)], axis=0).astype(jnp.float32)
    return wlane, bfold


@jax.jit
def pixel_attention_pallas(x, pattn1, wlane, bfold):
    """x, pattn1: (B, C, H, W) float32 -> pattn2: (B, C, H, W) float32."""
    # Wrapper-side layout prep (single small XLA fusion): t-major plane stack,
    # reflect pad (matches padding_mode='reflect'), flatten rows (stride WP),
    # zero-pad lanes to LIN.  Lanes >= FLAT are zero and never alias valid
    # output positions (max tap read = 345 + 138 = 483 < 484).
    # TODO(synk): reflect padding stays in XLA here; building the padded rows
    # in-kernel from the raw (NROW, 256) planes would save one fusion launch.
    x2 = jnp.concatenate([x, pattn1], axis=0)                   # (2B, C, H, W), t-major
    xp = jnp.pad(x2, ((0, 0), (0, 0), (PAD, PAD), (PAD, PAD)), mode="reflect")
    pflat = jnp.pad(xp.reshape(NROW, FLAT), ((0, 0), (0, LIN - FLAT)))

    out = pl.pallas_call(
        pixel_attention_kernel,
        out_shape=jax.ShapeDtypeStruct((NOUT, LOUT), jnp.float32),
        grid=(1,),
        in_specs=[
            pl.BlockSpec((NROW, LIN), lambda i: (0, 0)),
            pl.BlockSpec((KS * KS, NROW, 128), lambda i: (0, 0, 0)),
            pl.BlockSpec((NROW, LOUT), lambda i: (0, 0)),
        ],
        out_specs=pl.BlockSpec((NOUT, LOUT), lambda i: (0, 0)),
        compiler_params=pltpu.CompilerParams(dimension_semantics=("arbitrary",)),
    )(pflat, wlane, bfold)

    # Valid output pixels live at lane q = h*WP + w  (h, w < 16).
    return out[:, :H * WP].reshape(B, C, H, WP)[:, :, :, :W]


# -----------------------------------------------------------------------------
# Pure-JAX reference mirroring the PyTorch forward exactly
# -----------------------------------------------------------------------------
def pixel_attention_reference(x, pattn1, weight, bias):
    # torch: cat on a new t-dim then Rearrange 'b c t h w -> b (c t) h w'
    x2 = jnp.stack([x, pattn1], axis=2).reshape(B, 2 * C, H, W)
    x2p = jnp.pad(x2, ((0, 0), (0, 0), (PAD, PAD), (PAD, PAD)), mode="reflect")
    out = lax.conv_general_dilated(
        x2p, weight, window_strides=(1, 1), padding="VALID",
        dimension_numbers=("NCHW", "OIHW", "NCHW"),
        feature_group_count=C)
    out = out + bias[None, :, None, None]
    return jax.nn.sigmoid(out)


if __name__ == "__main__":
    key = jax.random.PRNGKey(0)
    kx, kp, kw, kb = jax.random.split(key, 4)

    x = jax.random.normal(kx, (B, C, H, W), jnp.float32)
    pattn1 = jax.random.normal(kp, (B, C, H, W), jnp.float32)
    weight = 0.1 * jax.random.normal(kw, (C, 2, KS, KS), jnp.float32)
    bias = 0.1 * jax.random.normal(kb, (C,), jnp.float32)

    wlane, bfold = prepare_params(weight, bias)      # one-time prep
    out = pixel_attention_pallas(x, pattn1, wlane, bfold)
    out = jax.block_until_ready(out)

    ref = pixel_attention_reference(x, pattn1, weight, bias)
    np.testing.assert_allclose(np.asarray(out), np.asarray(ref),
                               rtol=1e-4, atol=1e-5)

    print("KERNEL_OK")
</pallas_src>

<mosaic_0001>
module attributes {stable_mosaic.version = 11 : i64} {
  func.func @pixel_attention_kernel(%arg0: i32, %arg1: memref<16x640xf32, #tpu.memory_space<vmem>>, %arg2: memref<49x16x128xf32, #tpu.memory_space<vmem>>, %arg3: memref<16x384xf32, #tpu.memory_space<vmem>>, %arg4: memref<8x384xf32, #tpu.memory_space<vmem>>) attributes {dimension_semantics = [#tpu.dimension_semantics<arbitrary>], iteration_bounds = array<i64: 1>, scalar_prefetch = 0 : i64, scratch_operands = 0 : i64, tpu.core_type = #tpu.core_type<tc>, window_params = [{pipeline_mode = #tpu.pipeline_mode<synchronous>, transform_indices = @transform_0, window_bounds = array<i64: 16, 640>}, {pipeline_mode = #tpu.pipeline_mode<synchronous>, transform_indices = @transform_1, window_bounds = array<i64: 49, 16, 128>}, {pipeline_mode = #tpu.pipeline_mode<synchronous>, transform_indices = @transform_2, window_bounds = array<i64: 16, 384>}, {pipeline_mode = #tpu.pipeline_mode<synchronous>, transform_indices = @transform_3, window_bounds = array<i64: 8, 384>}]} {
    %c0 = arith.constant 0 : index
    %c0_0 = arith.constant 0 : index
    %0 = vector.load %arg3[%c0, %c0_0] : memref<16x384xf32, #tpu.memory_space<vmem>>, vector<16x384xf32>
    %c0_1 = arith.constant 0 : index
    %c0_2 = arith.constant 0 : index
    %c0_3 = arith.constant 0 : index
    %1 = vector.load %arg2[%c0_1, %c0_2, %c0_3] : memref<49x16x128xf32, #tpu.memory_space<vmem>>, vector<1x16x128xf32>
    %2 = vector.shape_cast %1 : vector<1x16x128xf32> to vector<16x128xf32>
    %3 = tpu.concatenate %2, %2, %2 in 1 : vector<16x128xf32>, vector<16x128xf32>, vector<16x128xf32> -> vector<16x384xf32>
    %c0_4 = arith.constant 0 : index
    %c0_5 = arith.constant 0 : index
    %4 = vector.load %arg1[%c0_4, %c0_5] : memref<16x640xf32, #tpu.memory_space<vmem>>, vector<16x384xf32>
    %5 = arith.mulf %4, %3 : vector<16x384xf32>
    %6 = arith.addf %0, %5 : vector<16x384xf32>
    %c1 = arith.constant 1 : index
    %c0_6 = arith.constant 0 : index
    %c0_7 = arith.constant 0 : index
    %7 = vector.load %arg2[%c1, %c0_6, %c0_7] : memref<49x16x128xf32, #tpu.memory_space<vmem>>, vector<1x16x128xf32>
    %8 = vector.shape_cast %7 : vector<1x16x128xf32> to vector<16x128xf32>
    %9 = tpu.concatenate %8, %8, %8 in 1 : vector<16x128xf32>, vector<16x128xf32>, vector<16x128xf32> -> vector<16x384xf32>
    %c0_8 = arith.constant 0 : index
    %c1_9 = arith.constant 1 : index
    %10 = vector.load %arg1[%c0_8, %c1_9] : memref<16x640xf32, #tpu.memory_space<vmem>>, vector<16x384xf32>
    %11 = arith.mulf %10, %9 : vector<16x384xf32>
    %c2 = arith.constant 2 : index
    %c0_10 = arith.constant 0 : index
    %c0_11 = arith.constant 0 : index
    %12 = vector.load %arg2[%c2, %c0_10, %c0_11] : memref<49x16x128xf32, #tpu.memory_space<vmem>>, vector<1x16x128xf32>
    %13 = vector.shape_cast %12 : vector<1x16x128xf32> to vector<16x128xf32>
    %14 = tpu.concatenate %13, %13, %13 in 1 : vector<16x128xf32>, vector<16x128xf32>, vector<16x128xf32> -> vector<16x384xf32>
    %c0_12 = arith.constant 0 : index
    %c2_13 = arith.constant 2 : index
    %15 = vector.load %arg1[%c0_12, %c2_13] : memref<16x640xf32, #tpu.memory_space<vmem>>, vector<16x384xf32>
    %16 = arith.mulf %15, %14 : vector<16x384xf32>
    %17 = arith.addf %6, %16 : vector<16x384xf32>
    %c3 = arith.constant 3 : index
    %c0_14 = arith.constant 0 : index
    %c0_15 = arith.constant 0 : index
    %18 = vector.load %arg2[%c3, %c0_14, %c0_15] : memref<49x16x128xf32, #tpu.memory_space<vmem>>, vector<1x16x128xf32>
    %19 = vector.shape_cast %18 : vector<1x16x128xf32> to vector<16x128xf32>
    %20 = tpu.concatenate %19, %19, %19 in 1 : vector<16x128xf32>, vector<16x128xf32>, vector<16x128xf32> -> vector<16x384xf32>
    %c0_16 = arith.constant 0 : index
    %c3_17 = arith.constant 3 : index
    %21 = vector.load %arg1[%c0_16, %c3_17] : memref<16x640xf32, #tpu.memory_space<vmem>>, vector<16x384xf32>
    %22 = arith.mulf %21, %20 : vector<16x384xf32>
    %23 = arith.addf %11, %22 : vector<16x384xf32>
    %c4 = arith.constant 4 : index
    %c0_18 = arith.constant 0 : index
    %c0_19 = arith.constant 0 : index
    %24 = vector.load %arg2[%c4, %c0_18, %c0_19] : memref<49x16x128xf32, #tpu.memory_space<vmem>>, vector<1x16x128xf32>
    %25 = vector.shape_cast %24 : vector<1x16x128xf32> to vector<16x128xf32>
    %26 = tpu.concatenate %25, %25, %25 in 1 : vector<16x128xf32>, vector<16x128xf32>, vector<16x128xf32> -> vector<16x384xf32>
    %c0_20 = arith.constant 0 : index
    %c4_21 = arith.constant 4 : index
    %27 = vector.load %arg1[%c0_20, %c4_21] : memref<16x640xf32, #tpu.memory_space<vmem>>, vector<16x384xf32>
    %28 = arith.mulf %27, %26 : vector<16x384xf32>
    %29 = arith.addf %17, %28 : vector<16x384xf32>
    %c5 = arith.constant 5 : index
    %c0_22 = arith.constant 0 : index
    %c0_23 = arith.constant 0 : index
    %30 = vector.load %arg2[%c5, %c0_22, %c0_23] : memref<49x16x128xf32, #tpu.memory_space<vmem>>, vector<1x16x128xf32>
    %31 = vector.shape_cast %30 : vector<1x16x128xf32> to vector<16x128xf32>
    %32 = tpu.concatenate %31, %31, %31 in 1 : vector<16x128xf32>, vector<16x128xf32>, vector<16x128xf32> -> vector<16x384xf32>
    %c0_24 = arith.constant 0 : index
    %c5_25 = arith.constant 5 : index
    %33 = vector.load %arg1[%c0_24, %c5_25] : memref<16x640xf32, #tpu.memory_space<vmem>>, vector<16x384xf32>
    %34 = arith.mulf %33, %32 : vector<16x384xf32>
    %35 = arith.addf %23, %34 : vector<16x384xf32>
    %c6 = arith.constant 6 : index
    %c0_26 = arith.constant 0 : index
    %c0_27 = arith.constant 0 : index
    %36 = vector.load %arg2[%c6, %c0_26, %c0_27] : memref<49x16x128xf32, #tpu.memory_space<vmem>>, vector<1x16x128xf32>
    %37 = vector.shape_cast %36 : vector<1x16x128xf32> to vector<16x128xf32>
    %38 = tpu.concatenate %37, %37, %37 in 1 : vector<16x128xf32>, vector<16x128xf32>, vector<16x128xf32> -> vector<16x384xf32>
    %c0_28 = arith.constant 0 : index
    %c6_29 = arith.constant 6 : index
    %39 = vector.load %arg1[%c0_28, %c6_29] : memref<16x640xf32, #tpu.memory_space<vmem>>, vector<16x384xf32>
    %40 = arith.mulf %39, %38 : vector<16x384xf32>
    %41 = arith.addf %29, %40 : vector<16x384xf32>
    %c7 = arith.constant 7 : index
    %c0_30 = arith.constant 0 : index
    %c0_31 = arith.constant 0 : index
    %42 = vector.load %arg2[%c7, %c0_30, %c0_31] : memref<49x16x128xf32, #tpu.memory_space<vmem>>, vector<1x16x128xf32>
    %43 = vector.shape_cast %42 : vector<1x16x128xf32> to vector<16x128xf32>
    %44 = tpu.concatenate %43, %43, %43 in 1 : vector<16x128xf32>, vector<16x128xf32>, vector<16x128xf32> -> vector<16x384xf32>
    %c0_32 = arith.constant 0 : index
    %c22 = arith.constant 22 : index
    %45 = vector.load %arg1[%c0_32, %c22] : memref<16x640xf32, #tpu.memory_space<vmem>>, vector<16x384xf32>
    %46 = arith.mulf %45, %44 : vector<16x384xf32>
    %47 = arith.addf %35, %46 : vector<16x384xf32>
    %c8 = arith.constant 8 : index
    %c0_33 = arith.constant 0 : index
    %c0_34 = arith.constant 0 : index
    %48 = vector.load %arg2[%c8, %c0_33, %c0_34] : memref<49x16x128xf32, #tpu.memory_space<vmem>>, vector<1x16x128xf32>
    %49 = vector.shape_cast %48 : vector<1x16x128xf32> to vector<16x128xf32>
    %50 = tpu.concatenate %49, %49, %49 in 1 : vector<16x128xf32>, vector<16x128xf32>, vector<16x128xf32> -> vector<16x384xf32>
    %c0_35 = arith.constant 0 : index
    %c23 = arith.constant 23 : index
    %51 = vector.load %arg1[%c0_35, %c23] : memref<16x640xf32, #tpu.memory_space<vmem>>, vector<16x384xf32>
    %52 = arith.mulf %51, %50 : vector<16x384xf32>
    %53 = arith.addf %41, %52 : vector<16x384xf32>
    %c9 = arith.constant 9 : index
    %c0_36 = arith.constant 0 : index
    %c0_37 = arith.constant 0 : index
    %54 = vector.load %arg2[%c9, %c0_36, %c0_37] : memref<49x16x128xf32, #tpu.memory_space<vmem>>, vector<1x16x128xf32>
    %55 = vector.shape_cast %54 : vector<1x16x128xf32> to vector<16x128xf32>
    %56 = tpu.concatenate %55, %55, %55 in 1 : vector<16x128xf32>, vector<16x128xf32>, vector<16x128xf32> -> vector<16x384xf32>
    %c0_38 = arith.constant 0 : index
    %c24 = arith.constant 24 : index
    %57 = vector.load %arg1[%c0_38, %c24] : memref<16x640xf32, #tpu.memory_space<vmem>>, vector<16x384xf32>
    %58 = arith.mulf %57, %56 : vector<16x384xf32>
    %59 = arith.addf %47, %58 : vector<16x384xf32>
    %c10 = arith.constant 10 : index
    %c0_39 = arith.constant 0 : index
    %c0_40 = arith.constant 0 : index
    %60 = vector.load %arg2[%c10, %c0_39, %c0_40] : memref<49x16x128xf32, #tpu.memory_space<vmem>>, vector<1x16x128xf32>
    %61 = vector.shape_cast %60 : vector<1x16x128xf32> to vector<16x128xf32>
    %62 = tpu.concatenate %61, %61, %61 in 1 : vector<16x128xf32>, vector<16x128xf32>, vector<16x128xf32> -> vector<16x384xf32>
    %c0_41 = arith.constant 0 : index
    %c25 = arith.constant 25 : index
    %63 = vector.load %arg1[%c0_41, %c25] : memref<16x640xf32, #tpu.memory_space<vmem>>, vector<16x384xf32>
    %64 = arith.mulf %63, %62 : vector<16x384xf32>
    %65 = arith.addf %53, %64 : vector<16x384xf32>
    %c11 = arith.constant 11 : index
    %c0_42 = arith.constant 0 : index
    %c0_43 = arith.constant 0 : index
    %66 = vector.load %arg2[%c11, %c0_42, %c0_43] : memref<49x16x128xf32, #tpu.memory_space<vmem>>, vector<1x16x128xf32>
    %67 = vector.shape_cast %66 : vector<1x16x128xf32> to vector<16x128xf32>
    %68 = tpu.concatenate %67, %67, %67 in 1 : vector<16x128xf32>, vector<16x128xf32>, vector<16x128xf32> -> vector<16x384xf32>
    %c0_44 = arith.constant 0 : index
    %c26 = arith.constant 26 : index
    %69 = vector.load %arg1[%c0_44, %c26] : memref<16x640xf32, #tpu.memory_space<vmem>>, vector<16x384xf32>
    %70 = arith.mulf %69, %68 : vector<16x384xf32>
    %71 = arith.addf %59, %70 : vector<16x384xf32>
    %c12 = arith.constant 12 : index
    %c0_45 = arith.constant 0 : index
    %c0_46 = arith.constant 0 : index
    %72 = vector.load %arg2[%c12, %c0_45, %c0_46] : memref<49x16x128xf32, #tpu.memory_space<vmem>>, vector<1x16x128xf32>
    %73 = vector.shape_cast %72 : vector<1x16x128xf32> to vector<16x128xf32>
    %74 = tpu.concatenate %73, %73, %73 in 1 : vector<16x128xf32>, vector<16x128xf32>, vector<16x128xf32> -> vector<16x384xf32>
    %c0_47 = arith.constant 0 : index
    %c27 = arith.constant 27 : index
    %75 = vector.load %arg1[%c0_47, %c27] : memref<16x640xf32, #tpu.memory_space<vmem>>, vector<16x384xf32>
    %76 = arith.mulf %75, %74 : vector<16x384xf32>
    %77 = arith.addf %65, %76 : vector<16x384xf32>
    %c13 = arith.constant 13 : index
    %c0_48 = arith.constant 0 : index
    %c0_49 = arith.constant 0 : index
    %78 = vector.load %arg2[%c13, %c0_48, %c0_49] : memref<49x16x128xf32, #tpu.memory_space<vmem>>, vector<1x16x128xf32>
    %79 = vector.shape_cast %78 : vector<1x16x128xf32> to vector<16x128xf32>
    %80 = tpu.concatenate %79, %79, %79 in 1 : vector<16x128xf32>, vector<16x128xf32>, vector<16x128xf32> -> vector<16x384xf32>
    %c0_50 = arith.constant 0 : index
    %c28 = arith.constant 28 : index
    %81 = vector.load %arg1[%c0_50, %c28] : memref<16x640xf32, #tpu.memory_space<vmem>>, vector<16x384xf32>
    %82 = arith.mulf %81, %80 : vector<16x384xf32>
    %83 = arith.addf %71, %82 : vector<16x384xf32>
    %c14 = arith.constant 14 : index
    %c0_51 = arith.constant 0 : index
    %c0_52 = arith.constant 0 : index
    %84 = vector.load %arg2[%c14, %c0_51, %c0_52] : memref<49x16x128xf32, #tpu.memory_space<vmem>>, vector<1x16x128xf32>
    %85 = vector.shape_cast %84 : vector<1x16x128xf32> to vector<16x128xf32>
    %86 = tpu.concatenate %85, %85, %85 in 1 : vector<16x128xf32>, vector<16x128xf32>, vector<16x128xf32> -> vector<16x384xf32>
    %c0_53 = arith.constant 0 : index
    %c44 = arith.constant 44 : index
    %87 = vector.load %arg1[%c0_53, %c44] : memref<16x640xf32, #tpu.memory_space<vmem>>, vector<16x384xf32>
    %88 = arith.mulf %87, %86 : vector<16x384xf32>
    %89 = arith.addf %77, %88 : vector<16x384xf32>
    %c15 = arith.constant 15 : index
    %c0_54 = arith.constant 0 : index
    %c0_55 = arith.constant 0 : index
    %90 = vector.load %arg2[%c15, %c0_54, %c0_55] : memref<49x16x128xf32, #tpu.memory_space<vmem>>, vector<1x16x128xf32>
    %91 = vector.shape_cast %90 : vector<1x16x128xf32> to vector<16x128xf32>
    %92 = tpu.concatenate %91, %91, %91 in 1 : vector<16x128xf32>, vector<16x128xf32>, vector<16x128xf32> -> vector<16x384xf32>
    %c0_56 = arith.constant 0 : index
    %c45 = arith.constant 45 : index
    %93 = vector.load %arg1[%c0_56, %c45] : memref<16x640xf32, #tpu.memory_space<vmem>>, vector<16x384xf32>
    %94 = arith.mulf %93, %92 : vector<16x384xf32>
    %95 = arith.addf %83, %94 : vector<16x384xf32>
    %c16 = arith.constant 16 : index
    %c0_57 = arith.constant 0 : index
    %c0_58 = arith.constant 0 : index
    %96 = vector.load %arg2[%c16, %c0_57, %c0_58] : memref<49x16x128xf32, #tpu.memory_space<vmem>>, vector<1x16x128xf32>
    %97 = vector.shape_cast %96 : vector<1x16x128xf32> to vector<16x128xf32>
    %98 = tpu.concatenate %97, %97, %97 in 1 : vector<16x128xf32>, vector<16x128xf32>, vector<16x128xf32> -> vector<16x384xf32>
    %c0_59 = arith.constant 0 : index
    %c46 = arith.constant 46 : index
    %99 = vector.load %arg1[%c0_59, %c46] : memref<16x640xf32, #tpu.memory_space<vmem>>, vector<16x384xf32>
    %100 = arith.mulf %99, %98 : vector<16x384xf32>
    %101 = arith.addf %89, %100 : vector<16x384xf32>
    %c17 = arith.constant 17 : index
    %c0_60 = arith.constant 0 : index
    %c0_61 = arith.constant 0 : index
    %102 = vector.load %arg2[%c17, %c0_60, %c0_61] : memref<49x16x128xf32, #tpu.memory_space<vmem>>, vector<1x16x128xf32>
    %103 = vector.shape_cast %102 : vector<1x16x128xf32> to vector<16x128xf32>
    %104 = tpu.concatenate %103, %103, %103 in 1 : vector<16x128xf32>, vector<16x128xf32>, vector<16x128xf32> -> vector<16x384xf32>
    %c0_62 = arith.constant 0 : index
    %c47 = arith.constant 47 : index
    %105 = vector.load %arg1[%c0_62, %c47] : memref<16x640xf32, #tpu.memory_space<vmem>>, vector<16x384xf32>
    %106 = arith.mulf %105, %104 : vector<16x384xf32>
    %107 = arith.addf %95, %106 : vector<16x384xf32>
    %c18 = arith.constant 18 : index
    %c0_63 = arith.constant 0 : index
    %c0_64 = arith.constant 0 : index
    %108 = vector.load %arg2[%c18, %c0_63, %c0_64] : memref<49x16x128xf32, #tpu.memory_space<vmem>>, vector<1x16x128xf32>
    %109 = vector.shape_cast %108 : vector<1x16x128xf32> to vector<16x128xf32>
    %110 = tpu.concatenate %109, %109, %109 in 1 : vector<16x128xf32>, vector<16x128xf32>, vector<16x128xf32> -> vector<16x384xf32>
    %c0_65 = arith.constant 0 : index
    %c48 = arith.constant 48 : index
    %111 = vector.load %arg1[%c0_65, %c48] : memref<16x640xf32, #tpu.memory_space<vmem>>, vector<16x384xf32>
    %112 = arith.mulf %111, %110 : vector<16x384xf32>
    %113 = arith.addf %101, %112 : vector<16x384xf32>
    %c19 = arith.constant 19 : index
    %c0_66 = arith.constant 0 : index
    %c0_67 = arith.constant 0 : index
    %114 = vector.load %arg2[%c19, %c0_66, %c0_67] : memref<49x16x128xf32, #tpu.memory_space<vmem>>, vector<1x16x128xf32>
    %115 = vector.shape_cast %114 : vector<1x16x128xf32> to vector<16x128xf32>
    %116 = tpu.concatenate %115, %115, %115 in 1 : vector<16x128xf32>, vector<16x128xf32>, vector<16x128xf32> -> vector<16x384xf32>
    %c0_68 = arith.constant 0 : index
    %c49 = arith.constant 49 : index
    %117 = vector.load %arg1[%c0_68, %c49] : memref<16x640xf32, #tpu.memory_space<vmem>>, vector<16x384xf32>
    %118 = arith.mulf %117, %116 : vector<16x384xf32>
    %119 = arith.addf %107, %118 : vector<16x384xf32>
    %c20 = arith.constant 20 : index
    %c0_69 = arith.constant 0 : index
    %c0_70 = arith.constant 0 : index
    %120 = vector.load %arg2[%c20, %c0_69, %c0_70] : memref<49x16x128xf32, #tpu.memory_space<vmem>>, vector<1x16x128xf32>
    %121 = vector.shape_cast %120 : vector<1x16x128xf32> to vector<16x128xf32>
    %122 = tpu.concatenate %121, %121, %121 in 1 : vector<16x128xf32>, vector<16x128xf32>, vector<16x128xf32> -> vector<16x384xf32>
    %c0_71 = arith.constant 0 : index
    %c50 = arith.constant 50 : index
    %123 = vector.load %arg1[%c0_71, %c50] : memref<16x640xf32, #tpu.memory_space<vmem>>, vector<16x384xf32>
    %124 = arith.mulf %123, %122 : vector<16x384xf32>
    %125 = arith.addf %113, %124 : vector<16x384xf32>
    %c21 = arith.constant 21 : index
    %c0_72 = arith.constant 0 : index
    %c0_73 = arith.constant 0 : index
    %126 = vector.load %arg2[%c21, %c0_72, %c0_73] : memref<49x16x128xf32, #tpu.memory_space<vmem>>, vector<1x16x128xf32>
    %127 = vector.shape_cast %126 : vector<1x16x128xf32> to vector<16x128xf32>
    %128 = tpu.concatenate %127, %127, %127 in 1 : vector<16x128xf32>, vector<16x128xf32>, vector<16x128xf32> -> vector<16x384xf32>
    %c0_74 = arith.constant 0 : index
    %c66 = arith.constant 66 : index
    %129 = vector.load %arg1[%c0_74, %c66] : memref<16x640xf32, #tpu.memory_space<vmem>>, vector<16x384xf32>
    %130 = arith.mulf %129, %128 : vector<16x384xf32>
    %131 = arith.addf %119, %130 : vector<16x384xf32>
    %c22_75 = arith.constant 22 : index
    %c0_76 = arith.constant 0 : index
    %c0_77 = arith.constant 0 : index
    %132 = vector.load %arg2[%c22_75, %c0_76, %c0_77] : memref<49x16x128xf32, #tpu.memory_space<vmem>>, vector<1x16x128xf32>
    %133 = vector.shape_cast %132 : vector<1x16x128xf32> to vector<16x128xf32>
    %134 = tpu.concatenate %133, %133, %133 in 1 : vector<16x128xf32>, vector<16x128xf32>, vector<16x128xf32> -> vector<16x384xf32>
    %c0_78 = arith.constant 0 : index
    %c67 = arith.constant 67 : index
    %135 = vector.load %arg1[%c0_78, %c67] : memref<16x640xf32, #tpu.memory_space<vmem>>, vector<16x384xf32>
    %136 = arith.mulf %135, %134 : vector<16x384xf32>
    %137 = arith.addf %125, %136 : vector<16x384xf32>
    %c23_79 = arith.constant 23 : index
    %c0_80 = arith.constant 0 : index
    %c0_81 = arith.constant 0 : index
    %138 = vector.load %arg2[%c23_79, %c0_80, %c0_81] : memref<49x16x128xf32, #tpu.memory_space<vmem>>, vector<1x16x128xf32>
    %139 = vector.shape_cast %138 : vector<1x16x128xf32> to vector<16x128xf32>
    %140 = tpu.concatenate %139, %139, %139 in 1 : vector<16x128xf32>, vector<16x128xf32>, vector<16x128xf32> -> vector<16x384xf32>
    %c0_82 = arith.constant 0 : index
    %c68 = arith.constant 68 : index
    %141 = vector.load %arg1[%c0_82, %c68] : memref<16x640xf32, #tpu.memory_space<vmem>>, vector<16x384xf32>
    %142 = arith.mulf %141, %140 : vector<16x384xf32>
    %143 = arith.addf %131, %142 : vector<16x384xf32>
    %c24_83 = arith.constant 24 : index
    %c0_84 = arith.constant 0 : index
    %c0_85 = arith.constant 0 : index
    %144 = vector.load %arg2[%c24_83, %c0_84, %c0_85] : memref<49x16x128xf32, #tpu.memory_space<vmem>>, vector<1x16x128xf32>
    %145 = vector.shape_cast %144 : vector<1x16x128xf32> to vector<16x128xf32>
    %146 = tpu.concatenate %145, %145, %145 in 1 : vector<16x128xf32>, vector<16x128xf32>, vector<16x128xf32> -> vector<16x384xf32>
    %c0_86 = arith.constant 0 : index
    %c69 = arith.constant 69 : index
    %147 = vector.load %arg1[%c0_86, %c69] : memref<16x640xf32, #tpu.memory_space<vmem>>, vector<16x384xf32>
    %148 = arith.mulf %147, %146 : vector<16x384xf32>
    %149 = arith.addf %137, %148 : vector<16x384xf32>
    %c25_87 = arith.constant 25 : index
    %c0_88 = arith.constant 0 : index
    %c0_89 = arith.constant 0 : index
    %150 = vector.load %arg2[%c25_87, %c0_88, %c0_89] : memref<49x16x128xf32, #tpu.memory_space<vmem>>, vector<1x16x128xf32>
    %151 = vector.shape_cast %150 : vector<1x16x128xf32> to vector<16x128xf32>
    %152 = tpu.concatenate %151, %151, %151 in 1 : vector<16x128xf32>, vector<16x128xf32>, vector<16x128xf32> -> vector<16x384xf32>
    %c0_90 = arith.constant 0 : index
    %c70 = arith.constant 70 : index
    %153 = vector.load %arg1[%c0_90, %c70] : memref<16x640xf32, #tpu.memory_space<vmem>>, vector<16x384xf32>
    %154 = arith.mulf %153, %152 : vector<16x384xf32>
    %155 = arith.addf %143, %154 : vector<16x384xf32>
    %c26_91 = arith.constant 26 : index
    %c0_92 = arith.constant 0 : index
    %c0_93 = arith.constant 0 : index
    %156 = vector.load %arg2[%c26_91, %c0_92, %c0_93] : memref<49x16x128xf32, #tpu.memory_space<vmem>>, vector<1x16x128xf32>
    %157 = vector.shape_cast %156 : vector<1x16x128xf32> to vector<16x128xf32>
    %158 = tpu.concatenate %157, %157, %157 in 1 : vector<16x128xf32>, vector<16x128xf32>, vector<16x128xf32> -> vector<16x384xf32>
    %c0_94 = arith.constant 0 : index
    %c71 = arith.constant 71 : index
    %159 = vector.load %arg1[%c0_94, %c71] : memref<16x640xf32, #tpu.memory_space<vmem>>, vector<16x384xf32>
    %160 = arith.mulf %159, %158 : vector<16x384xf32>
    %161 = arith.addf %149, %160 : vector<16x384xf32>
    %c27_95 = arith.constant 27 : index
    %c0_96 = arith.constant 0 : index
    %c0_97 = arith.constant 0 : index
    %162 = vector.load %arg2[%c27_95, %c0_96, %c0_97] : memref<49x16x128xf32, #tpu.memory_space<vmem>>, vector<1x16x128xf32>
    %163 = vector.shape_cast %162 : vector<1x16x128xf32> to vector<16x128xf32>
    %164 = tpu.concatenate %163, %163, %163 in 1 : vector<16x128xf32>, vector<16x128xf32>, vector<16x128xf32> -> vector<16x384xf32>
    %c0_98 = arith.constant 0 : index
    %c72 = arith.constant 72 : index
    %165 = vector.load %arg1[%c0_98, %c72] : memref<16x640xf32, #tpu.memory_space<vmem>>, vector<16x384xf32>
    %166 = arith.mulf %165, %164 : vector<16x384xf32>
    %167 = arith.addf %155, %166 : vector<16x384xf32>
    %c28_99 = arith.constant 28 : index
    %c0_100 = arith.constant 0 : index
    %c0_101 = arith.constant 0 : index
    %168 = vector.load %arg2[%c28_99, %c0_100, %c0_101] : memref<49x16x128xf32, #tpu.memory_space<vmem>>, vector<1x16x128xf32>
    %169 = vector.shape_cast %168 : vector<1x16x128xf32> to vector<16x128xf32>
    %170 = tpu.concatenate %169, %169, %169 in 1 : vector<16x128xf32>, vector<16x128xf32>, vector<16x128xf32> -> vector<16x384xf32>
    %c0_102 = arith.constant 0 : index
    %c88 = arith.constant 88 : index
    %171 = vector.load %arg1[%c0_102, %c88] : memref<16x640xf32, #tpu.memory_space<vmem>>, vector<16x384xf32>
    %172 = arith.mulf %171, %170 : vector<16x384xf32>
    %173 = arith.addf %161, %172 : vector<16x384xf32>
    %c29 = arith.constant 29 : index
    %c0_103 = arith.constant 0 : index
    %c0_104 = arith.constant 0 : index
    %174 = vector.load %arg2[%c29, %c0_103, %c0_104] : memref<49x16x128xf32, #tpu.memory_space<vmem>>, vector<1x16x128xf32>
    %175 = vector.shape_cast %174 : vector<1x16x128xf32> to vector<16x128xf32>
    %176 = tpu.concatenate %175, %175, %175 in 1 : vector<16x128xf32>, vector<16x128xf32>, vector<16x128xf32> -> vector<16x384xf32>
    %c0_105 = arith.constant 0 : index
    %c89 = arith.constant 89 : index
    %177 = vector.load %arg1[%c0_105, %c89] : memref<16x640xf32, #tpu.memory_space<vmem>>, vector<16x384xf32>
    %178 = arith.mulf %177, %176 : vector<16x384xf32>
    %179 = arith.addf %167, %178 : vector<16x384xf32>
    %c30 = arith.constant 30 : index
    %c0_106 = arith.constant 0 : index
    %c0_107 = arith.constant 0 : index
    %180 = vector.load %arg2[%c30, %c0_106, %c0_107] : memref<49x16x128xf32, #tpu.memory_space<vmem>>, vector<1x16x128xf32>
    %181 = vector.shape_cast %180 : vector<1x16x128xf32> to vector<16x128xf32>
    %182 = tpu.concatenate %181, %181, %181 in 1 : vector<16x128xf32>, vector<16x128xf32>, vector<16x128xf32> -> vector<16x384xf32>
    %c0_108 = arith.constant 0 : index
    %c90 = arith.constant 90 : index
    %183 = vector.load %arg1[%c0_108, %c90] : memref<16x640xf32, #tpu.memory_space<vmem>>, vector<16x384xf32>
    %184 = arith.mulf %183, %182 : vector<16x384xf32>
    %185 = arith.addf %173, %184 : vector<16x384xf32>
    %c31 = arith.constant 31 : index
    %c0_109 = arith.constant 0 : index
    %c0_110 = arith.constant 0 : index
    %186 = vector.load %arg2[%c31, %c0_109, %c0_110] : memref<49x16x128xf32, #tpu.memory_space<vmem>>, vector<1x16x128xf32>
    %187 = vector.shape_cast %186 : vector<1x16x128xf32> to vector<16x128xf32>
    %188 = tpu.concatenate %187, %187, %187 in 1 : vector<16x128xf32>, vector<16x128xf32>, vector<16x128xf32> -> vector<16x384xf32>
    %c0_111 = arith.constant 0 : index
    %c91 = arith.constant 91 : index
    %189 = vector.load %arg1[%c0_111, %c91] : memref<16x640xf32, #tpu.memory_space<vmem>>, vector<16x384xf32>
    %190 = arith.mulf %189, %188 : vector<16x384xf32>
    %191 = arith.addf %179, %190 : vector<16x384xf32>
    %c32 = arith.constant 32 : index
    %c0_112 = arith.constant 0 : index
    %c0_113 = arith.constant 0 : index
    %192 = vector.load %arg2[%c32, %c0_112, %c0_113] : memref<49x16x128xf32, #tpu.memory_space<vmem>>, vector<1x16x128xf32>
    %193 = vector.shape_cast %192 : vector<1x16x128xf32> to vector<16x128xf32>
    %194 = tpu.concatenate %193, %193, %193 in 1 : vector<16x128xf32>, vector<16x128xf32>, vector<16x128xf32> -> vector<16x384xf32>
    %c0_114 = arith.constant 0 : index
    %c92 = arith.constant 92 : index
    %195 = vector.load %arg1[%c0_114, %c92] : memref<16x640xf32, #tpu.memory_space<vmem>>, vector<16x384xf32>
    %196 = arith.mulf %195, %194 : vector<16x384xf32>
    %197 = arith.addf %185, %196 : vector<16x384xf32>
    %c33 = arith.constant 33 : index
    %c0_115 = arith.constant 0 : index
    %c0_116 = arith.constant 0 : index
    %198 = vector.load %arg2[%c33, %c0_115, %c0_116] : memref<49x16x128xf32, #tpu.memory_space<vmem>>, vector<1x16x128xf32>
    %199 = vector.shape_cast %198 : vector<1x16x128xf32> to vector<16x128xf32>
    %200 = tpu.concatenate %199, %199, %199 in 1 : vector<16x128xf32>, vector<16x128xf32>, vector<16x128xf32> -> vector<16x384xf32>
    %c0_117 = arith.constant 0 : index
    %c93 = arith.constant 93 : index
    %201 = vector.load %arg1[%c0_117, %c93] : memref<16x640xf32, #tpu.memory_space<vmem>>, vector<16x384xf32>
    %202 = arith.mulf %201, %200 : vector<16x384xf32>
    %203 = arith.addf %191, %202 : vector<16x384xf32>
    %c34 = arith.constant 34 : index
    %c0_118 = arith.constant 0 : index
    %c0_119 = arith.constant 0 : index
    %204 = vector.load %arg2[%c34, %c0_118, %c0_119] : memref<49x16x128xf32, #tpu.memory_space<vmem>>, vector<1x16x128xf32>
    %205 = vector.shape_cast %204 : vector<1x16x128xf32> to vector<16x128xf32>
    %206 = tpu.concatenate %205, %205, %205 in 1 : vector<16x128xf32>, vector<16x128xf32>, vector<16x128xf32> -> vector<16x384xf32>
    %c0_120 = arith.constant 0 : index
    %c94 = arith.constant 94 : index
    %207 = vector.load %arg1[%c0_120, %c94] : memref<16x640xf32, #tpu.memory_space<vmem>>, vector<16x384xf32>
    %208 = arith.mulf %207, %206 : vector<16x384xf32>
    %209 = arith.addf %197, %208 : vector<16x384xf32>
    %c35 = arith.constant 35 : index
    %c0_121 = arith.constant 0 : index
    %c0_122 = arith.constant 0 : index
    %210 = vector.load %arg2[%c35, %c0_121, %c0_122] : memref<49x16x128xf32, #tpu.memory_space<vmem>>, vector<1x16x128xf32>
    %211 = vector.shape_cast %210 : vector<1x16x128xf32> to vector<16x128xf32>
    %212 = tpu.concatenate %211, %211, %211 in 1 : vector<16x128xf32>, vector<16x128xf32>, vector<16x128xf32> -> vector<16x384xf32>
    %c0_123 = arith.constant 0 : index
    %c110 = arith.constant 110 : index
    %213 = vector.load %arg1[%c0_123, %c110] : memref<16x640xf32, #tpu.memory_space<vmem>>, vector<16x384xf32>
    %214 = arith.mulf %213, %212 : vector<16x384xf32>
    %215 = arith.addf %203, %214 : vector<16x384xf32>
    %c36 = arith.constant 36 : index
    %c0_124 = arith.constant 0 : index
    %c0_125 = arith.constant 0 : index
    %216 = vector.load %arg2[%c36, %c0_124, %c0_125] : memref<49x16x128xf32, #tpu.memory_space<vmem>>, vector<1x16x128xf32>
    %217 = vector.shape_cast %216 : vector<1x16x128xf32> to vector<16x128xf32>
    %218 = tpu.concatenate %217, %217, %217 in 1 : vector<16x128xf32>, vector<16x128xf32>, vector<16x128xf32> -> vector<16x384xf32>
    %c0_126 = arith.constant 0 : index
    %c111 = arith.constant 111 : index
    %219 = vector.load %arg1[%c0_126, %c111] : memref<16x640xf32, #tpu.memory_space<vmem>>, vector<16x384xf32>
    %220 = arith.mulf %219, %218 : vector<16x384xf32>
    %221 = arith.addf %209, %220 : vector<16x384xf32>
    %c37 = arith.constant 37 : index
    %c0_127 = arith.constant 0 : index
    %c0_128 = arith.constant 0 : index
    %222 = vector.load %arg2[%c37, %c0_127, %c0_128] : memref<49x16x128xf32, #tpu.memory_space<vmem>>, vector<1x16x128xf32>
    %223 = vector.shape_cast %222 : vector<1x16x128xf32> to vector<16x128xf32>
    %224 = tpu.concatenate %223, %223, %223 in 1 : vector<16x128xf32>, vector<16x128xf32>, vector<16x128xf32> -> vector<16x384xf32>
    %c0_129 = arith.constant 0 : index
    %c112 = arith.constant 112 : index
    %225 = vector.load %arg1[%c0_129, %c112] : memref<16x640xf32, #tpu.memory_space<vmem>>, vector<16x384xf32>
    %226 = arith.mulf %225, %224 : vector<16x384xf32>
    %227 = arith.addf %215, %226 : vector<16x384xf32>
    %c38 = arith.constant 38 : index
    %c0_130 = arith.constant 0 : index
    %c0_131 = arith.constant 0 : index
    %228 = vector.load %arg2[%c38, %c0_130, %c0_131] : memref<49x16x128xf32, #tpu.memory_space<vmem>>, vector<1x16x128xf32>
    %229 = vector.shape_cast %228 : vector<1x16x128xf32> to vector<16x128xf32>
    %230 = tpu.concatenate %229, %229, %229 in 1 : vector<16x128xf32>, vector<16x128xf32>, vector<16x128xf32> -> vector<16x384xf32>
    %c0_132 = arith.constant 0 : index
    %c113 = arith.constant 113 : index
    %231 = vector.load %arg1[%c0_132, %c113] : memref<16x640xf32, #tpu.memory_space<vmem>>, vector<16x384xf32>
    %232 = arith.mulf %231, %230 : vector<16x384xf32>
    %233 = arith.addf %221, %232 : vector<16x384xf32>
    %c39 = arith.constant 39 : index
    %c0_133 = arith.constant 0 : index
    %c0_134 = arith.constant 0 : index
    %234 = vector.load %arg2[%c39, %c0_133, %c0_134] : memref<49x16x128xf32, #tpu.memory_space<vmem>>, vector<1x16x128xf32>
    %235 = vector.shape_cast %234 : vector<1x16x128xf32> to vector<16x128xf32>
    %236 = tpu.concatenate %235, %235, %235 in 1 : vector<16x128xf32>, vector<16x128xf32>, vector<16x128xf32> -> vector<16x384xf32>
    %c0_135 = arith.constant 0 : index
    %c114 = arith.constant 114 : index
    %237 = vector.load %arg1[%c0_135, %c114] : memref<16x640xf32, #tpu.memory_space<vmem>>, vector<16x384xf32>
    %238 = arith.mulf %237, %236 : vector<16x384xf32>
    %239 = arith.addf %227, %238 : vector<16x384xf32>
    %c40 = arith.constant 40 : index
    %c0_136 = arith.constant 0 : index
    %c0_137 = arith.constant 0 : index
    %240 = vector.load %arg2[%c40, %c0_136, %c0_137] : memref<49x16x128xf32, #tpu.memory_space<vmem>>, vector<1x16x128xf32>
    %241 = vector.shape_cast %240 : vector<1x16x128xf32> to vector<16x128xf32>
    %242 = tpu.concatenate %241, %241, %241 in 1 : vector<16x128xf32>, vector<16x128xf32>, vector<16x128xf32> -> vector<16x384xf32>
    %c0_138 = arith.constant 0 : index
    %c115 = arith.constant 115 : index
    %243 = vector.load %arg1[%c0_138, %c115] : memref<16x640xf32, #tpu.memory_space<vmem>>, vector<16x384xf32>
    %244 = arith.mulf %243, %242 : vector<16x384xf32>
    %245 = arith.addf %233, %244 : vector<16x384xf32>
    %c41 = arith.constant 41 : index
    %c0_139 = arith.constant 0 : index
    %c0_140 = arith.constant 0 : index
    %246 = vector.load %arg2[%c41, %c0_139, %c0_140] : memref<49x16x128xf32, #tpu.memory_space<vmem>>, vector<1x16x128xf32>
    %247 = vector.shape_cast %246 : vector<1x16x128xf32> to vector<16x128xf32>
    %248 = tpu.concatenate %247, %247, %247 in 1 : vector<16x128xf32>, vector<16x128xf32>, vector<16x128xf32> -> vector<16x384xf32>
    %c0_141 = arith.constant 0 : index
    %c116 = arith.constant 116 : index
    %249 = vector.load %arg1[%c0_141, %c116] : memref<16x640xf32, #tpu.memory_space<vmem>>, vector<16x384xf32>
    %250 = arith.mulf %249, %248 : vector<16x384xf32>
    %251 = arith.addf %239, %250 : vector<16x384xf32>
    %c42 = arith.constant 42 : index
    %c0_142 = arith.constant 0 : index
    %c0_143 = arith.constant 0 : index
    %252 = vector.load %arg2[%c42, %c0_142, %c0_143] : memref<49x16x128xf32, #tpu.memory_space<vmem>>, vector<1x16x128xf32>
    %253 = vector.shape_cast %252 : vector<1x16x128xf32> to vector<16x128xf32>
    %254 = tpu.concatenate %253, %253, %253 in 1 : vector<16x128xf32>, vector<16x128xf32>, vector<16x128xf32> -> vector<16x384xf32>
    %c0_144 = arith.constant 0 : index
    %c132 = arith.constant 132 : index
    %255 = vector.load %arg1[%c0_144, %c132] : memref<16x640xf32, #tpu.memory_space<vmem>>, vector<16x384xf32>
    %256 = arith.mulf %255, %254 : vector<16x384xf32>
    %257 = arith.addf %245, %256 : vector<16x384xf32>
    %c43 = arith.constant 43 : index
    %c0_145 = arith.constant 0 : index
    %c0_146 = arith.constant 0 : index
    %258 = vector.load %arg2[%c43, %c0_145, %c0_146] : memref<49x16x128xf32, #tpu.memory_space<vmem>>, vector<1x16x128xf32>
    %259 = vector.shape_cast %258 : vector<1x16x128xf32> to vector<16x128xf32>
    %260 = tpu.concatenate %259, %259, %259 in 1 : vector<16x128xf32>, vector<16x128xf32>, vector<16x128xf32> -> vector<16x384xf32>
    %c0_147 = arith.constant 0 : index
    %c133 = arith.constant 133 : index
    %261 = vector.load %arg1[%c0_147, %c133] : memref<16x640xf32, #tpu.memory_space<vmem>>, vector<16x384xf32>
    %262 = arith.mulf %261, %260 : vector<16x384xf32>
    %263 = arith.addf %251, %262 : vector<16x384xf32>
    %c44_148 = arith.constant 44 : index
    %c0_149 = arith.constant 0 : index
    %c0_150 = arith.constant 0 : index
    %264 = vector.load %arg2[%c44_148, %c0_149, %c0_150] : memref<49x16x128xf32, #tpu.memory_space<vmem>>, vector<1x16x128xf32>
    %265 = vector.shape_cast %264 : vector<1x16x128xf32> to vector<16x128xf32>
    %266 = tpu.concatenate %265, %265, %265 in 1 : vector<16x128xf32>, vector<16x128xf32>, vector<16x128xf32> -> vector<16x384xf32>
    %c0_151 = arith.constant 0 : index
    %c134 = arith.constant 134 : index
    %267 = vector.load %arg1[%c0_151, %c134] : memref<16x640xf32, #tpu.memory_space<vmem>>, vector<16x384xf32>
    %268 = arith.mulf %267, %266 : vector<16x384xf32>
    %269 = arith.addf %257, %268 : vector<16x384xf32>
    %c45_152 = arith.constant 45 : index
    %c0_153 = arith.constant 0 : index
    %c0_154 = arith.constant 0 : index
    %270 = vector.load %arg2[%c45_152, %c0_153, %c0_154] : memref<49x16x128xf32, #tpu.memory_space<vmem>>, vector<1x16x128xf32>
    %271 = vector.shape_cast %270 : vector<1x16x128xf32> to vector<16x128xf32>
    %272 = tpu.concatenate %271, %271, %271 in 1 : vector<16x128xf32>, vector<16x128xf32>, vector<16x128xf32> -> vector<16x384xf32>
    %c0_155 = arith.constant 0 : index
    %c135 = arith.constant 135 : index
    %273 = vector.load %arg1[%c0_155, %c135] : memref<16x640xf32, #tpu.memory_space<vmem>>, vector<16x384xf32>
    %274 = arith.mulf %273, %272 : vector<16x384xf32>
    %275 = arith.addf %263, %274 : vector<16x384xf32>
    %c46_156 = arith.constant 46 : index
    %c0_157 = arith.constant 0 : index
    %c0_158 = arith.constant 0 : index
    %276 = vector.load %arg2[%c46_156, %c0_157, %c0_158] : memref<49x16x128xf32, #tpu.memory_space<vmem>>, vector<1x16x128xf32>
    %277 = vector.shape_cast %276 : vector<1x16x128xf32> to vector<16x128xf32>
    %278 = tpu.concatenate %277, %277, %277 in 1 : vector<16x128xf32>, vector<16x128xf32>, vector<16x128xf32> -> vector<16x384xf32>
    %c0_159 = arith.constant 0 : index
    %c136 = arith.constant 136 : index
    %279 = vector.load %arg1[%c0_159, %c136] : memref<16x640xf32, #tpu.memory_space<vmem>>, vector<16x384xf32>
    %280 = arith.mulf %279, %278 : vector<16x384xf32>
    %281 = arith.addf %269, %280 : vector<16x384xf32>
    %c47_160 = arith.constant 47 : index
    %c0_161 = arith.constant 0 : index
    %c0_162 = arith.constant 0 : index
    %282 = vector.load %arg2[%c47_160, %c0_161, %c0_162] : memref<49x16x128xf32, #tpu.memory_space<vmem>>, vector<1x16x128xf32>
    %283 = vector.shape_cast %282 : vector<1x16x128xf32> to vector<16x128xf32>
    %284 = tpu.concatenate %283, %283, %283 in 1 : vector<16x128xf32>, vector<16x128xf32>, vector<16x128xf32> -> vector<16x384xf32>
    %c0_163 = arith.constant 0 : index
    %c137 = arith.constant 137 : index
    %285 = vector.load %arg1[%c0_163, %c137] : memref<16x640xf32, #tpu.memory_space<vmem>>, vector<16x384xf32>
    %286 = arith.mulf %285, %284 : vector<16x384xf32>
    %287 = arith.addf %275, %286 : vector<16x384xf32>
    %c48_164 = arith.constant 48 : index
    %c0_165 = arith.constant 0 : index
    %c0_166 = arith.constant 0 : index
    %288 = vector.load %arg2[%c48_164, %c0_165, %c0_166] : memref<49x16x128xf32, #tpu.memory_space<vmem>>, vector<1x16x128xf32>
    %289 = vector.shape_cast %288 : vector<1x16x128xf32> to vector<16x128xf32>
    %290 = tpu.concatenate %289, %289, %289 in 1 : vector<16x128xf32>, vector<16x128xf32>, vector<16x128xf32> -> vector<16x384xf32>
    %c0_167 = arith.constant 0 : index
    %c138 = arith.constant 138 : index
    %291 = vector.load %arg1[%c0_167, %c138] : memref<16x640xf32, #tpu.memory_space<vmem>>, vector<16x384xf32>
    %292 = arith.mulf %291, %290 : vector<16x384xf32>
    %293 = arith.addf %281, %292 : vector<16x384xf32>
    %294 = arith.addf %293, %287 : vector<16x384xf32>
    %295 = vector.extract_strided_slice %294 {offsets = [0, 0], sizes = [8, 384], strides = [1, 1]} : vector<16x384xf32> to vector<8x384xf32>
    %296 = vector.extract_strided_slice %294 {offsets = [8, 0], sizes = [8, 384], strides = [1, 1]} : vector<16x384xf32> to vector<8x384xf32>
    %297 = arith.addf %295, %296 : vector<8x384xf32>
    %cst = arith.constant 0.000000e+00 : f32
    %298 = vector.broadcast %cst : f32 to vector<8x384xf32>
    %299 = arith.subf %298, %297 : vector<8x384xf32>
    %300 = math.exp %299 : vector<8x384xf32>
    %cst_168 = arith.constant 1.000000e+00 : f32
    %301 = vector.broadcast %cst_168 : f32 to vector<8x384xf32>
    %302 = arith.addf %301, %300 : vector<8x384xf32>
    %303 = tpu.reciprocal %302 {approx = true} : vector<8x384xf32> -> vector<8x384xf32>
    %304 = arith.mulf %302, %303 : vector<8x384xf32>
    %cst_169 = arith.constant 2.000000e+00 : f32
    %305 = vector.broadcast %cst_169 : f32 to vector<8x384xf32>
    %306 = arith.subf %305, %304 : vector<8x384xf32>
    %307 = arith.mulf %303, %306 : vector<8x384xf32>
    %c0_170 = arith.constant 0 : index
    %c0_171 = arith.constant 0 : index
    %308 = vector.load %arg4[%c0_170, %c0_171] : memref<8x384xf32, #tpu.memory_space<vmem>>, vector<8x384xf32>
    tpu.vector_store %arg4[%c0_170, %c0_171], %307 {strides = array<i32>} : memref<8x384xf32, #tpu.memory_space<vmem>>, vector<8x384xf32>,
    return
  }
  func.func @transform_0(%arg0: i32) -> (i32, i32) {
    %c0_i32 = arith.constant 0 : i32
    %c0_i32_0 = arith.constant 0 : i32
    %c0_i32_1 = arith.constant 0 : i32
    return %c0_i32, %c0_i32_0 : i32, i32
  }
  func.func @transform_1(%arg0: i32) -> (i32, i32, i32) {
    %c0_i32 = arith.constant 0 : i32
    %c0_i32_0 = arith.constant 0 : i32
    %c0_i32_1 = arith.constant 0 : i32
    %c0_i32_2 = arith.constant 0 : i32
    return %c0_i32, %c0_i32_0, %c0_i32_1 : i32, i32, i32
  }
  func.func @transform_2(%arg0: i32) -> (i32, i32) {
    %c0_i32 = arith.constant 0 : i32
    %c0_i32_0 = arith.constant 0 : i32
    %c0_i32_1 = arith.constant 0 : i32
    return %c0_i32, %c0_i32_0 : i32, i32
  }
  func.func @transform_3(%arg0: i32) -> (i32, i32) {
    %c0_i32 = arith.constant 0 : i32
    %c0_i32_0 = arith.constant 0 : i32
    %c0_i32_1 = arith.constant 0 : i32
    return %c0_i32, %c0_i32_0 : i32, i32
  }
}

</mosaic_0001>

<bundles_post_ra>
// kernel: pixel_attention_pallas.1
= control target key start
LH: loop header
LB: loop body
LE: loop exit
PB: predicated region body
PF: predicated region fallthrough
CT: control target
= control target key end

     0   :  { %s3338_s16 = smov 2   ;;  %s3339_s17 = smov 1   ;;  %vm2393_vm0 = vcmask 121856   ;;  %vm104_vm1 = vcmask 1031168   ;;  %vm231_vm2 = vcmask 1014784   ;;  %vm358_vm3 = vcmask 998400   ;;  %s6302_s1 = inlined_call_operand.vmem [shape: f32[49,16,128], index: 1, kind: input, shape index: {}]   ;;  %s6303_s0 = inlined_call_operand.vmem [shape: f32[16,640], index: 0, kind: input, shape index: {}]   ;;  %s6304_s2 = inlined_call_operand.vmem [shape: f32[16,384], index: 2, kind: input, shape index: {}]   ;;  %s6305_s3 = inlined_call_operand.vmem [shape: f32[8,384], index: 3, kind: output, shape index: {}]  }
   0x1   :  { %v3132_v0 = vld [vmem:[%s6302_s1 + $0x20] sm:$0xff]  ;;  %v3130_v1 = vld [vmem:[%s6302_s1 + $0x10] sm:$0xff]  ;;  %v3133_v2 = vld [vmem:[%s6302_s1 + $0x28] sm:$0xff]  ;;  %s3340_s26 = smov 3   ;;  %s3341_s4 = smov 4   ;;  %vm420_vm4 = vcmask 875520  }
   0x2   :  { %66 = vrot.lane.b32.xlu1 %v3132_v0, %s3338_s16  ;;  %47 = vrot.lane.b32.xlu0 %v3130_v1, %s3339_s17  ;;  %v3131_v3 = vld [vmem:[%s6302_s1 + $0x18] sm:$0xff]  ;;  %v3134_v4 = vld [vmem:[%s6302_s1 + $0x30] sm:$0xff]  ;;  %s3342_s9 = smov 5   ;;  %s3343_s14 = smov 6   ;;  %vm486_vm5 = vcmask 859136   ;;  %vm613_vm6 = vcmask 842752  }
   0x3   :  { %v3135_v5 = vld [vmem:[%s6302_s1 + $0x38] sm:$0xff]  ;;  %v3136_v6 = vld [vmem:[%s6302_s1 + $0x40] sm:$0xff]  ;;  %v3137_v7 = vld [vmem:[%s6302_s1 + $0x48] sm:$0xff]  ;;  %s3344_s19 = smov 22   ;;  %s3345_s28 = smov 126   ;;  %vm740_vm7 = vcmask 826368  }
   0x4   :  { %v3138_v8 = vld [vmem:[%s6302_s1 + $0x50] sm:$0xff]  ;;  %v3139_v9 = vld [vmem:[%s6302_s1 + $0x58] sm:$0xff]  ;;  %v3140_v10 = vld [vmem:[%s6302_s1 + $0x60] sm:$0xff]  ;;  %s3346_s12 = smov 124   ;;  %s3347_s13 = smov 122   ;;  %vm6489_vm8 = vcmask 687104  }
   0x5   :  { %v3141_v11 = vld [vmem:[%s6302_s1 + $0x68] sm:$0xff]  ;;  %v3142_v12 = vld [vmem:[%s6302_s1 + $0x70] sm:$0xff]  ;;  %v3143_v13 = vld [vmem:[%s6302_s1 + $0x78] sm:$0xff]  ;;  %s3348_s15 = smov 107   ;;  %s3349_s20 = smov 23   ;;  %vm6488_vm9 = vcmask 670720  }
   0x6   :  { %68 = vrot.lane.b32.xlu1 %v3133_v2, %s3338_s16  ;;  %49 = vrot.lane.b32.xlu0 %v3131_v3, %s3339_s17  ;;  %v3480_v14 = vld [vmem:[%s6303_s0 + $0x8] sm:$0xff]  ;;  %v3485_v15 = vld [vmem:[%s6303_s0] sm:$0xff]  ;;  %s3350_s21 = smov 105   ;;  %s3352_s5 = smov 25   ;;  %vm6486_vm10 = vcmask 654336   ;;  %vm6485_vm11 = vcmask 637952  }
   0x7   :  { %v3494_v20 = vld [vmem:[%s6303_s0 + $0x18] sm:$0xff]  ;;  %v3499_v21 = vld [vmem:[%s6303_s0 + $0x10] sm:$0xff]  ;;  %v3511_v24 = vld [vmem:[%s6303_s0 + $0x28] sm:$0xff]  ;;  %s3353_s6 = smov 103   ;;  %s3372_s27 = smov 61   ;;  %vm6484_vm12 = vcmask 515072  }
   0x8   :  { %v3506_v23 = vld [vmem:[%s6303_s0 + $0x30] sm:$0xff]  ;;  %v3524_v30 = vld [vmem:[%s6303_s0 + $0x40] sm:$0xff]  ;;  %v3529_v31 = vld [vmem:[%s6303_s0 + $0x38] sm:$0xff]  ;;  %s3373_s7 = smov 68   ;;  %s3375_s16 = smov 59   ;;  %vm6487_vm13 = vcmask 498688  }
   0x9   :  { %s3392_s8 = smov 19   ;;  %s3396_s22 = smov 113   ;;  %vm1503_vm14 = vcmask 482304   ;;  %vm1630_vm15 = vcmask 465920  }
   0xa   :  { %128 = vrot.lane.b32.xlu0 %v3134_v4, %s3340_s26  ;;  %130 = vrot.lane.b32.xlu1 %v3135_v5, %s3340_s26  ;;  %s3351_s26 = smov 24   ;;  %s3398_s25 = smov 114  }
   0xb   :  { %s3399_s30 = smov 116   ;;  %s3400_s17 = smov 7  }
   0xc   :  { %s3401_s23 = smov 9   ;;  %s3402_s29 = smov 115  }
   0xd   :  { %s3404_s24 = smov 8  }
   0xe   :  { %193 = vrot.lane.b32.xlu0 %v3136_v6, %s3341_s4  ;;  %195 = vrot.lane.b32.xlu1 %v3137_v7, %s3341_s4 }
  0x12   :  { %255 = vrot.lane.b32.xlu0 %v3138_v8, %s3342_s9  ;;  %257 = vrot.lane.b32.xlu1 %v3139_v9, %s3342_s9 }
  0x16   :  { %320 = vrot.lane.b32.xlu0 %v3140_v10, %s3343_s14  ;;  %322 = vrot.lane.b32.xlu1 %v3141_v11, %s3343_s14 }
  0x1a   :  { %382 = vrot.lane.b32.xlu0 %v3142_v12, %s3344_s19  ;;  %384 = vrot.lane.b32.xlu1 %v3143_v13, %s3344_s19 }
  0x74   :  { %v67_v16 = vpop.permute.xlu1 %66  ;;  %v3487_v17 = vpop.permute.xlu0 %47 }
  0x75   :  { %v73_v18 = vmul.f32 %v67_v16, %v3480_v14  ;;  %v72_v19 = vmul.f32 %v67_v16, %v3485_v15  ;;  %v75_v25 = vmul.f32 %v67_v16, %v3494_v20  ;;  %v74_v26 = vmul.f32 %v67_v16, %v3499_v21 }
  0x77   :  { %90 = vrot.lane.b32.xlu1 %v73_v18, %s3345_s28  ;;  %88 = vrot.lane.b32.xlu0 %v72_v19, %s3345_s28 }
  0x78   :  { %v69_v22 = vpop.permute.xlu1 %68  ;;  %v3515_v27 = vpop.permute.xlu0 %49 }
  0x79   :  { %v77_v28 = vmul.f32 %v69_v22, %v3506_v23  ;;  %v76_v29 = vmul.f32 %v69_v22, %v3511_v24  ;;  %v79_v33 = vmul.f32 %v69_v22, %v3524_v30  ;;  %v78_v34 = vmul.f32 %v69_v22, %v3529_v31 }
  0x7b   :  { %94 = vrot.lane.b32.xlu1 %v75_v25, %s3345_s28  ;;  %92 = vrot.lane.b32.xlu0 %v74_v26, %s3345_s28 }
  0x7c   :  { %v129_v32 = vpop.permute.xlu0 %128  ;;  %v131_v37 = vpop.permute.xlu1 %130 }
  0x7d   :  { %v135_v35 = vmul.f32 %v129_v32, %v3480_v14  ;;  %v134_v36 = vmul.f32 %v129_v32, %v3485_v15  ;;  %v137_v38 = vmul.f32 %v129_v32, %v3494_v20  ;;  %v136_v39 = vmul.f32 %v129_v32, %v3499_v21 }
  0x7e   :  { %v139_v40 = vmul.f32 %v131_v37, %v3506_v23  ;;  %v138_v41 = vmul.f32 %v131_v37, %v3511_v24  ;;  %v141_v43 = vmul.f32 %v131_v37, %v3524_v30  ;;  %v140_v44 = vmul.f32 %v131_v37, %v3529_v31 }
  0x7f   :  { %98 = vrot.lane.b32.xlu1 %v77_v28, %s3345_s28  ;;  %96 = vrot.lane.b32.xlu0 %v76_v29, %s3345_s28  ;;  %v3144_v28 = vld [vmem:[%s6302_s1 + $0x80] sm:$0xff]  ;;  %v3145_v29 = vld [vmem:[%s6302_s1 + $0x88] sm:$0xff] }
  0x80   :  { %v194_v42 = vpop.permute.xlu0 %193  ;;  %v196_v47 = vpop.permute.xlu1 %195 }
  0x81   :  { %v200_v45 = vmul.f32 %v194_v42, %v3480_v14  ;;  %v199_v46 = vmul.f32 %v194_v42, %v3485_v15  ;;  %v202_v48 = vmul.f32 %v194_v42, %v3494_v20  ;;  %v201_v49 = vmul.f32 %v194_v42, %v3499_v21 }
  0x82   :  { %v204_v50 = vmul.f32 %v196_v47, %v3506_v23  ;;  %v203_v51 = vmul.f32 %v196_v47, %v3511_v24  ;;  %v206_v53 = vmul.f32 %v196_v47, %v3524_v30  ;;  %v205_v54 = vmul.f32 %v196_v47, %v3529_v31 }
  0x83   :  { %102 = vrot.lane.b32.xlu1 %v79_v33, %s3345_s28  ;;  %100 = vrot.lane.b32.xlu0 %v78_v34, %s3345_s28 }
  0x84   :  { %v256_v52 = vpop.permute.xlu0 %255  ;;  %v258_v57 = vpop.permute.xlu1 %257 }
  0x85   :  { %v262_v55 = vmul.f32 %v256_v52, %v3480_v14  ;;  %v261_v56 = vmul.f32 %v256_v52, %v3485_v15  ;;  %v264_v58 = vmul.f32 %v256_v52, %v3494_v20  ;;  %v263_v59 = vmul.f32 %v256_v52, %v3499_v21 }
  0x86   :  { %v266_v60 = vmul.f32 %v258_v57, %v3506_v23  ;;  %v265_v61 = vmul.f32 %v258_v57, %v3511_v24  ;;  %v268_v63 = vmul.f32 %v258_v57, %v3524_v30  ;;  %v267_v0 = vmul.f32 %v258_v57, %v3529_v31 }
  0x87   :  { %152 = vrot.lane.b32.xlu1 %v135_v35, %s3345_s28  ;;  %150 = vrot.lane.b32.xlu0 %v134_v36, %s3345_s28 }
  0x88   :  { %v321_v62 = vpop.permute.xlu0 %320  ;;  %v323_v3 = vpop.permute.xlu1 %322 }
  0x89   :  { %v327_v1 = vmul.f32 %v321_v62, %v3480_v14  ;;  %v326_v2 = vmul.f32 %v321_v62, %v3485_v15  ;;  %v329_v4 = vmul.f32 %v321_v62, %v3494_v20  ;;  %v328_v5 = vmul.f32 %v321_v62, %v3499_v21 }
  0x8a   :  { %v331_v6 = vmul.f32 %v323_v3, %v3506_v23  ;;  %v330_v7 = vmul.f32 %v323_v3, %v3511_v24  ;;  %v333_v9 = vmul.f32 %v323_v3, %v3524_v30  ;;  %v332_v10 = vmul.f32 %v323_v3, %v3529_v31 }
  0x8b   :  { %156 = vrot.lane.b32.xlu1 %v137_v38, %s3345_s28  ;;  %154 = vrot.lane.b32.xlu0 %v136_v39, %s3345_s28 }
  0x8c   :  { %v383_v8 = vpop.permute.xlu0 %382  ;;  %v385_v13 = vpop.permute.xlu1 %384 }
  0x8d   :  { %v389_v11 = vmul.f32 %v383_v8, %v3480_v14  ;;  %v388_v12 = vmul.f32 %v383_v8, %v3485_v15  ;;  %v391_v16 = vmul.f32 %v383_v8, %v3494_v20  ;;  %v390_v18 = vmul.f32 %v383_v8, %v3499_v21 }
  0x8e   :  { %v393_v19 = vmul.f32 %v385_v13, %v3506_v23  ;;  %v392_v22 = vmul.f32 %v385_v13, %v3511_v24  ;;  %v395_v25 = vmul.f32 %v385_v13, %v3524_v30  ;;  %v394_v26 = vmul.f32 %v385_v13, %v3529_v31 }
  0x8f   :  { %160 = vrot.lane.b32.xlu1 %v139_v40, %s3345_s28  ;;  %158 = vrot.lane.b32.xlu0 %v138_v41, %s3345_s28 }
  0x93   :  { %164 = vrot.lane.b32.xlu1 %v141_v43, %s3345_s28  ;;  %162 = vrot.lane.b32.xlu0 %v140_v44, %s3345_s28 }
  0x97   :  { %217 = vrot.lane.b32.xlu1 %v200_v45, %s3346_s12  ;;  %215 = vrot.lane.b32.xlu0 %v199_v46, %s3346_s12 }
  0x9b   :  { %221 = vrot.lane.b32.xlu1 %v202_v48, %s3346_s12  ;;  %219 = vrot.lane.b32.xlu0 %v201_v49, %s3346_s12 }
  0x9f   :  { %225 = vrot.lane.b32.xlu1 %v204_v50, %s3346_s12  ;;  %223 = vrot.lane.b32.xlu0 %v203_v51, %s3346_s12 }
  0xa3   :  { %229 = vrot.lane.b32.xlu1 %v206_v53, %s3346_s12  ;;  %227 = vrot.lane.b32.xlu0 %v205_v54, %s3346_s12 }
  0xa7   :  { %279 = vrot.lane.b32.xlu1 %v262_v55, %s3346_s12  ;;  %277 = vrot.lane.b32.xlu0 %v261_v56, %s3346_s12 }
  0xab   :  { %283 = vrot.lane.b32.xlu1 %v264_v58, %s3346_s12  ;;  %281 = vrot.lane.b32.xlu0 %v263_v59, %s3346_s12 }
  0xaf   :  { %287 = vrot.lane.b32.xlu1 %v266_v60, %s3346_s12  ;;  %285 = vrot.lane.b32.xlu0 %v265_v61, %s3346_s12 }
  0xb3   :  { %291 = vrot.lane.b32.xlu1 %v268_v63, %s3346_s12  ;;  %289 = vrot.lane.b32.xlu0 %v267_v0, %s3346_s12 }
  0xb7   :  { %344 = vrot.lane.b32.xlu1 %v327_v1, %s3347_s13  ;;  %342 = vrot.lane.b32.xlu0 %v326_v2, %s3347_s13 }
  0xbb   :  { %348 = vrot.lane.b32.xlu1 %v329_v4, %s3347_s13  ;;  %346 = vrot.lane.b32.xlu0 %v328_v5, %s3347_s13 }
  0xbf   :  { %352 = vrot.lane.b32.xlu1 %v331_v6, %s3347_s13  ;;  %350 = vrot.lane.b32.xlu0 %v330_v7, %s3347_s13 }
  0xc3   :  { %356 = vrot.lane.b32.xlu1 %v333_v9, %s3347_s13  ;;  %354 = vrot.lane.b32.xlu0 %v332_v10, %s3347_s13 }
  0xc7   :  { %406 = vrot.lane.b32.xlu1 %v389_v11, %s3348_s15  ;;  %404 = vrot.lane.b32.xlu0 %v388_v12, %s3348_s15 }
  0xcb   :  { %410 = vrot.lane.b32.xlu1 %v391_v16, %s3348_s15  ;;  %408 = vrot.lane.b32.xlu0 %v390_v18, %s3348_s15 }
  0xcf   :  { %414 = vrot.lane.b32.xlu1 %v393_v19, %s3348_s15  ;;  %412 = vrot.lane.b32.xlu0 %v392_v22, %s3348_s15 }
  0xd3   :  { %418 = vrot.lane.b32.xlu1 %v395_v25, %s3348_s15  ;;  %416 = vrot.lane.b32.xlu0 %v394_v26, %s3348_s15  ;;  %s3354_s15 = smov 26  }
  0xd7   :  { %448 = vrot.lane.b32.xlu0 %v3144_v28, %s3349_s20  ;;  %450 = vrot.lane.b32.xlu1 %v3145_v29, %s3349_s20  ;;  %s3355_s20 = smov 27  }
  0xe9   :  { %v3615_v32 = vpop.permute.xlu1 %90  ;;  %v3617_v33 = vpop.permute.xlu0 %88 }
  0xed   :  { %v3619_v34 = vpop.permute.xlu1 %94  ;;  %v3621_v35 = vpop.permute.xlu0 %92 }
  0xf1   :  { %v3623_v36 = vpop.permute.xlu1 %98  ;;  %v3625_v37 = vpop.permute.xlu0 %96 }
  0xf5   :  { %v3627_v38 = vpop.permute.xlu1 %102  ;;  %v3629_v39 = vpop.permute.xlu0 %100 }
  0xf6   :  { %6495 = vst [vmem:[#allocation2_spill] sm:$0xff] %v3627_v38  ;;  %6496 = vst [vmem:[#allocation3_spill] sm:$0xff] %v3629_v39 }
  0xf9   :  { %v3631_v40 = vpop.permute.xlu1 %152  ;;  %v3633_v41 = vpop.permute.xlu0 %150 }
  0xfd   :  { %v3635_v42 = vpop.permute.xlu1 %156  ;;  %v3637_v43 = vpop.permute.xlu0 %154 }
 0x101   :  { %v3639_v44 = vpop.permute.xlu1 %160  ;;  %v3641_v45 = vpop.permute.xlu0 %158 }
 0x105   :  { %v3643_v46 = vpop.permute.xlu1 %164  ;;  %v3645_v47 = vpop.permute.xlu0 %162 }
 0x109   :  { %v3647_v48 = vpop.permute.xlu1 %217  ;;  %v3649_v49 = vpop.permute.xlu0 %215 }
 0x10d   :  { %v3651_v50 = vpop.permute.xlu1 %221  ;;  %v3653_v51 = vpop.permute.xlu0 %219 }
 0x111   :  { %v3655_v52 = vpop.permute.xlu1 %225  ;;  %v3657_v53 = vpop.permute.xlu0 %223 }
 0x115   :  { %v3659_v54 = vpop.permute.xlu1 %229  ;;  %v3661_v55 = vpop.permute.xlu0 %227 }
 0x116   :  { %6497 = vst [vmem:[#allocation4_spill] sm:$0xff] %v3659_v54  ;;  %6498 = vst [vmem:[#allocation5_spill] sm:$0xff] %v3661_v55 }
 0x119   :  { %v3663_v56 = vpop.permute.xlu1 %279  ;;  %v3665_v57 = vpop.permute.xlu0 %277 }
 0x11d   :  { %v3667_v58 = vpop.permute.xlu1 %283  ;;  %v3669_v59 = vpop.permute.xlu0 %281 }
 0x121   :  { %v3671_v60 = vpop.permute.xlu1 %287  ;;  %v3673_v61 = vpop.permute.xlu0 %285 }
 0x125   :  { %v3675_v62 = vpop.permute.xlu1 %291  ;;  %v3677_v63 = vpop.permute.xlu0 %289 }
 0x129   :  { %v3679_v0 = vpop.permute.xlu1 %344  ;;  %v3681_v1 = vpop.permute.xlu0 %342 }
 0x12d   :  { %v3683_v2 = vpop.permute.xlu1 %348  ;;  %v3685_v3 = vpop.permute.xlu0 %346 }
 0x131   :  { %v3687_v4 = vpop.permute.xlu1 %352  ;;  %v3689_v5 = vpop.permute.xlu0 %350 }
 0x135   :  { %v3691_v6 = vpop.permute.xlu1 %356  ;;  %v3693_v7 = vpop.permute.xlu0 %354 }
 0x136   :  { %6499 = vst [vmem:[#allocation6_spill] sm:$0xff] %v3691_v6  ;;  %6500 = vst [vmem:[#allocation7_spill] sm:$0xff] %v3693_v7 }
 0x139   :  { %v3695_v8 = vpop.permute.xlu1 %406  ;;  %v3697_v9 = vpop.permute.xlu0 %404 }
 0x13d   :  { %v3699_v10 = vpop.permute.xlu1 %410  ;;  %v3701_v11 = vpop.permute.xlu0 %408 }
 0x13e   :  { %6501 = vst [vmem:[#allocation8_spill] sm:$0xff] %v3699_v10  ;;  %6502 = vst [vmem:[#allocation9_spill] sm:$0xff] %v3701_v11 }
 0x141   :  { %v3703_v12 = vpop.permute.xlu0 %412  ;;  %v3705_v13 = vpop.permute.xlu1 %414 }
 0x142   :  { %6503 = vst [vmem:[#allocation10_spill] sm:$0xff] %v3703_v12  ;;  %6504 = vst [vmem:[#allocation11_spill] sm:$0xff] %v3705_v13 }
 0x145   :  { %v3707_v16 = vpop.permute.xlu0 %416  ;;  %v3709_v18 = vpop.permute.xlu1 %418 }
 0x146   :  { %6505 = vst [vmem:[#allocation12_spill] sm:$0xff] %v3707_v16  ;;  %6506 = vst [vmem:[#allocation13_spill] sm:$0xff] %v3709_v18 }
 0x149   :  { %v449_v19 = vpop.permute.xlu0 %448  ;;  %v451_v26 = vpop.permute.xlu1 %450 }
 0x14a   :  { %v455_v22 = vmul.f32 %v449_v19, %v3480_v14  ;;  %v454_v25 = vmul.f32 %v449_v19, %v3485_v15  ;;  %v457_v28 = vmul.f32 %v449_v19, %v3494_v20  ;;  %v456_v29 = vmul.f32 %v449_v19, %v3499_v21  ;;  %v3146_v19 = vld [vmem:[%s6302_s1 + $0x90] sm:$0xff] }
 0x14b   :  { %v459_v6 = vmul.f32 %v451_v26, %v3506_v23  ;;  %v458_v7 = vmul.f32 %v451_v26, %v3511_v24 }
 0x14c   :  { %472 = vrot.lane.b32.xlu1 %v455_v22, %s3350_s21  ;;  %470 = vrot.lane.b32.xlu0 %v454_v25, %s3350_s21  ;;  %v461_v22 = vmul.f32 %v451_v26, %v3524_v30  ;;  %v460_v25 = vmul.f32 %v451_v26, %v3529_v31 }
 0x150   :  { %476 = vrot.lane.b32.xlu1 %v457_v28, %s3350_s21  ;;  %474 = vrot.lane.b32.xlu0 %v456_v29, %s3350_s21  ;;  %v3147_v28 = vld [vmem:[%s6302_s1 + $0x98] sm:$0xff] }
 0x154   :  { %480 = vrot.lane.b32.xlu1 %v459_v6, %s3350_s21  ;;  %478 = vrot.lane.b32.xlu0 %v458_v7, %s3350_s21 }
 0x158   :  { %484 = vrot.lane.b32.xlu1 %v461_v22, %s3350_s21  ;;  %482 = vrot.lane.b32.xlu0 %v460_v25, %s3350_s21 }
 0x15c   :  { %510 = vrot.lane.b32.xlu0 %v3146_v19, %s3351_s26  ;;  %512 = vrot.lane.b32.xlu1 %v3147_v28, %s3351_s26  ;;  %s3357_s26 = smov 28  }
 0x1be   :  { %v3733_v6 = vpop.permute.xlu1 %472  ;;  %v3735_v7 = vpop.permute.xlu0 %470 }
 0x1bf   :  { %6507 = vst [vmem:[#allocation14_spill] sm:$0xff] %v3733_v6  ;;  %6508 = vst [vmem:[#allocation15_spill] sm:$0xff] %v3735_v7 }
 0x1c2   :  { %v3737_v26 = vpop.permute.xlu1 %476  ;;  %v3739_v29 = vpop.permute.xlu0 %474 }
 0x1c3   :  { %6509 = vst [vmem:[#allocation16_spill] sm:$0xff] %v3737_v26  ;;  %6510 = vst [vmem:[#allocation17_spill] sm:$0xff] %v3739_v29 }
 0x1c6   :  { %v3741_v22 = vpop.permute.xlu0 %478  ;;  %v3743_v25 = vpop.permute.xlu1 %480 }
 0x1c7   :  { %6511 = vst [vmem:[#allocation18_spill] sm:$0xff] %v3741_v22  ;;  %6512 = vst [vmem:[#allocation19_spill] sm:$0xff] %v3743_v25 }
 0x1ca   :  { %v3745_v54 = vpop.permute.xlu0 %482  ;;  %v3747_v55 = vpop.permute.xlu1 %484 }
 0x1cb   :  { %6513 = vst [vmem:[#allocation20_spill] sm:$0xff] %v3745_v54  ;;  %6514 = vst [vmem:[#allocation21_spill] sm:$0xff] %v3747_v55 }
 0x1ce   :  { %v511_v38 = vpop.permute.xlu0 %510  ;;  %v513_v39 = vpop.permute.xlu1 %512 }
 0x1cf   :  { %v517_v19 = vmul.f32 %v511_v38, %v3480_v14  ;;  %v516_v28 = vmul.f32 %v511_v38, %v3485_v15  ;;  %v519_v26 = vmul.f32 %v511_v38, %v3494_v20  ;;  %v518_v22 = vmul.f32 %v511_v38, %v3499_v21  ;;  %v3148_v38 = vld [vmem:[%s6302_s1 + $0xa0] sm:$0xff] }
 0x1d0   :  { %v521_v55 = vmul.f32 %v513_v39, %v3506_v23  ;;  %v520_v54 = vmul.f32 %v513_v39, %v3511_v24 }
 0x1d1   :  { %534 = vrot.lane.b32.xlu1 %v517_v19, %s3350_s21  ;;  %532 = vrot.lane.b32.xlu0 %v516_v28, %s3350_s21  ;;  %v523_v19 = vmul.f32 %v513_v39, %v3524_v30  ;;  %v522_v28 = vmul.f32 %v513_v39, %v3529_v31 }
 0x1d5   :  { %538 = vrot.lane.b32.xlu1 %v519_v26, %s3350_s21  ;;  %536 = vrot.lane.b32.xlu0 %v518_v22, %s3350_s21  ;;  %v3149_v26 = vld [vmem:[%s6302_s1 + $0xa8] sm:$0xff] }
 0x1d9   :  { %542 = vrot.lane.b32.xlu1 %v521_v55, %s3350_s21  ;;  %540 = vrot.lane.b32.xlu0 %v520_v54, %s3350_s21 }
 0x1dd   :  { %546 = vrot.lane.b32.xlu1 %v523_v19, %s3350_s21  ;;  %544 = vrot.lane.b32.xlu0 %v522_v28, %s3350_s21  ;;  %s3356_s21 = smov 101  }
 0x1e1   :  { %575 = vrot.lane.b32.xlu0 %v3148_v38, %s3352_s5  ;;  %577 = vrot.lane.b32.xlu1 %v3149_v26, %s3352_s5  ;;  %s3358_s5 = smov 44  }
 0x243   :  { %v3771_v54 = vpop.permute.xlu1 %534  ;;  %v3773_v55 = vpop.permute.xlu0 %532 }
 0x244   :  { %6515 = vst [vmem:[#allocation22_spill] sm:$0xff] %v3771_v54  ;;  %6516 = vst [vmem:[#allocation23_spill] sm:$0xff] %v3773_v55 }
 0x247   :  { %v3775_v39 = vpop.permute.xlu1 %538  ;;  %v3777_v22 = vpop.permute.xlu0 %536 }
 0x248   :  { %6517 = vst [vmem:[#allocation24_spill] sm:$0xff] %v3775_v39  ;;  %6518 = vst [vmem:[#allocation25_spill] sm:$0xff] %v3777_v22 }
 0x24b   :  { %v3779_v19 = vpop.permute.xlu0 %540  ;;  %v3781_v28 = vpop.permute.xlu1 %542 }
 0x24c   :  { %6519 = vst [vmem:[#allocation26_spill] sm:$0xff] %v3779_v19  ;;  %6520 = vst [vmem:[#allocation27_spill] sm:$0xff] %v3781_v28 }
 0x24f   :  { %v3783_v25 = vpop.permute.xlu0 %544  ;;  %v3785_v29 = vpop.permute.xlu1 %546 }
 0x250   :  { %6521 = vst [vmem:[#allocation28_spill] sm:$0xff] %v3783_v25  ;;  %6522 = vst [vmem:[#allocation29_spill] sm:$0xff] %v3785_v29 }
 0x253   :  { %v576_v7 = vpop.permute.xlu0 %575  ;;  %v578_v39 = vpop.permute.xlu1 %577 }
 0x254   :  { %v582_v38 = vmul.f32 %v576_v7, %v3480_v14  ;;  %v581_v26 = vmul.f32 %v576_v7, %v3485_v15  ;;  %v584_v22 = vmul.f32 %v576_v7, %v3494_v20  ;;  %v583_v19 = vmul.f32 %v576_v7, %v3499_v21  ;;  %v3150_v7 = vld [vmem:[%s6302_s1 + $0xb0] sm:$0xff] }
 0x255   :  { %v586_v25 = vmul.f32 %v578_v39, %v3506_v23  ;;  %v585_v29 = vmul.f32 %v578_v39, %v3511_v24 }
 0x256   :  { %599 = vrot.lane.b32.xlu1 %v582_v38, %s3353_s6  ;;  %597 = vrot.lane.b32.xlu0 %v581_v26, %s3353_s6  ;;  %v588_v38 = vmul.f32 %v578_v39, %v3524_v30  ;;  %v587_v26 = vmul.f32 %v578_v39, %v3529_v31 }
 0x25a   :  { %603 = vrot.lane.b32.xlu1 %v584_v22, %s3353_s6  ;;  %601 = vrot.lane.b32.xlu0 %v583_v19, %s3353_s6  ;;  %v3151_v22 = vld [vmem:[%s6302_s1 + $0xb8] sm:$0xff] }
 0x25e   :  { %607 = vrot.lane.b32.xlu1 %v586_v25, %s3353_s6  ;;  %605 = vrot.lane.b32.xlu0 %v585_v29, %s3353_s6 }
 0x262   :  { %611 = vrot.lane.b32.xlu1 %v588_v38, %s3353_s6  ;;  %609 = vrot.lane.b32.xlu0 %v587_v26, %s3353_s6 }
 0x266   :  { %637 = vrot.lane.b32.xlu0 %v3150_v7, %s3354_s15  ;;  %639 = vrot.lane.b32.xlu1 %v3151_v22, %s3354_s15  ;;  %s3360_s15 = smov 45  }
 0x2c8   :  { %v3809_v29 = vpop.permute.xlu1 %599  ;;  %v3811_v25 = vpop.permute.xlu0 %597 }
 0x2c9   :  { %6523 = vst [vmem:[#allocation30_spill] sm:$0xff] %v3809_v29  ;;  %6524 = vst [vmem:[#allocation31_spill] sm:$0xff] %v3811_v25 }
 0x2cc   :  { %v3813_v39 = vpop.permute.xlu1 %603  ;;  %v3815_v19 = vpop.permute.xlu0 %601 }
 0x2cd   :  { %6525 = vst [vmem:[#allocation32_spill] sm:$0xff] %v3813_v39  ;;  %6526 = vst [vmem:[#allocation33_spill] sm:$0xff] %v3815_v19 }
 0x2d0   :  { %v3817_v38 = vpop.permute.xlu0 %605  ;;  %v3819_v26 = vpop.permute.xlu1 %607 }
 0x2d1   :  { %6527 = vst [vmem:[#allocation34_spill] sm:$0xff] %v3817_v38  ;;  %6528 = vst [vmem:[#allocation35_spill] sm:$0xff] %v3819_v26 }
 0x2d4   :  { %v3821_v28 = vpop.permute.xlu0 %609  ;;  %v3823_v55 = vpop.permute.xlu1 %611 }
 0x2d5   :  { %6529 = vst [vmem:[#allocation36_spill] sm:$0xff] %v3821_v28  ;;  %6530 = vst [vmem:[#allocation37_spill] sm:$0xff] %v3823_v55 }
 0x2d8   :  { %v638_v54 = vpop.permute.xlu0 %637  ;;  %v640_v39 = vpop.permute.xlu1 %639 }
 0x2d9   :  { %v644_v7 = vmul.f32 %v638_v54, %v3480_v14  ;;  %v643_v22 = vmul.f32 %v638_v54, %v3485_v15  ;;  %v646_v19 = vmul.f32 %v638_v54, %v3494_v20  ;;  %v645_v38 = vmul.f32 %v638_v54, %v3499_v21  ;;  %v3152_v54 = vld [vmem:[%s6302_s1 + $0xc0] sm:$0xff] }
 0x2da   :  { %v648_v55 = vmul.f32 %v640_v39, %v3506_v23  ;;  %v647_v28 = vmul.f32 %v640_v39, %v3511_v24 }
 0x2db   :  { %661 = vrot.lane.b32.xlu1 %v644_v7, %s3353_s6  ;;  %659 = vrot.lane.b32.xlu0 %v643_v22, %s3353_s6  ;;  %v650_v7 = vmul.f32 %v640_v39, %v3524_v30  ;;  %v649_v22 = vmul.f32 %v640_v39, %v3529_v31 }
 0x2df   :  { %665 = vrot.lane.b32.xlu1 %v646_v19, %s3353_s6  ;;  %663 = vrot.lane.b32.xlu0 %v645_v38, %s3353_s6  ;;  %v3153_v19 = vld [vmem:[%s6302_s1 + $0xc8] sm:$0xff] }
 0x2e3   :  { %669 = vrot.lane.b32.xlu1 %v648_v55, %s3353_s6  ;;  %667 = vrot.lane.b32.xlu0 %v647_v28, %s3353_s6 }
 0x2e7   :  { %673 = vrot.lane.b32.xlu1 %v650_v7, %s3353_s6  ;;  %671 = vrot.lane.b32.xlu0 %v649_v22, %s3353_s6  ;;  %s3359_s6 = smov 84  }
 0x2eb   :  { %702 = vrot.lane.b32.xlu0 %v3152_v54, %s3355_s20  ;;  %704 = vrot.lane.b32.xlu1 %v3153_v19, %s3355_s20  ;;  %s3361_s20 = smov 46  }
 0x34d   :  { %v3847_v55 = vpop.permute.xlu1 %661  ;;  %v3849_v28 = vpop.permute.xlu0 %659 }
 0x34e   :  { %6531 = vst [vmem:[#allocation38_spill] sm:$0xff] %v3847_v55  ;;  %6532 = vst [vmem:[#allocation39_spill] sm:$0xff] %v3849_v28 }
 0x351   :  { %v3851_v39 = vpop.permute.xlu1 %665  ;;  %v3853_v38 = vpop.permute.xlu0 %663 }
 0x352   :  { %6533 = vst [vmem:[#allocation40_spill] sm:$0xff] %v3851_v39  ;;  %6534 = vst [vmem:[#allocation41_spill] sm:$0xff] %v3853_v38 }
 0x355   :  { %v3855_v7 = vpop.permute.xlu0 %667  ;;  %v3857_v22 = vpop.permute.xlu1 %669 }
 0x356   :  { %6535 = vst [vmem:[#allocation42_spill] sm:$0xff] %v3855_v7  ;;  %6536 = vst [vmem:[#allocation43_spill] sm:$0xff] %v3857_v22 }
 0x359   :  { %v3859_v26 = vpop.permute.xlu0 %671  ;;  %v3861_v25 = vpop.permute.xlu1 %673 }
 0x35a   :  { %6537 = vst [vmem:[#allocation44_spill] sm:$0xff] %v3859_v26  ;;  %6538 = vst [vmem:[#allocation45_spill] sm:$0xff] %v3861_v25 }
 0x35d   :  { %v703_v29 = vpop.permute.xlu0 %702  ;;  %v705_v39 = vpop.permute.xlu1 %704 }
 0x35e   :  { %v709_v54 = vmul.f32 %v703_v29, %v3480_v14  ;;  %v708_v19 = vmul.f32 %v703_v29, %v3485_v15  ;;  %v711_v38 = vmul.f32 %v703_v29, %v3494_v20  ;;  %v710_v7 = vmul.f32 %v703_v29, %v3499_v21  ;;  %v3154_v29 = vld [vmem:[%s6302_s1 + $0xd0] sm:$0xff] }
 0x35f   :  { %v713_v26 = vmul.f32 %v705_v39, %v3506_v23  ;;  %v712_v25 = vmul.f32 %v705_v39, %v3511_v24 }
 0x360   :  { %726 = vrot.lane.b32.xlu1 %v709_v54, %s3356_s21  ;;  %724 = vrot.lane.b32.xlu0 %v708_v19, %s3356_s21  ;;  %v715_v54 = vmul.f32 %v705_v39, %v3524_v30  ;;  %v714_v19 = vmul.f32 %v705_v39, %v3529_v31 }
 0x364   :  { %730 = vrot.lane.b32.xlu1 %v711_v38, %s3356_s21  ;;  %728 = vrot.lane.b32.xlu0 %v710_v7, %s3356_s21  ;;  %v3155_v38 = vld [vmem:[%s6302_s1 + $0xd8] sm:$0xff] }
 0x368   :  { %734 = vrot.lane.b32.xlu1 %v713_v26, %s3356_s21  ;;  %732 = vrot.lane.b32.xlu0 %v712_v25, %s3356_s21 }
 0x36c   :  { %738 = vrot.lane.b32.xlu1 %v715_v54, %s3356_s21  ;;  %736 = vrot.lane.b32.xlu0 %v714_v19, %s3356_s21 }
 0x370   :  { %764 = vrot.lane.b32.xlu0 %v3154_v29, %s3357_s26  ;;  %766 = vrot.lane.b32.xlu1 %v3155_v38, %s3357_s26  ;;  %s3363_s26 = smov 47  }
 0x3d2   :  { %v3885_v25 = vpop.permute.xlu1 %726  ;;  %v3887_v26 = vpop.permute.xlu0 %724 }
 0x3d3   :  { %6539 = vst [vmem:[#allocation46_spill] sm:$0xff] %v3885_v25  ;;  %6540 = vst [vmem:[#allocation47_spill] sm:$0xff] %v3887_v26 }
 0x3d6   :  { %v3889_v39 = vpop.permute.xlu1 %730  ;;  %v3891_v7 = vpop.permute.xlu0 %728 }
 0x3d7   :  { %6541 = vst [vmem:[#allocation48_spill] sm:$0xff] %v3889_v39  ;;  %6542 = vst [vmem:[#allocation49_spill] sm:$0xff] %v3891_v7 }
 0x3da   :  { %v3893_v54 = vpop.permute.xlu0 %732  ;;  %v3895_v19 = vpop.permute.xlu1 %734 }
 0x3db   :  { %6543 = vst [vmem:[#allocation50_spill] sm:$0xff] %v3893_v54  ;;  %6544 = vst [vmem:[#allocation51_spill] sm:$0xff] %v3895_v19 }
 0x3de   :  { %v3897_v22 = vpop.permute.xlu0 %736  ;;  %v3899_v28 = vpop.permute.xlu1 %738 }
 0x3df   :  { %6545 = vst [vmem:[#allocation52_spill] sm:$0xff] %v3897_v22  ;;  %6546 = vst [vmem:[#allocation53_spill] sm:$0xff] %v3899_v28 }
 0x3e2   :  { %v765_v55 = vpop.permute.xlu0 %764  ;;  %v767_v39 = vpop.permute.xlu1 %766 }
 0x3e3   :  { %v771_v29 = vmul.f32 %v765_v55, %v3480_v14  ;;  %v770_v38 = vmul.f32 %v765_v55, %v3485_v15  ;;  %v773_v7 = vmul.f32 %v765_v55, %v3494_v20  ;;  %v772_v54 = vmul.f32 %v765_v55, %v3499_v21  ;;  %v3156_v55 = vld [vmem:[%s6302_s1 + $0xe0] sm:$0xff] }
 0x3e4   :  { %v775_v28 = vmul.f32 %v767_v39, %v3506_v23  ;;  %v774_v22 = vmul.f32 %v767_v39, %v3511_v24 }
 0x3e5   :  { %788 = vrot.lane.b32.xlu1 %v771_v29, %s3356_s21  ;;  %786 = vrot.lane.b32.xlu0 %v770_v38, %s3356_s21  ;;  %v777_v29 = vmul.f32 %v767_v39, %v3524_v30  ;;  %v776_v38 = vmul.f32 %v767_v39, %v3529_v31 }
 0x3e9   :  { %792 = vrot.lane.b32.xlu1 %v773_v7, %s3356_s21  ;;  %790 = vrot.lane.b32.xlu0 %v772_v54, %s3356_s21  ;;  %v3157_v7 = vld [vmem:[%s6302_s1 + $0xe8] sm:$0xff] }
 0x3ed   :  { %796 = vrot.lane.b32.xlu1 %v775_v28, %s3356_s21  ;;  %794 = vrot.lane.b32.xlu0 %v774_v22, %s3356_s21 }
 0x3f1   :  { %800 = vrot.lane.b32.xlu1 %v777_v29, %s3356_s21  ;;  %798 = vrot.lane.b32.xlu0 %v776_v38, %s3356_s21  ;;  %s3362_s21 = smov 82  }
 0x3f5   :  { %829 = vrot.lane.b32.xlu0 %v3156_v55, %s3358_s5  ;;  %831 = vrot.lane.b32.xlu1 %v3157_v7, %s3358_s5  ;;  %s3364_s5 = smov 48  }
 0x457   :  { %v3923_v28 = vpop.permute.xlu1 %788  ;;  %v3925_v22 = vpop.permute.xlu0 %786 }
 0x458   :  { %6547 = vst [vmem:[#allocation54_spill] sm:$0xff] %v3923_v28  ;;  %6548 = vst [vmem:[#allocation55_spill] sm:$0xff] %v3925_v22 }
 0x45b   :  { %v3927_v39 = vpop.permute.xlu1 %792  ;;  %v3929_v54 = vpop.permute.xlu0 %790 }
 0x45c   :  { %6549 = vst [vmem:[#allocation56_spill] sm:$0xff] %v3927_v39  ;;  %6550 = vst [vmem:[#allocation57_spill] sm:$0xff] %v3929_v54 }
 0x45f   :  { %v3931_v29 = vpop.permute.xlu0 %794  ;;  %v3933_v38 = vpop.permute.xlu1 %796 }
 0x460   :  { %6551 = vst [vmem:[#allocation58_spill] sm:$0xff] %v3931_v29  ;;  %6552 = vst [vmem:[#allocation59_spill] sm:$0xff] %v3933_v38 }
 0x463   :  { %v3935_v19 = vpop.permute.xlu0 %798  ;;  %v3937_v26 = vpop.permute.xlu1 %800 }
 0x464   :  { %6553 = vst [vmem:[#allocation60_spill] sm:$0xff] %v3935_v19  ;;  %6554 = vst [vmem:[#allocation61_spill] sm:$0xff] %v3937_v26 }
 0x467   :  { %v830_v25 = vpop.permute.xlu0 %829  ;;  %v832_v39 = vpop.permute.xlu1 %831 }
 0x468   :  { %v836_v55 = vmul.f32 %v830_v25, %v3480_v14  ;;  %v835_v7 = vmul.f32 %v830_v25, %v3485_v15  ;;  %v838_v54 = vmul.f32 %v830_v25, %v3494_v20  ;;  %v837_v29 = vmul.f32 %v830_v25, %v3499_v21  ;;  %v3158_v25 = vld [vmem:[%s6302_s1 + $0xf0] sm:$0xff] }
 0x469   :  { %v840_v19 = vmul.f32 %v832_v39, %v3506_v23  ;;  %v839_v26 = vmul.f32 %v832_v39, %v3511_v24 }
 0x46a   :  { %853 = vrot.lane.b32.xlu1 %v836_v55, %s3359_s6  ;;  %851 = vrot.lane.b32.xlu0 %v835_v7, %s3359_s6  ;;  %v842_v55 = vmul.f32 %v832_v39, %v3524_v30  ;;  %v841_v7 = vmul.f32 %v832_v39, %v3529_v31 }
 0x46e   :  { %857 = vrot.lane.b32.xlu1 %v838_v54, %s3359_s6  ;;  %855 = vrot.lane.b32.xlu0 %v837_v29, %s3359_s6  ;;  %v3159_v54 = vld [vmem:[%s6302_s1 + $0xf8] sm:$0xff] }
 0x472   :  { %861 = vrot.lane.b32.xlu1 %v840_v19, %s3359_s6  ;;  %859 = vrot.lane.b32.xlu0 %v839_v26, %s3359_s6 }
 0x476   :  { %865 = vrot.lane.b32.xlu1 %v842_v55, %s3359_s6  ;;  %863 = vrot.lane.b32.xlu0 %v841_v7, %s3359_s6 }
 0x47a   :  { %891 = vrot.lane.b32.xlu0 %v3158_v25, %s3360_s15  ;;  %893 = vrot.lane.b32.xlu1 %v3159_v54, %s3360_s15  ;;  %s3366_s15 = smov 49  }
 0x4dc   :  { %v3961_v26 = vpop.permute.xlu1 %853  ;;  %v3963_v19 = vpop.permute.xlu0 %851 }
 0x4dd   :  { %6555 = vst [vmem:[#allocation62_spill] sm:$0xff] %v3961_v26  ;;  %6556 = vst [vmem:[#allocation63_spill] sm:$0xff] %v3963_v19 }
 0x4e0   :  { %v3965_v39 = vpop.permute.xlu1 %857  ;;  %v3967_v29 = vpop.permute.xlu0 %855 }
 0x4e1   :  { %6557 = vst [vmem:[#allocation64_spill] sm:$0xff] %v3965_v39  ;;  %6558 = vst [vmem:[#allocation65_spill] sm:$0xff] %v3967_v29 }
 0x4e4   :  { %v3969_v55 = vpop.permute.xlu0 %859  ;;  %v3971_v7 = vpop.permute.xlu1 %861 }
 0x4e5   :  { %6559 = vst [vmem:[#allocation66_spill] sm:$0xff] %v3969_v55  ;;  %6560 = vst [vmem:[#allocation67_spill] sm:$0xff] %v3971_v7 }
 0x4e8   :  { %v3973_v38 = vpop.permute.xlu0 %863  ;;  %v3975_v22 = vpop.permute.xlu1 %865 }
 0x4e9   :  { %6561 = vst [vmem:[#allocation68_spill] sm:$0xff] %v3973_v38  ;;  %6562 = vst [vmem:[#allocation69_spill] sm:$0xff] %v3975_v22 }
 0x4ec   :  { %v892_v28 = vpop.permute.xlu0 %891  ;;  %v894_v39 = vpop.permute.xlu1 %893 }
 0x4ed   :  { %v898_v25 = vmul.f32 %v892_v28, %v3480_v14  ;;  %v897_v54 = vmul.f32 %v892_v28, %v3485_v15  ;;  %v900_v29 = vmul.f32 %v892_v28, %v3494_v20  ;;  %v899_v55 = vmul.f32 %v892_v28, %v3499_v21  ;;  %v3160_v28 = vld [vmem:[%s6302_s1 + $0x100] sm:$0xff] }
 0x4ee   :  { %v902_v22 = vmul.f32 %v894_v39, %v3506_v23  ;;  %v901_v38 = vmul.f32 %v894_v39, %v3511_v24 }
 0x4ef   :  { %915 = vrot.lane.b32.xlu1 %v898_v25, %s3359_s6  ;;  %913 = vrot.lane.b32.xlu0 %v897_v54, %s3359_s6  ;;  %v904_v25 = vmul.f32 %v894_v39, %v3524_v30  ;;  %v903_v54 = vmul.f32 %v894_v39, %v3529_v31 }
 0x4f3   :  { %919 = vrot.lane.b32.xlu1 %v900_v29, %s3359_s6  ;;  %917 = vrot.lane.b32.xlu0 %v899_v55, %s3359_s6  ;;  %v3161_v29 = vld [vmem:[%s6302_s1 + $0x108] sm:$0xff] }
 0x4f7   :  { %923 = vrot.lane.b32.xlu1 %v902_v22, %s3359_s6  ;;  %921 = vrot.lane.b32.xlu0 %v901_v38, %s3359_s6 }
 0x4fb   :  { %927 = vrot.lane.b32.xlu1 %v904_v25, %s3359_s6  ;;  %925 = vrot.lane.b32.xlu0 %v903_v54, %s3359_s6  ;;  %s3365_s6 = smov 80  }
 0x4ff   :  { %956 = vrot.lane.b32.xlu0 %v3160_v28, %s3361_s20  ;;  %958 = vrot.lane.b32.xlu1 %v3161_v29, %s3361_s20  ;;  %s3369_s20 = smov 66  }
 0x561   :  { %v3999_v22 = vpop.permute.xlu1 %915  ;;  %v4001_v38 = vpop.permute.xlu0 %913 }
 0x562   :  { %6563 = vst [vmem:[#allocation70_spill] sm:$0xff] %v3999_v22  ;;  %6564 = vst [vmem:[#allocation71_spill] sm:$0xff] %v4001_v38 }
 0x565   :  { %v4003_v39 = vpop.permute.xlu1 %919  ;;  %v4005_v55 = vpop.permute.xlu0 %917 }
 0x566   :  { %6565 = vst [vmem:[#allocation72_spill] sm:$0xff] %v4003_v39  ;;  %6566 = vst [vmem:[#allocation73_spill] sm:$0xff] %v4005_v55 }
 0x569   :  { %v4007_v25 = vpop.permute.xlu0 %921  ;;  %v4009_v54 = vpop.permute.xlu1 %923 }
 0x56a   :  { %6567 = vst [vmem:[#allocation74_spill] sm:$0xff] %v4007_v25  ;;  %6568 = vst [vmem:[#allocation75_spill] sm:$0xff] %v4009_v54 }
 0x56d   :  { %v4011_v7 = vpop.permute.xlu0 %925  ;;  %v4013_v19 = vpop.permute.xlu1 %927 }
 0x56e   :  { %6569 = vst [vmem:[#allocation76_spill] sm:$0xff] %v4011_v7  ;;  %6570 = vst [vmem:[#allocation77_spill] sm:$0xff] %v4013_v19 }
 0x571   :  { %v957_v26 = vpop.permute.xlu0 %956  ;;  %v959_v39 = vpop.permute.xlu1 %958 }
 0x572   :  { %v963_v28 = vmul.f32 %v957_v26, %v3480_v14  ;;  %v962_v29 = vmul.f32 %v957_v26, %v3485_v15  ;;  %v965_v55 = vmul.f32 %v957_v26, %v3494_v20  ;;  %v964_v25 = vmul.f32 %v957_v26, %v3499_v21  ;;  %v3162_v26 = vld [vmem:[%s6302_s1 + $0x110] sm:$0xff] }
 0x573   :  { %v967_v7 = vmul.f32 %v959_v39, %v3506_v23  ;;  %v966_v19 = vmul.f32 %v959_v39, %v3511_v24 }
 0x574   :  { %980 = vrot.lane.b32.xlu1 %v963_v28, %s3362_s21  ;;  %978 = vrot.lane.b32.xlu0 %v962_v29, %s3362_s21  ;;  %v969_v28 = vmul.f32 %v959_v39, %v3524_v30  ;;  %v968_v29 = vmul.f32 %v959_v39, %v3529_v31 }
 0x578   :  { %984 = vrot.lane.b32.xlu1 %v965_v55, %s3362_s21  ;;  %982 = vrot.lane.b32.xlu0 %v964_v25, %s3362_s21  ;;  %v3163_v55 = vld [vmem:[%s6302_s1 + $0x118] sm:$0xff] }
 0x57c   :  { %988 = vrot.lane.b32.xlu1 %v967_v7, %s3362_s21  ;;  %986 = vrot.lane.b32.xlu0 %v966_v19, %s3362_s21 }
 0x580   :  { %992 = vrot.lane.b32.xlu1 %v969_v28, %s3362_s21  ;;  %990 = vrot.lane.b32.xlu0 %v968_v29, %s3362_s21 }
 0x584   :  { %1018 = vrot.lane.b32.xlu0 %v3162_v26, %s3363_s26  ;;  %1020 = vrot.lane.b32.xlu1 %v3163_v55, %s3363_s26  ;;  %s3371_s26 = smov 67  }
 0x5e6   :  { %v4037_v19 = vpop.permute.xlu1 %980  ;;  %v4039_v7 = vpop.permute.xlu0 %978 }
 0x5e7   :  { %6571 = vst [vmem:[#allocation78_spill] sm:$0xff] %v4037_v19  ;;  %6572 = vst [vmem:[#allocation79_spill] sm:$0xff] %v4039_v7 }
 0x5ea   :  { %v4041_v39 = vpop.permute.xlu1 %984  ;;  %v4043_v25 = vpop.permute.xlu0 %982 }
 0x5eb   :  { %6573 = vst [vmem:[#allocation80_spill] sm:$0xff] %v4041_v39  ;;  %6574 = vst [vmem:[#allocation81_spill] sm:$0xff] %v4043_v25 }
 0x5ee   :  { %v4045_v28 = vpop.permute.xlu0 %986  ;;  %v4047_v29 = vpop.permute.xlu1 %988 }
 0x5ef   :  { %6575 = vst [vmem:[#allocation82_spill] sm:$0xff] %v4045_v28  ;;  %6576 = vst [vmem:[#allocation83_spill] sm:$0xff] %v4047_v29 }
 0x5f2   :  { %v4049_v54 = vpop.permute.xlu0 %990  ;;  %v4051_v38 = vpop.permute.xlu1 %992 }
 0x5f3   :  { %6577 = vst [vmem:[#allocation84_spill] sm:$0xff] %v4049_v54  ;;  %6578 = vst [vmem:[#allocation85_spill] sm:$0xff] %v4051_v38 }
 0x5f6   :  { %v1019_v22 = vpop.permute.xlu0 %1018  ;;  %v1021_v39 = vpop.permute.xlu1 %1020 }
 0x5f7   :  { %v1025_v26 = vmul.f32 %v1019_v22, %v3480_v14  ;;  %v1024_v55 = vmul.f32 %v1019_v22, %v3485_v15  ;;  %v1027_v25 = vmul.f32 %v1019_v22, %v3494_v20  ;;  %v1026_v28 = vmul.f32 %v1019_v22, %v3499_v21  ;;  %v3164_v22 = vld [vmem:[%s6302_s1 + $0x120] sm:$0xff] }
 0x5f8   :  { %v1029_v38 = vmul.f32 %v1021_v39, %v3506_v23  ;;  %v1028_v54 = vmul.f32 %v1021_v39, %v3511_v24 }
 0x5f9   :  { %1042 = vrot.lane.b32.xlu1 %v1025_v26, %s3362_s21  ;;  %1040 = vrot.lane.b32.xlu0 %v1024_v55, %s3362_s21  ;;  %v1031_v26 = vmul.f32 %v1021_v39, %v3524_v30  ;;  %v1030_v55 = vmul.f32 %v1021_v39, %v3529_v31 }
 0x5fd   :  { %1046 = vrot.lane.b32.xlu1 %v1027_v25, %s3362_s21  ;;  %1044 = vrot.lane.b32.xlu0 %v1026_v28, %s3362_s21  ;;  %v3165_v25 = vld [vmem:[%s6302_s1 + $0x128] sm:$0xff] }
 0x601   :  { %1050 = vrot.lane.b32.xlu1 %v1029_v38, %s3362_s21  ;;  %1048 = vrot.lane.b32.xlu0 %v1028_v54, %s3362_s21 }
 0x605   :  { %1054 = vrot.lane.b32.xlu1 %v1031_v26, %s3362_s21  ;;  %1052 = vrot.lane.b32.xlu0 %v1030_v55, %s3362_s21  ;;  %s3370_s21 = smov 63  }
 0x609   :  { %1083 = vrot.lane.b32.xlu0 %v3164_v22, %s3364_s5  ;;  %1085 = vrot.lane.b32.xlu1 %v3165_v25, %s3364_s5 }
 0x66b   :  { %v4075_v38 = vpop.permute.xlu1 %1042  ;;  %v4077_v54 = vpop.permute.xlu0 %1040 }
 0x66c   :  { %6579 = vst [vmem:[#allocation86_spill] sm:$0xff] %v4075_v38  ;;  %6580 = vst [vmem:[#allocation87_spill] sm:$0xff] %v4077_v54 }
 0x66f   :  { %v4079_v39 = vpop.permute.xlu1 %1046  ;;  %v4081_v28 = vpop.permute.xlu0 %1044 }
 0x670   :  { %6581 = vst [vmem:[#allocation88_spill] sm:$0xff] %v4079_v39  ;;  %6582 = vst [vmem:[#allocation89_spill] sm:$0xff] %v4081_v28 }
 0x673   :  { %v4083_v26 = vpop.permute.xlu0 %1048  ;;  %v4085_v55 = vpop.permute.xlu1 %1050 }
 0x674   :  { %6583 = vst [vmem:[#allocation90_spill] sm:$0xff] %v4083_v26  ;;  %6584 = vst [vmem:[#allocation91_spill] sm:$0xff] %v4085_v55 }
 0x677   :  { %v4087_v29 = vpop.permute.xlu0 %1052  ;;  %v4089_v7 = vpop.permute.xlu1 %1054 }
 0x678   :  { %6585 = vst [vmem:[#allocation92_spill] sm:$0xff] %v4087_v29  ;;  %6586 = vst [vmem:[#allocation93_spill] sm:$0xff] %v4089_v7 }
 0x67b   :  { %v1084_v19 = vpop.permute.xlu0 %1083  ;;  %v1086_v39 = vpop.permute.xlu1 %1085 }
 0x67c   :  { %v1090_v22 = vmul.f32 %v1084_v19, %v3480_v14  ;;  %v1089_v25 = vmul.f32 %v1084_v19, %v3485_v15  ;;  %v1092_v28 = vmul.f32 %v1084_v19, %v3494_v20  ;;  %v1091_v26 = vmul.f32 %v1084_v19, %v3499_v21  ;;  %v3166_v20 = vld [vmem:[%s6302_s1 + $0x130] sm:$0xff]  ;;  %v3167_v21 = vld [vmem:[%s6302_s1 + $0x138] sm:$0xff] }
 0x67d   :  { %v1094_v29 = vmul.f32 %v1086_v39, %v3506_v23  ;;  %v1093_v14 = vmul.f32 %v1086_v39, %v3511_v24  ;;  %v1096_v15 = vmul.f32 %v1086_v39, %v3524_v30 }
 0x67e   :  { %1107 = vrot.lane.b32.xlu1 %v1090_v22, %s3365_s6  ;;  %1105 = vrot.lane.b32.xlu0 %v1089_v25, %s3365_s6  ;;  %v1095_v22 = vmul.f32 %v1086_v39, %v3529_v31  ;;  %v4132_v25 = vld [vmem:[%s6303_s0 + $0x8] sm:$0xff] }
 0x682   :  { %1111 = vrot.lane.b32.xlu1 %v1092_v28, %s3365_s6  ;;  %1109 = vrot.lane.b32.xlu0 %v1091_v26, %s3365_s6 }
 0x686   :  { %1115 = vrot.lane.b32.xlu1 %v1094_v29, %s3365_s6  ;;  %1113 = vrot.lane.b32.xlu0 %v1093_v14, %s3365_s6 }
 0x68a   :  { %1119 = vrot.lane.b32.xlu1 %v1096_v15, %s3365_s6  ;;  %1117 = vrot.lane.b32.xlu0 %v1095_v22, %s3365_s6  ;;  %v4138_v15 = vld [vmem:[%s6303_s0] sm:$0xff] }
 0x68e   :  { %1145 = vrot.lane.b32.xlu0 %v3166_v20, %s3366_s15  ;;  %1147 = vrot.lane.b32.xlu1 %v3167_v21, %s3366_s15  ;;  %v4146_v21 = vld [vmem:[%s6303_s0 + $0x18] sm:$0xff]  ;;  %s3367_s15 = smov 50  }
 0x6f0   :  { %v4113_v23 = vpop.permute.xlu1 %1107  ;;  %v4115_v24 = vpop.permute.xlu0 %1105 }
 0x6f1   :  { %6587 = vst [vmem:[#allocation94_spill] sm:$0xff] %v4113_v23  ;;  %6588 = vst [vmem:[#allocation95_spill] sm:$0xff] %v4115_v24 }
 0x6f4   :  { %v4117_v30 = vpop.permute.xlu1 %1111  ;;  %v4119_v31 = vpop.permute.xlu0 %1109 }
 0x6f5   :  { %6589 = vst [vmem:[#allocation96_spill] sm:$0xff] %v4117_v30  ;;  %6590 = vst [vmem:[#allocation97_spill] sm:$0xff] %v4119_v31 }
 0x6f8   :  { %v4121_v19 = vpop.permute.xlu0 %1113  ;;  %v4123_v29 = vpop.permute.xlu1 %1115 }
 0x6f9   :  { %6591 = vst [vmem:[#allocation98_spill] sm:$0xff] %v4121_v19  ;;  %6592 = vst [vmem:[#allocation99_spill] sm:$0xff] %v4123_v29  ;;  %v4166_v29 = vld [vmem:[%s6303_s0 + $0x28] sm:$0xff] }
 0x6fc   :  { %v4125_v39 = vpop.permute.xlu0 %1117  ;;  %v4127_v28 = vpop.permute.xlu1 %1119 }
 0x6fd   :  { %6593 = vst [vmem:[#allocation100_spill] sm:$0xff] %v4125_v39  ;;  %6594 = vst [vmem:[#allocation101_spill] sm:$0xff] %v4127_v28  ;;  %v4152_v39 = vld [vmem:[%s6303_s0 + $0x10] sm:$0xff] }
 0x700   :  { %v1146_v26 = vpop.permute.xlu0 %1145  ;;  %v1148_v20 = vpop.permute.xlu1 %1147 }
 0x701   :  { %v1152_v14 = vmul.f32 %v4132_v25, %v1146_v26  ;;  %v1151_v22 = vmul.f32 %v4138_v15, %v1146_v26  ;;  %v1154_v28 = vmul.f32 %v4146_v21, %v1146_v26  ;;  %v1153_v19 = vmul.f32 %v4152_v39, %v1146_v26  ;;  %v4180_v26 = vld [vmem:[%s6303_s0 + $0x38] sm:$0xff] }
 0x702   :  { %v1155_v30 = vmul.f32 %v4166_v29, %v1148_v20  ;;  %v1157_v31 = vmul.f32 %v4180_v26, %v1148_v20 }
 0x703   :  { %1169 = vrot.lane.b32.xlu1 %v1152_v14, %s3365_s6  ;;  %1167 = vrot.lane.b32.xlu0 %v1151_v22, %s3365_s6  ;;  %v4160_v14 = vld [vmem:[%s6303_s0 + $0x30] sm:$0xff] }
 0x704   :  { %v1156_v22 = vmul.f32 %v4160_v14, %v1148_v20 }
 0x707   :  { %1173 = vrot.lane.b32.xlu1 %v1154_v28, %s3365_s6  ;;  %1171 = vrot.lane.b32.xlu0 %v1153_v19, %s3365_s6  ;;  %v4174_v19 = vld [vmem:[%s6303_s0 + $0x40] sm:$0xff] }
 0x708   :  { %v1158_v28 = vmul.f32 %v4174_v19, %v1148_v20 }
 0x70b   :  { %1177 = vrot.lane.b32.xlu1 %v1156_v22, %s3365_s6  ;;  %1175 = vrot.lane.b32.xlu0 %v1155_v30, %s3365_s6  ;;  %v3168_v30 = vld [vmem:[%s6302_s1 + $0x140] sm:$0xff]  ;;  %v3169_v22 = vld [vmem:[%s6302_s1 + $0x148] sm:$0xff] }
 0x70f   :  { %1181 = vrot.lane.b32.xlu1 %v1158_v28, %s3365_s6  ;;  %1179 = vrot.lane.b32.xlu0 %v1157_v31, %s3365_s6  ;;  %s3368_s6 = smov 78  }
 0x713   :  { %1210 = vrot.lane.b32.xlu0 %v3168_v30, %s3367_s15  ;;  %1212 = vrot.lane.b32.xlu1 %v3169_v22, %s3367_s15 }
 0x775   :  { %v4191_v24 = vpop.permute.xlu1 %1169  ;;  %v4193_v23 = vpop.permute.xlu0 %1167 }
 0x776   :  { %6595 = vst [vmem:[#allocation102_spill] sm:$0xff] %v4191_v24  ;;  %6596 = vst [vmem:[#allocation103_spill] sm:$0xff] %v4193_v23 }
 0x779   :  { %v4195_v20 = vpop.permute.xlu1 %1173  ;;  %v4197_v28 = vpop.permute.xlu0 %1171 }
 0x77a   :  { %6597 = vst [vmem:[#allocation104_spill] sm:$0xff] %v4195_v20  ;;  %6598 = vst [vmem:[#allocation105_spill] sm:$0xff] %v4197_v28 }
 0x77d   :  { %v4199_v31 = vpop.permute.xlu0 %1175  ;;  %v4201_v7 = vpop.permute.xlu1 %1177 }
 0x77e   :  { %6599 = vst [vmem:[#allocation106_spill] sm:$0xff] %v4199_v31  ;;  %6600 = vst [vmem:[#allocation107_spill] sm:$0xff] %v4201_v7 }
 0x781   :  { %v4203_v55 = vpop.permute.xlu0 %1179  ;;  %v4205_v54 = vpop.permute.xlu1 %1181 }
 0x782   :  { %6601 = vst [vmem:[#allocation108_spill] sm:$0xff] %v4203_v55  ;;  %6602 = vst [vmem:[#allocation109_spill] sm:$0xff] %v4205_v54 }
 0x785   :  { %v1211_v38 = vpop.permute.xlu0 %1210  ;;  %v1213_v23 = vpop.permute.xlu1 %1212 }
 0x786   :  { %v1217_v30 = vmul.f32 %v4132_v25, %v1211_v38  ;;  %v1216_v22 = vmul.f32 %v4138_v15, %v1211_v38  ;;  %v1219_v20 = vmul.f32 %v4146_v21, %v1211_v38  ;;  %v1218_v28 = vmul.f32 %v4152_v39, %v1211_v38  ;;  %v3171_v38 = vld [vmem:[%s6302_s1 + $0x158] sm:$0xff] }
 0x787   :  { %v1221_v31 = vmul.f32 %v4160_v14, %v1213_v23  ;;  %v1220_v55 = vmul.f32 %v4166_v29, %v1213_v23  ;;  %v1223_v54 = vmul.f32 %v4174_v19, %v1213_v23  ;;  %v1222_v7 = vmul.f32 %v4180_v26, %v1213_v23 }
 0x788   :  { %1234 = vrot.lane.b32.xlu1 %v1217_v30, %s3368_s6  ;;  %1232 = vrot.lane.b32.xlu0 %v1216_v22, %s3368_s6  ;;  %v3170_v30 = vld [vmem:[%s6302_s1 + $0x150] sm:$0xff] }
 0x78c   :  { %1238 = vrot.lane.b32.xlu1 %v1219_v20, %s3368_s6  ;;  %1236 = vrot.lane.b32.xlu0 %v1218_v28, %s3368_s6 }
 0x790   :  { %1242 = vrot.lane.b32.xlu1 %v1221_v31, %s3368_s6  ;;  %1240 = vrot.lane.b32.xlu0 %v1220_v55, %s3368_s6 }
 0x794   :  { %1246 = vrot.lane.b32.xlu1 %v1223_v54, %s3368_s6  ;;  %1244 = vrot.lane.b32.xlu0 %v1222_v7, %s3368_s6  ;;  %s3374_s6 = smov 69  }
 0x798   :  { %1272 = vrot.lane.b32.xlu0 %v3170_v30, %s3369_s20  ;;  %1274 = vrot.lane.b32.xlu1 %v3171_v38, %s3369_s20 }
 0x7fa   :  { %v4221_v20 = vpop.permute.xlu1 %1234  ;;  %v4223_v55 = vpop.permute.xlu0 %1232 }
 0x7fb   :  { %6603 = vst [vmem:[#allocation110_spill] sm:$0xff] %v4221_v20  ;;  %6604 = vst [vmem:[#allocation111_spill] sm:$0xff] %v4223_v55 }
 0x7fe   :  { %v4225_v28 = vpop.permute.xlu1 %1238  ;;  %v4227_v23 = vpop.permute.xlu0 %1236 }
 0x7ff   :  { %6605 = vst [vmem:[#allocation112_spill] sm:$0xff] %v4225_v28  ;;  %6606 = vst [vmem:[#allocation113_spill] sm:$0xff] %v4227_v23 }
 0x802   :  { %v4229_v7 = vpop.permute.xlu0 %1240  ;;  %v4231_v54 = vpop.permute.xlu1 %1242 }
 0x803   :  { %6607 = vst [vmem:[#allocation114_spill] sm:$0xff] %v4229_v7  ;;  %6608 = vst [vmem:[#allocation115_spill] sm:$0xff] %v4231_v54 }
 0x806   :  { %v4233_v31 = vpop.permute.xlu0 %1244  ;;  %v4235_v22 = vpop.permute.xlu1 %1246 }
 0x807   :  { %6609 = vst [vmem:[#allocation116_spill] sm:$0xff] %v4233_v31  ;;  %6610 = vst [vmem:[#allocation117_spill] sm:$0xff] %v4235_v22 }
 0x80a   :  { %v1273_v24 = vpop.permute.xlu0 %1272  ;;  %v1275_v55 = vpop.permute.xlu1 %1274 }
 0x80b   :  { %v1279_v30 = vmul.f32 %v4132_v25, %v1273_v24  ;;  %v1278_v38 = vmul.f32 %v4138_v15, %v1273_v24  ;;  %v1281_v28 = vmul.f32 %v4146_v21, %v1273_v24  ;;  %v1280_v23 = vmul.f32 %v4152_v39, %v1273_v24  ;;  %v3173_v24 = vld [vmem:[%s6302_s1 + $0x168] sm:$0xff] }
 0x80c   :  { %v1283_v7 = vmul.f32 %v4160_v14, %v1275_v55  ;;  %v1282_v31 = vmul.f32 %v4166_v29, %v1275_v55  ;;  %v1285_v22 = vmul.f32 %v4174_v19, %v1275_v55  ;;  %v1284_v54 = vmul.f32 %v4180_v26, %v1275_v55 }
 0x80d   :  { %1296 = vrot.lane.b32.xlu1 %v1279_v30, %s3370_s21  ;;  %1294 = vrot.lane.b32.xlu0 %v1278_v38, %s3370_s21  ;;  %v3172_v30 = vld [vmem:[%s6302_s1 + $0x160] sm:$0xff] }
 0x811   :  { %1300 = vrot.lane.b32.xlu1 %v1281_v28, %s3370_s21  ;;  %1298 = vrot.lane.b32.xlu0 %v1280_v23, %s3370_s21 }
 0x815   :  { %1304 = vrot.lane.b32.xlu1 %v1283_v7, %s3370_s21  ;;  %1302 = vrot.lane.b32.xlu0 %v1282_v31, %s3370_s21 }
 0x819   :  { %1308 = vrot.lane.b32.xlu1 %v1285_v22, %s3370_s21  ;;  %1306 = vrot.lane.b32.xlu0 %v1284_v54, %s3370_s21  ;;  %s3376_s21 = smov 70  }
 0x81d   :  { %1338 = vrot.lane.b32.xlu0 %v3172_v30, %s3371_s26  ;;  %1340 = vrot.lane.b32.xlu1 %v3173_v24, %s3371_s26  ;;  %s3377_s26 = smov 71  }
 0x87f   :  { %v4251_v28 = vpop.permute.xlu1 %1296  ;;  %v4253_v23 = vpop.permute.xlu0 %1294 }
 0x880   :  { %6611 = vst [vmem:[#allocation118_spill] sm:$0xff] %v4251_v28  ;;  %6612 = vst [vmem:[#allocation119_spill] sm:$0xff] %v4253_v23 }
 0x883   :  { %v4255_v7 = vpop.permute.xlu1 %1300  ;;  %v4257_v55 = vpop.permute.xlu0 %1298 }
 0x884   :  { %6613 = vst [vmem:[#allocation120_spill] sm:$0xff] %v4255_v7  ;;  %6614 = vst [vmem:[#allocation121_spill] sm:$0xff] %v4257_v55 }
 0x887   :  { %v4259_v54 = vpop.permute.xlu0 %1302  ;;  %v4261_v31 = vpop.permute.xlu1 %1304 }
 0x888   :  { %6615 = vst [vmem:[#allocation122_spill] sm:$0xff] %v4259_v54  ;;  %6616 = vst [vmem:[#allocation123_spill] sm:$0xff] %v4261_v31 }
 0x88b   :  { %v4263_v22 = vpop.permute.xlu0 %1306  ;;  %v4265_v38 = vpop.permute.xlu1 %1308 }
 0x88c   :  { %6617 = vst [vmem:[#allocation124_spill] sm:$0xff] %v4263_v22  ;;  %6618 = vst [vmem:[#allocation125_spill] sm:$0xff] %v4265_v38 }
 0x88f   :  { %v1339_v20 = vpop.permute.xlu0 %1338  ;;  %v1341_v7 = vpop.permute.xlu1 %1340 }
 0x890   :  { %v1345_v30 = vmul.f32 %v4132_v25, %v1339_v20  ;;  %v1344_v24 = vmul.f32 %v4138_v15, %v1339_v20  ;;  %v1347_v55 = vmul.f32 %v4146_v21, %v1339_v20  ;;  %v1346_v54 = vmul.f32 %v4152_v39, %v1339_v20  ;;  %v3174_v20 = vld [vmem:[%s6302_s1 + $0x170] sm:$0xff] }
 0x891   :  { %v1349_v22 = vmul.f32 %v4160_v14, %v1341_v7  ;;  %v1348_v38 = vmul.f32 %v4166_v29, %v1341_v7 }
 0x892   :  { %1362 = vrot.lane.b32.xlu1 %v1345_v30, %s3372_s27  ;;  %1360 = vrot.lane.b32.xlu0 %v1344_v24, %s3372_s27  ;;  %v1351_v30 = vmul.f32 %v4174_v19, %v1341_v7  ;;  %v1350_v24 = vmul.f32 %v4180_v26, %v1341_v7 }
 0x896   :  { %1366 = vrot.lane.b32.xlu1 %v1347_v55, %s3372_s27  ;;  %1364 = vrot.lane.b32.xlu0 %v1346_v54, %s3372_s27  ;;  %v3175_v55 = vld [vmem:[%s6302_s1 + $0x178] sm:$0xff] }
 0x89a   :  { %1370 = vrot.lane.b32.xlu1 %v1349_v22, %s3372_s27  ;;  %1368 = vrot.lane.b32.xlu0 %v1348_v38, %s3372_s27 }
 0x89e   :  { %1374 = vrot.lane.b32.xlu1 %v1351_v30, %s3372_s27  ;;  %1372 = vrot.lane.b32.xlu0 %v1350_v24, %s3372_s27 }
 0x8a2   :  { %1400 = vrot.lane.b32.xlu0 %v3174_v20, %s3373_s7  ;;  %1402 = vrot.lane.b32.xlu1 %v3175_v55, %s3373_s7  ;;  %s3379_s7 = smov 72  }
 0x904   :  { %v4289_v54 = vpop.permute.xlu1 %1362  ;;  %v4291_v22 = vpop.permute.xlu0 %1360 }
 0x905   :  { %6619 = vst [vmem:[#allocation126_spill] sm:$0xff] %v4289_v54  ;;  %6620 = vst [vmem:[#allocation127_spill] sm:$0xff] %v4291_v22 }
 0x908   :  { %v4293_v7 = vpop.permute.xlu1 %1366  ;;  %v4295_v38 = vpop.permute.xlu0 %1364 }
 0x909   :  { %6621 = vst [vmem:[#allocation128_spill] sm:$0xff] %v4293_v7  ;;  %6622 = vst [vmem:[#allocation129_spill] sm:$0xff] %v4295_v38 }
 0x90c   :  { %v4297_v30 = vpop.permute.xlu0 %1368  ;;  %v4299_v24 = vpop.permute.xlu1 %1370 }
 0x90d   :  { %6623 = vst [vmem:[#allocation130_spill] sm:$0xff] %v4297_v30  ;;  %6624 = vst [vmem:[#allocation131_spill] sm:$0xff] %v4299_v24 }
 0x910   :  { %v4301_v31 = vpop.permute.xlu0 %1372  ;;  %v4303_v23 = vpop.permute.xlu1 %1374 }
 0x911   :  { %6625 = vst [vmem:[#allocation132_spill] sm:$0xff] %v4301_v31  ;;  %6626 = vst [vmem:[#allocation133_spill] sm:$0xff] %v4303_v23 }
 0x914   :  { %v1401_v28 = vpop.permute.xlu0 %1400  ;;  %v1403_v7 = vpop.permute.xlu1 %1402 }
 0x915   :  { %v1407_v20 = vmul.f32 %v4132_v25, %v1401_v28  ;;  %v1406_v55 = vmul.f32 %v4138_v15, %v1401_v28  ;;  %v1409_v38 = vmul.f32 %v4146_v21, %v1401_v28  ;;  %v1408_v30 = vmul.f32 %v4152_v39, %v1401_v28  ;;  %v3176_v28 = vld [vmem:[%s6302_s1 + $0x180] sm:$0xff] }
 0x916   :  { %v1411_v23 = vmul.f32 %v4160_v14, %v1403_v7  ;;  %v1410_v31 = vmul.f32 %v4166_v29, %v1403_v7 }
 0x917   :  { %1424 = vrot.lane.b32.xlu1 %v1407_v20, %s3372_s27  ;;  %1422 = vrot.lane.b32.xlu0 %v1406_v55, %s3372_s27  ;;  %v1413_v20 = vmul.f32 %v4174_v19, %v1403_v7  ;;  %v1412_v55 = vmul.f32 %v4180_v26, %v1403_v7 }
 0x91b   :  { %1428 = vrot.lane.b32.xlu1 %v1409_v38, %s3372_s27  ;;  %1426 = vrot.lane.b32.xlu0 %v1408_v30, %s3372_s27  ;;  %v3177_v38 = vld [vmem:[%s6302_s1 + $0x188] sm:$0xff] }
 0x91f   :  { %1432 = vrot.lane.b32.xlu1 %v1411_v23, %s3372_s27  ;;  %1430 = vrot.lane.b32.xlu0 %v1410_v31, %s3372_s27 }
 0x923   :  { %1436 = vrot.lane.b32.xlu1 %v1413_v20, %s3372_s27  ;;  %1434 = vrot.lane.b32.xlu0 %v1412_v55, %s3372_s27  ;;  %s3378_s27 = smov 57  }
 0x927   :  { %1465 = vrot.lane.b32.xlu0 %v3176_v28, %s3374_s6  ;;  %1467 = vrot.lane.b32.xlu1 %v3177_v38, %s3374_s6  ;;  %s3380_s6 = smov 88  }
 0x989   :  { %v4327_v23 = vpop.permute.xlu1 %1424  ;;  %v4329_v31 = vpop.permute.xlu0 %1422 }
 0x98a   :  { %6627 = vst [vmem:[#allocation134_spill] sm:$0xff] %v4327_v23  ;;  %6628 = vst [vmem:[#allocation135_spill] sm:$0xff] %v4329_v31 }
 0x98d   :  { %v4331_v7 = vpop.permute.xlu1 %1428  ;;  %v4333_v30 = vpop.permute.xlu0 %1426 }
 0x98e   :  { %6629 = vst [vmem:[#allocation136_spill] sm:$0xff] %v4331_v7  ;;  %6630 = vst [vmem:[#allocation137_spill] sm:$0xff] %v4333_v30 }
 0x991   :  { %v4335_v20 = vpop.permute.xlu0 %1430  ;;  %v4337_v55 = vpop.permute.xlu1 %1432 }
 0x992   :  { %6631 = vst [vmem:[#allocation138_spill] sm:$0xff] %v4335_v20  ;;  %6632 = vst [vmem:[#allocation139_spill] sm:$0xff] %v4337_v55 }
 0x995   :  { %v4339_v24 = vpop.permute.xlu0 %1434  ;;  %v4341_v22 = vpop.permute.xlu1 %1436 }
 0x996   :  { %6633 = vst [vmem:[#allocation140_spill] sm:$0xff] %v4339_v24  ;;  %6634 = vst [vmem:[#allocation141_spill] sm:$0xff] %v4341_v22 }
 0x999   :  { %v1466_v54 = vpop.permute.xlu0 %1465  ;;  %v1468_v7 = vpop.permute.xlu1 %1467 }
 0x99a   :  { %v1472_v28 = vmul.f32 %v4132_v25, %v1466_v54  ;;  %v1471_v38 = vmul.f32 %v4138_v15, %v1466_v54  ;;  %v1474_v30 = vmul.f32 %v4146_v21, %v1466_v54  ;;  %v1473_v20 = vmul.f32 %v4152_v39, %v1466_v54  ;;  %v3178_v54 = vld [vmem:[%s6302_s1 + $0x190] sm:$0xff] }
 0x99b   :  { %v1476_v24 = vmul.f32 %v4160_v14, %v1468_v7  ;;  %v1475_v22 = vmul.f32 %v4166_v29, %v1468_v7 }
 0x99c   :  { %1489 = vrot.lane.b32.xlu1 %v1472_v28, %s3375_s16  ;;  %1487 = vrot.lane.b32.xlu0 %v1471_v38, %s3375_s16  ;;  %v1478_v28 = vmul.f32 %v4174_v19, %v1468_v7  ;;  %v1477_v38 = vmul.f32 %v4180_v26, %v1468_v7 }
 0x9a0   :  { %1493 = vrot.lane.b32.xlu1 %v1474_v30, %s3375_s16  ;;  %1491 = vrot.lane.b32.xlu0 %v1473_v20, %s3375_s16  ;;  %v3179_v30 = vld [vmem:[%s6302_s1 + $0x198] sm:$0xff] }
 0x9a4   :  { %1497 = vrot.lane.b32.xlu1 %v1476_v24, %s3375_s16  ;;  %1495 = vrot.lane.b32.xlu0 %v1475_v22, %s3375_s16 }
 0x9a8   :  { %1501 = vrot.lane.b32.xlu1 %v1478_v28, %s3375_s16  ;;  %1499 = vrot.lane.b32.xlu0 %v1477_v38, %s3375_s16 }
 0x9ac   :  { %1527 = vrot.lane.b32.xlu0 %v3178_v54, %s3376_s21  ;;  %1529 = vrot.lane.b32.xlu1 %v3179_v30, %s3376_s21  ;;  %s3382_s21 = smov 89  }
 0xa0e   :  { %v4365_v22 = vpop.permute.xlu1 %1489  ;;  %v4367_v24 = vpop.permute.xlu0 %1487 }
 0xa0f   :  { %6635 = vst [vmem:[#allocation142_spill] sm:$0xff] %v4365_v22  ;;  %6636 = vst [vmem:[#allocation143_spill] sm:$0xff] %v4367_v24 }
 0xa12   :  { %v4369_v7 = vpop.permute.xlu1 %1493  ;;  %v4371_v20 = vpop.permute.xlu0 %1491 }
 0xa13   :  { %6637 = vst [vmem:[#allocation144_spill] sm:$0xff] %v4369_v7  ;;  %6638 = vst [vmem:[#allocation145_spill] sm:$0xff] %v4371_v20 }
 0xa16   :  { %v4373_v28 = vpop.permute.xlu0 %1495  ;;  %v4375_v38 = vpop.permute.xlu1 %1497 }
 0xa17   :  { %6639 = vst [vmem:[#allocation146_spill] sm:$0xff] %v4373_v28  ;;  %6640 = vst [vmem:[#allocation147_spill] sm:$0xff] %v4375_v38 }
 0xa1a   :  { %v4377_v55 = vpop.permute.xlu0 %1499  ;;  %v4379_v31 = vpop.permute.xlu1 %1501 }
 0xa1b   :  { %6641 = vst [vmem:[#allocation148_spill] sm:$0xff] %v4377_v55  ;;  %6642 = vst [vmem:[#allocation149_spill] sm:$0xff] %v4379_v31 }
 0xa1e   :  { %v1528_v23 = vpop.permute.xlu0 %1527  ;;  %v1530_v7 = vpop.permute.xlu1 %1529 }
 0xa1f   :  { %v1534_v54 = vmul.f32 %v4132_v25, %v1528_v23  ;;  %v1533_v30 = vmul.f32 %v4138_v15, %v1528_v23  ;;  %v1536_v20 = vmul.f32 %v4146_v21, %v1528_v23  ;;  %v1535_v28 = vmul.f32 %v4152_v39, %v1528_v23  ;;  %v3180_v23 = vld [vmem:[%s6302_s1 + $0x1a0] sm:$0xff] }
 0xa20   :  { %v1538_v31 = vmul.f32 %v4160_v14, %v1530_v7  ;;  %v1537_v55 = vmul.f32 %v4166_v29, %v1530_v7 }
 0xa21   :  { %1551 = vrot.lane.b32.xlu1 %v1534_v54, %s3375_s16  ;;  %1549 = vrot.lane.b32.xlu0 %v1533_v30, %s3375_s16  ;;  %v1540_v54 = vmul.f32 %v4174_v19, %v1530_v7  ;;  %v1539_v30 = vmul.f32 %v4180_v26, %v1530_v7 }
 0xa25   :  { %1555 = vrot.lane.b32.xlu1 %v1536_v20, %s3375_s16  ;;  %1553 = vrot.lane.b32.xlu0 %v1535_v28, %s3375_s16  ;;  %v3181_v20 = vld [vmem:[%s6302_s1 + $0x1a8] sm:$0xff] }
 0xa29   :  { %1559 = vrot.lane.b32.xlu1 %v1538_v31, %s3375_s16  ;;  %1557 = vrot.lane.b32.xlu0 %v1537_v55, %s3375_s16 }
 0xa2d   :  { %1563 = vrot.lane.b32.xlu1 %v1540_v54, %s3375_s16  ;;  %1561 = vrot.lane.b32.xlu0 %v1539_v30, %s3375_s16  ;;  %s3381_s16 = smov 40  }
 0xa31   :  { %1592 = vrot.lane.b32.xlu0 %v3180_v23, %s3377_s26  ;;  %1594 = vrot.lane.b32.xlu1 %v3181_v20, %s3377_s26  ;;  %s3383_s26 = smov 90  }
 0xa93   :  { %v4403_v31 = vpop.permute.xlu1 %1551  ;;  %v4405_v55 = vpop.permute.xlu0 %1549 }
 0xa94   :  { %6643 = vst [vmem:[#allocation150_spill] sm:$0xff] %v4403_v31  ;;  %6644 = vst [vmem:[#allocation151_spill] sm:$0xff] %v4405_v55 }
 0xa97   :  { %v4407_v7 = vpop.permute.xlu1 %1555  ;;  %v4409_v28 = vpop.permute.xlu0 %1553 }
 0xa98   :  { %6645 = vst [vmem:[#allocation152_spill] sm:$0xff] %v4407_v7  ;;  %6646 = vst [vmem:[#allocation153_spill] sm:$0xff] %v4409_v28 }
 0xa9b   :  { %v4411_v54 = vpop.permute.xlu0 %1557  ;;  %v4413_v30 = vpop.permute.xlu1 %1559 }
 0xa9c   :  { %6647 = vst [vmem:[#allocation154_spill] sm:$0xff] %v4411_v54  ;;  %6648 = vst [vmem:[#allocation155_spill] sm:$0xff] %v4413_v30 }
 0xa9f   :  { %v4415_v38 = vpop.permute.xlu0 %1561  ;;  %v4417_v24 = vpop.permute.xlu1 %1563 }
 0xaa0   :  { %6649 = vst [vmem:[#allocation156_spill] sm:$0xff] %v4415_v38  ;;  %6650 = vst [vmem:[#allocation157_spill] sm:$0xff] %v4417_v24 }
 0xaa3   :  { %v1593_v22 = vpop.permute.xlu0 %1592  ;;  %v1595_v7 = vpop.permute.xlu1 %1594 }
 0xaa4   :  { %v1599_v23 = vmul.f32 %v4132_v25, %v1593_v22  ;;  %v1598_v20 = vmul.f32 %v4138_v15, %v1593_v22  ;;  %v1601_v28 = vmul.f32 %v4146_v21, %v1593_v22  ;;  %v1600_v54 = vmul.f32 %v4152_v39, %v1593_v22  ;;  %v3182_v22 = vld [vmem:[%s6302_s1 + $0x1b0] sm:$0xff] }
 0xaa5   :  { %v1603_v38 = vmul.f32 %v4160_v14, %v1595_v7  ;;  %v1602_v24 = vmul.f32 %v4166_v29, %v1595_v7 }
 0xaa6   :  { %1616 = vrot.lane.b32.xlu1 %v1599_v23, %s3378_s27  ;;  %1614 = vrot.lane.b32.xlu0 %v1598_v20, %s3378_s27  ;;  %v1605_v23 = vmul.f32 %v4174_v19, %v1595_v7  ;;  %v1604_v20 = vmul.f32 %v4180_v26, %v1595_v7 }
 0xaaa   :  { %1620 = vrot.lane.b32.xlu1 %v1601_v28, %s3378_s27  ;;  %1618 = vrot.lane.b32.xlu0 %v1600_v54, %s3378_s27  ;;  %v3183_v28 = vld [vmem:[%s6302_s1 + $0x1b8] sm:$0xff] }
 0xaae   :  { %1624 = vrot.lane.b32.xlu1 %v1603_v38, %s3378_s27  ;;  %1622 = vrot.lane.b32.xlu0 %v1602_v24, %s3378_s27 }
 0xab2   :  { %1628 = vrot.lane.b32.xlu1 %v1605_v23, %s3378_s27  ;;  %1626 = vrot.lane.b32.xlu0 %v1604_v20, %s3378_s27 }
 0xab6   :  { %1654 = vrot.lane.b32.xlu0 %v3182_v22, %s3379_s7  ;;  %1656 = vrot.lane.b32.xlu1 %v3183_v28, %s3379_s7  ;;  %s3385_s7 = smov 91  }
 0xb18   :  { %v4441_v24 = vpop.permute.xlu1 %1616  ;;  %v4443_v38 = vpop.permute.xlu0 %1614 }
 0xb19   :  { %6651 = vst [vmem:[#allocation158_spill] sm:$0xff] %v4441_v24  ;;  %6652 = vst [vmem:[#allocation159_spill] sm:$0xff] %v4443_v38 }
 0xb1c   :  { %v4445_v7 = vpop.permute.xlu1 %1620  ;;  %v4447_v54 = vpop.permute.xlu0 %1618 }
 0xb1d   :  { %6653 = vst [vmem:[#allocation160_spill] sm:$0xff] %v4445_v7  ;;  %6654 = vst [vmem:[#allocation161_spill] sm:$0xff] %v4447_v54 }
 0xb20   :  { %v4449_v23 = vpop.permute.xlu0 %1622  ;;  %v4451_v20 = vpop.permute.xlu1 %1624 }
 0xb21   :  { %6655 = vst [vmem:[#allocation162_spill] sm:$0xff] %v4449_v23  ;;  %6656 = vst [vmem:[#allocation163_spill] sm:$0xff] %v4451_v20 }
 0xb24   :  { %v4453_v30 = vpop.permute.xlu0 %1626  ;;  %v4455_v55 = vpop.permute.xlu1 %1628 }
 0xb25   :  { %6657 = vst [vmem:[#allocation164_spill] sm:$0xff] %v4453_v30  ;;  %6658 = vst [vmem:[#allocation165_spill] sm:$0xff] %v4455_v55 }
 0xb28   :  { %v1655_v31 = vpop.permute.xlu0 %1654  ;;  %v1657_v7 = vpop.permute.xlu1 %1656 }
 0xb29   :  { %v1661_v22 = vmul.f32 %v4132_v25, %v1655_v31  ;;  %v1660_v28 = vmul.f32 %v4138_v15, %v1655_v31  ;;  %v1663_v54 = vmul.f32 %v4146_v21, %v1655_v31  ;;  %v1662_v23 = vmul.f32 %v4152_v39, %v1655_v31  ;;  %v3184_v31 = vld [vmem:[%s6302_s1 + $0x1c0] sm:$0xff] }
 0xb2a   :  { %v1665_v55 = vmul.f32 %v4160_v14, %v1657_v7  ;;  %v1664_v30 = vmul.f32 %v4166_v29, %v1657_v7 }
 0xb2b   :  { %1678 = vrot.lane.b32.xlu1 %v1661_v22, %s3378_s27  ;;  %1676 = vrot.lane.b32.xlu0 %v1660_v28, %s3378_s27  ;;  %v1667_v22 = vmul.f32 %v4174_v19, %v1657_v7  ;;  %v1666_v28 = vmul.f32 %v4180_v26, %v1657_v7 }
 0xb2f   :  { %1682 = vrot.lane.b32.xlu1 %v1663_v54, %s3378_s27  ;;  %1680 = vrot.lane.b32.xlu0 %v1662_v23, %s3378_s27  ;;  %v3185_v54 = vld [vmem:[%s6302_s1 + $0x1c8] sm:$0xff] }
 0xb33   :  { %1686 = vrot.lane.b32.xlu1 %v1665_v55, %s3378_s27  ;;  %1684 = vrot.lane.b32.xlu0 %v1664_v30, %s3378_s27 }
 0xb37   :  { %1690 = vrot.lane.b32.xlu1 %v1667_v22, %s3378_s27  ;;  %1688 = vrot.lane.b32.xlu0 %v1666_v28, %s3378_s27  ;;  %s3384_s27 = smov 38  }
 0xb3b   :  { %1719 = vrot.lane.b32.xlu0 %v3184_v31, %s3380_s6  ;;  %1721 = vrot.lane.b32.xlu1 %v3185_v54, %s3380_s6  ;;  %s3386_s6 = smov 92  }
 0xb9d   :  { %v4479_v55 = vpop.permute.xlu1 %1678  ;;  %v4481_v30 = vpop.permute.xlu0 %1676 }
 0xb9e   :  { %6659 = vst [vmem:[#allocation166_spill] sm:$0xff] %v4479_v55  ;;  %6660 = vst [vmem:[#allocation167_spill] sm:$0xff] %v4481_v30 }
 0xba1   :  { %v4483_v7 = vpop.permute.xlu1 %1682  ;;  %v4485_v23 = vpop.permute.xlu0 %1680 }
 0xba2   :  { %6661 = vst [vmem:[#allocation168_spill] sm:$0xff] %v4483_v7  ;;  %6662 = vst [vmem:[#allocation169_spill] sm:$0xff] %v4485_v23 }
 0xba5   :  { %v4487_v22 = vpop.permute.xlu0 %1684  ;;  %v4489_v28 = vpop.permute.xlu1 %1686 }
 0xba6   :  { %6663 = vst [vmem:[#allocation170_spill] sm:$0xff] %v4487_v22  ;;  %6664 = vst [vmem:[#allocation171_spill] sm:$0xff] %v4489_v28 }
 0xba9   :  { %v4491_v20 = vpop.permute.xlu0 %1688  ;;  %v4493_v38 = vpop.permute.xlu1 %1690 }
 0xbaa   :  { %6665 = vst [vmem:[#allocation172_spill] sm:$0xff] %v4491_v20  ;;  %6666 = vst [vmem:[#allocation173_spill] sm:$0xff] %v4493_v38 }
 0xbad   :  { %v1720_v24 = vpop.permute.xlu0 %1719  ;;  %v1722_v7 = vpop.permute.xlu1 %1721 }
 0xbae   :  { %v1726_v31 = vmul.f32 %v4132_v25, %v1720_v24  ;;  %v1725_v54 = vmul.f32 %v4138_v15, %v1720_v24  ;;  %v1728_v23 = vmul.f32 %v4146_v21, %v1720_v24  ;;  %v1727_v22 = vmul.f32 %v4152_v39, %v1720_v24  ;;  %v3186_v24 = vld [vmem:[%s6302_s1 + $0x1d0] sm:$0xff] }
 0xbaf   :  { %v1730_v20 = vmul.f32 %v4160_v14, %v1722_v7  ;;  %v1729_v38 = vmul.f32 %v4166_v29, %v1722_v7 }
 0xbb0   :  { %1743 = vrot.lane.b32.xlu1 %v1726_v31, %s3381_s16  ;;  %1741 = vrot.lane.b32.xlu0 %v1725_v54, %s3381_s16  ;;  %v1732_v31 = vmul.f32 %v4174_v19, %v1722_v7  ;;  %v1731_v54 = vmul.f32 %v4180_v26, %v1722_v7 }
 0xbb4   :  { %1747 = vrot.lane.b32.xlu1 %v1728_v23, %s3381_s16  ;;  %1745 = vrot.lane.b32.xlu0 %v1727_v22, %s3381_s16  ;;  %v3187_v23 = vld [vmem:[%s6302_s1 + $0x1d8] sm:$0xff] }
 0xbb8   :  { %1751 = vrot.lane.b32.xlu1 %v1730_v20, %s3381_s16  ;;  %1749 = vrot.lane.b32.xlu0 %v1729_v38, %s3381_s16 }
 0xbbc   :  { %1755 = vrot.lane.b32.xlu1 %v1732_v31, %s3381_s16  ;;  %1753 = vrot.lane.b32.xlu0 %v1731_v54, %s3381_s16 }
 0xbc0   :  { %1781 = vrot.lane.b32.xlu0 %v3186_v24, %s3382_s21  ;;  %1783 = vrot.lane.b32.xlu1 %v3187_v23, %s3382_s21  ;;  %s3388_s21 = smov 93  }
 0xc22   :  { %v4517_v38 = vpop.permute.xlu1 %1743  ;;  %v4519_v20 = vpop.permute.xlu0 %1741 }
 0xc23   :  { %6667 = vst [vmem:[#allocation174_spill] sm:$0xff] %v4517_v38  ;;  %6668 = vst [vmem:[#allocation175_spill] sm:$0xff] %v4519_v20 }
 0xc26   :  { %v4521_v7 = vpop.permute.xlu1 %1747  ;;  %v4523_v22 = vpop.permute.xlu0 %1745 }
 0xc27   :  { %6669 = vst [vmem:[#allocation176_spill] sm:$0xff] %v4521_v7  ;;  %6670 = vst [vmem:[#allocation177_spill] sm:$0xff] %v4523_v22 }
 0xc2a   :  { %v4525_v31 = vpop.permute.xlu0 %1749  ;;  %v4527_v54 = vpop.permute.xlu1 %1751 }
 0xc2b   :  { %6671 = vst [vmem:[#allocation178_spill] sm:$0xff] %v4525_v31  ;;  %6672 = vst [vmem:[#allocation179_spill] sm:$0xff] %v4527_v54 }
 0xc2e   :  { %v4529_v28 = vpop.permute.xlu0 %1753  ;;  %v4531_v30 = vpop.permute.xlu1 %1755 }
 0xc2f   :  { %6673 = vst [vmem:[#allocation180_spill] sm:$0xff] %v4529_v28  ;;  %6674 = vst [vmem:[#allocation181_spill] sm:$0xff] %v4531_v30 }
 0xc32   :  { %v1782_v55 = vpop.permute.xlu0 %1781  ;;  %v1784_v7 = vpop.permute.xlu1 %1783 }
 0xc33   :  { %v1788_v24 = vmul.f32 %v4132_v25, %v1782_v55  ;;  %v1787_v23 = vmul.f32 %v4138_v15, %v1782_v55  ;;  %v1790_v22 = vmul.f32 %v4146_v21, %v1782_v55  ;;  %v1789_v31 = vmul.f32 %v4152_v39, %v1782_v55  ;;  %v3188_v55 = vld [vmem:[%s6302_s1 + $0x1e0] sm:$0xff] }
 0xc34   :  { %v1792_v30 = vmul.f32 %v4160_v14, %v1784_v7  ;;  %v1791_v28 = vmul.f32 %v4166_v29, %v1784_v7 }
 0xc35   :  { %1805 = vrot.lane.b32.xlu1 %v1788_v24, %s3381_s16  ;;  %1803 = vrot.lane.b32.xlu0 %v1787_v23, %s3381_s16  ;;  %v1794_v24 = vmul.f32 %v4174_v19, %v1784_v7  ;;  %v1793_v23 = vmul.f32 %v4180_v26, %v1784_v7 }
 0xc39   :  { %1809 = vrot.lane.b32.xlu1 %v1790_v22, %s3381_s16  ;;  %1807 = vrot.lane.b32.xlu0 %v1789_v31, %s3381_s16  ;;  %v3189_v22 = vld [vmem:[%s6302_s1 + $0x1e8] sm:$0xff] }
 0xc3d   :  { %1813 = vrot.lane.b32.xlu1 %v1792_v30, %s3381_s16  ;;  %1811 = vrot.lane.b32.xlu0 %v1791_v28, %s3381_s16 }
 0xc41   :  { %1817 = vrot.lane.b32.xlu1 %v1794_v24, %s3381_s16  ;;  %1815 = vrot.lane.b32.xlu0 %v1793_v23, %s3381_s16  ;;  %s3387_s16 = smov 36  }
 0xc45   :  { %1846 = vrot.lane.b32.xlu0 %v3188_v55, %s3383_s26  ;;  %1848 = vrot.lane.b32.xlu1 %v3189_v22, %s3383_s26  ;;  %s3389_s26 = smov 94  }
 0xca7   :  { %v4555_v30 = vpop.permute.xlu1 %1805  ;;  %v4557_v28 = vpop.permute.xlu0 %1803 }
 0xca8   :  { %6675 = vst [vmem:[#allocation182_spill] sm:$0xff] %v4555_v30  ;;  %6676 = vst [vmem:[#allocation183_spill] sm:$0xff] %v4557_v28 }
 0xcab   :  { %v4559_v7 = vpop.permute.xlu1 %1809  ;;  %v4561_v31 = vpop.permute.xlu0 %1807 }
 0xcac   :  { %6677 = vst [vmem:[#allocation184_spill] sm:$0xff] %v4559_v7  ;;  %6678 = vst [vmem:[#allocation185_spill] sm:$0xff] %v4561_v31 }
 0xcaf   :  { %v4563_v24 = vpop.permute.xlu0 %1811  ;;  %v4565_v23 = vpop.permute.xlu1 %1813 }
 0xcb0   :  { %6679 = vst [vmem:[#allocation186_spill] sm:$0xff] %v4563_v24  ;;  %6680 = vst [vmem:[#allocation187_spill] sm:$0xff] %v4565_v23 }
 0xcb3   :  { %v4567_v54 = vpop.permute.xlu0 %1815  ;;  %v4569_v20 = vpop.permute.xlu1 %1817 }
 0xcb4   :  { %6681 = vst [vmem:[#allocation188_spill] sm:$0xff] %v4567_v54  ;;  %6682 = vst [vmem:[#allocation189_spill] sm:$0xff] %v4569_v20 }
 0xcb7   :  { %v1847_v38 = vpop.permute.xlu0 %1846  ;;  %v1849_v7 = vpop.permute.xlu1 %1848 }
 0xcb8   :  { %v1853_v55 = vmul.f32 %v4132_v25, %v1847_v38  ;;  %v1852_v22 = vmul.f32 %v4138_v15, %v1847_v38  ;;  %v1855_v31 = vmul.f32 %v4146_v21, %v1847_v38  ;;  %v1854_v24 = vmul.f32 %v4152_v39, %v1847_v38  ;;  %v3190_v38 = vld [vmem:[%s6302_s1 + $0x1f0] sm:$0xff] }
 0xcb9   :  { %v1857_v54 = vmul.f32 %v4160_v14, %v1849_v7  ;;  %v1856_v20 = vmul.f32 %v4166_v29, %v1849_v7 }
 0xcba   :  { %1870 = vrot.lane.b32.xlu1 %v1853_v55, %s3384_s27  ;;  %1868 = vrot.lane.b32.xlu0 %v1852_v22, %s3384_s27  ;;  %v1859_v55 = vmul.f32 %v4174_v19, %v1849_v7  ;;  %v1858_v22 = vmul.f32 %v4180_v26, %v1849_v7 }
 0xcbe   :  { %1874 = vrot.lane.b32.xlu1 %v1855_v31, %s3384_s27  ;;  %1872 = vrot.lane.b32.xlu0 %v1854_v24, %s3384_s27  ;;  %v3191_v31 = vld [vmem:[%s6302_s1 + $0x1f8] sm:$0xff] }
 0xcc2   :  { %1878 = vrot.lane.b32.xlu1 %v1857_v54, %s3384_s27  ;;  %1876 = vrot.lane.b32.xlu0 %v1856_v20, %s3384_s27 }
 0xcc6   :  { %1882 = vrot.lane.b32.xlu1 %v1859_v55, %s3384_s27  ;;  %1880 = vrot.lane.b32.xlu0 %v1858_v22, %s3384_s27 }
 0xcca   :  { %1908 = vrot.lane.b32.xlu0 %v3190_v38, %s3385_s7  ;;  %1910 = vrot.lane.b32.xlu1 %v3191_v31, %s3385_s7  ;;  %s3391_s7 = smov 110  }
 0xd2c   :  { %v4593_v20 = vpop.permute.xlu1 %1870  ;;  %v4595_v54 = vpop.permute.xlu0 %1868 }
 0xd2d   :  { %6683 = vst [vmem:[#allocation190_spill] sm:$0xff] %v4593_v20  ;;  %6684 = vst [vmem:[#allocation191_spill] sm:$0xff] %v4595_v54 }
 0xd30   :  { %v4597_v7 = vpop.permute.xlu1 %1874  ;;  %v4599_v24 = vpop.permute.xlu0 %1872 }
 0xd31   :  { %6685 = vst [vmem:[#allocation192_spill] sm:$0xff] %v4597_v7  ;;  %6686 = vst [vmem:[#allocation193_spill] sm:$0xff] %v4599_v24 }
 0xd34   :  { %v4601_v55 = vpop.permute.xlu0 %1876  ;;  %v4603_v22 = vpop.permute.xlu1 %1878 }
 0xd35   :  { %6687 = vst [vmem:[#allocation194_spill] sm:$0xff] %v4601_v55  ;;  %6688 = vst [vmem:[#allocation195_spill] sm:$0xff] %v4603_v22 }
 0xd38   :  { %v4605_v23 = vpop.permute.xlu0 %1880  ;;  %v4607_v28 = vpop.permute.xlu1 %1882 }
 0xd39   :  { %6689 = vst [vmem:[#allocation196_spill] sm:$0xff] %v4605_v23  ;;  %6690 = vst [vmem:[#allocation197_spill] sm:$0xff] %v4607_v28 }
 0xd3c   :  { %v1909_v30 = vpop.permute.xlu0 %1908  ;;  %v1911_v7 = vpop.permute.xlu1 %1910 }
 0xd3d   :  { %v1915_v38 = vmul.f32 %v4132_v25, %v1909_v30  ;;  %v1914_v31 = vmul.f32 %v4138_v15, %v1909_v30  ;;  %v1917_v24 = vmul.f32 %v4146_v21, %v1909_v30  ;;  %v1916_v55 = vmul.f32 %v4152_v39, %v1909_v30  ;;  %v3192_v30 = vld [vmem:[%s6302_s1 + $0x200] sm:$0xff] }
 0xd3e   :  { %v1919_v28 = vmul.f32 %v4160_v14, %v1911_v7  ;;  %v1918_v23 = vmul.f32 %v4166_v29, %v1911_v7 }
 0xd3f   :  { %1932 = vrot.lane.b32.xlu1 %v1915_v38, %s3384_s27  ;;  %1930 = vrot.lane.b32.xlu0 %v1914_v31, %s3384_s27  ;;  %v1921_v38 = vmul.f32 %v4174_v19, %v1911_v7  ;;  %v1920_v31 = vmul.f32 %v4180_v26, %v1911_v7 }
 0xd43   :  { %1936 = vrot.lane.b32.xlu1 %v1917_v24, %s3384_s27  ;;  %1934 = vrot.lane.b32.xlu0 %v1916_v55, %s3384_s27  ;;  %v3193_v24 = vld [vmem:[%s6302_s1 + $0x208] sm:$0xff] }
 0xd47   :  { %1940 = vrot.lane.b32.xlu1 %v1919_v28, %s3384_s27  ;;  %1938 = vrot.lane.b32.xlu0 %v1918_v23, %s3384_s27 }
 0xd4b   :  { %1944 = vrot.lane.b32.xlu1 %v1921_v38, %s3384_s27  ;;  %1942 = vrot.lane.b32.xlu0 %v1920_v31, %s3384_s27  ;;  %s3390_s27 = smov 34  }
 0xd4f   :  { %1973 = vrot.lane.b32.xlu0 %v3192_v30, %s3386_s6  ;;  %1975 = vrot.lane.b32.xlu1 %v3193_v24, %s3386_s6 }
 0xdb1   :  { %v4631_v28 = vpop.permute.xlu1 %1932  ;;  %v4633_v23 = vpop.permute.xlu0 %1930 }
 0xdb2   :  { %6691 = vst [vmem:[#allocation198_spill] sm:$0xff] %v4631_v28  ;;  %6692 = vst [vmem:[#allocation199_spill] sm:$0xff] %v4633_v23 }
 0xdb5   :  { %v4635_v7 = vpop.permute.xlu1 %1936  ;;  %v4637_v55 = vpop.permute.xlu0 %1934 }
 0xdb6   :  { %6693 = vst [vmem:[#allocation200_spill] sm:$0xff] %v4635_v7  ;;  %6694 = vst [vmem:[#allocation201_spill] sm:$0xff] %v4637_v55 }
 0xdb9   :  { %v4639_v38 = vpop.permute.xlu0 %1938  ;;  %v4641_v31 = vpop.permute.xlu1 %1940 }
 0xdba   :  { %6695 = vst [vmem:[#allocation202_spill] sm:$0xff] %v4639_v38  ;;  %6696 = vst [vmem:[#allocation203_spill] sm:$0xff] %v4641_v31 }
 0xdbd   :  { %v4643_v22 = vpop.permute.xlu0 %1942  ;;  %v4645_v54 = vpop.permute.xlu1 %1944 }
 0xdbe   :  { %6697 = vst [vmem:[#allocation204_spill] sm:$0xff] %v4643_v22  ;;  %6698 = vst [vmem:[#allocation205_spill] sm:$0xff] %v4645_v54 }
 0xdc1   :  { %v1974_v20 = vpop.permute.xlu0 %1973  ;;  %v1976_v7 = vpop.permute.xlu1 %1975 }
 0xdc2   :  { %v1980_v30 = vmul.f32 %v4132_v25, %v1974_v20  ;;  %v1979_v24 = vmul.f32 %v4138_v15, %v1974_v20  ;;  %v1982_v55 = vmul.f32 %v4146_v21, %v1974_v20  ;;  %v1981_v38 = vmul.f32 %v4152_v39, %v1974_v20  ;;  %v3194_v20 = vld [vmem:[%s6302_s1 + $0x210] sm:$0xff] }
 0xdc3   :  { %v1984_v22 = vmul.f32 %v4160_v14, %v1976_v7  ;;  %v1983_v54 = vmul.f32 %v4166_v29, %v1976_v7 }
 0xdc4   :  { %1997 = vrot.lane.b32.xlu1 %v1980_v30, %s3387_s16  ;;  %1995 = vrot.lane.b32.xlu0 %v1979_v24, %s3387_s16  ;;  %v1986_v30 = vmul.f32 %v4174_v19, %v1976_v7  ;;  %v1985_v24 = vmul.f32 %v4180_v26, %v1976_v7 }
 0xdc8   :  { %2001 = vrot.lane.b32.xlu1 %v1982_v55, %s3387_s16  ;;  %1999 = vrot.lane.b32.xlu0 %v1981_v38, %s3387_s16  ;;  %v3195_v55 = vld [vmem:[%s6302_s1 + $0x218] sm:$0xff] }
 0xdcc   :  { %2005 = vrot.lane.b32.xlu1 %v1984_v22, %s3387_s16  ;;  %2003 = vrot.lane.b32.xlu0 %v1983_v54, %s3387_s16 }
 0xdd0   :  { %2009 = vrot.lane.b32.xlu1 %v1986_v30, %s3387_s16  ;;  %2007 = vrot.lane.b32.xlu0 %v1985_v24, %s3387_s16 }
 0xdd4   :  { %2035 = vrot.lane.b32.xlu0 %v3194_v20, %s3388_s21  ;;  %2037 = vrot.lane.b32.xlu1 %v3195_v55, %s3388_s21  ;;  %s3394_s21 = smov 17  }
 0xe36   :  { %v4669_v54 = vpop.permute.xlu1 %1997  ;;  %v4671_v22 = vpop.permute.xlu0 %1995 }
 0xe37   :  { %6699 = vst [vmem:[#allocation206_spill] sm:$0xff] %v4669_v54  ;;  %6700 = vst [vmem:[#allocation207_spill] sm:$0xff] %v4671_v22 }
 0xe3a   :  { %v4673_v7 = vpop.permute.xlu1 %2001  ;;  %v4675_v38 = vpop.permute.xlu0 %1999 }
 0xe3b   :  { %6701 = vst [vmem:[#allocation208_spill] sm:$0xff] %v4673_v7  ;;  %6702 = vst [vmem:[#allocation209_spill] sm:$0xff] %v4675_v38 }
 0xe3e   :  { %v4677_v30 = vpop.permute.xlu0 %2003  ;;  %v4679_v24 = vpop.permute.xlu1 %2005 }
 0xe3f   :  { %6703 = vst [vmem:[#allocation210_spill] sm:$0xff] %v4677_v30  ;;  %6704 = vst [vmem:[#allocation211_spill] sm:$0xff] %v4679_v24 }
 0xe42   :  { %v4681_v31 = vpop.permute.xlu0 %2007  ;;  %v4683_v23 = vpop.permute.xlu1 %2009 }
 0xe43   :  { %6705 = vst [vmem:[#allocation212_spill] sm:$0xff] %v4681_v31  ;;  %6706 = vst [vmem:[#allocation213_spill] sm:$0xff] %v4683_v23 }
 0xe46   :  { %v2036_v28 = vpop.permute.xlu0 %2035  ;;  %v2038_v7 = vpop.permute.xlu1 %2037 }
 0xe47   :  { %v2042_v20 = vmul.f32 %v4132_v25, %v2036_v28  ;;  %v2041_v55 = vmul.f32 %v4138_v15, %v2036_v28  ;;  %v2044_v38 = vmul.f32 %v4146_v21, %v2036_v28  ;;  %v2043_v30 = vmul.f32 %v4152_v39, %v2036_v28  ;;  %v3196_v28 = vld [vmem:[%s6302_s1 + $0x220] sm:$0xff] }
 0xe48   :  { %v2046_v23 = vmul.f32 %v4160_v14, %v2038_v7  ;;  %v2045_v31 = vmul.f32 %v4166_v29, %v2038_v7 }
 0xe49   :  { %2059 = vrot.lane.b32.xlu1 %v2042_v20, %s3387_s16  ;;  %2057 = vrot.lane.b32.xlu0 %v2041_v55, %s3387_s16  ;;  %v2048_v20 = vmul.f32 %v4174_v19, %v2038_v7  ;;  %v2047_v55 = vmul.f32 %v4180_v26, %v2038_v7 }
 0xe4d   :  { %2063 = vrot.lane.b32.xlu1 %v2044_v38, %s3387_s16  ;;  %2061 = vrot.lane.b32.xlu0 %v2043_v30, %s3387_s16  ;;  %v3197_v38 = vld [vmem:[%s6302_s1 + $0x228] sm:$0xff] }
 0xe51   :  { %2067 = vrot.lane.b32.xlu1 %v2046_v23, %s3387_s16  ;;  %2065 = vrot.lane.b32.xlu0 %v2045_v31, %s3387_s16 }
 0xe55   :  { %2071 = vrot.lane.b32.xlu1 %v2048_v20, %s3387_s16  ;;  %2069 = vrot.lane.b32.xlu0 %v2047_v55, %s3387_s16  ;;  %s3393_s16 = smov 111  }
 0xe59   :  { %2100 = vrot.lane.b32.xlu0 %v3196_v28, %s3389_s26  ;;  %2102 = vrot.lane.b32.xlu1 %v3197_v38, %s3389_s26 }
 0xebb   :  { %v4707_v23 = vpop.permute.xlu1 %2059  ;;  %v4709_v31 = vpop.permute.xlu0 %2057 }
 0xebc   :  { %6707 = vst [vmem:[#allocation214_spill] sm:$0xff] %v4707_v23  ;;  %6708 = vst [vmem:[#allocation215_spill] sm:$0xff] %v4709_v31 }
 0xebf   :  { %v4711_v7 = vpop.permute.xlu1 %2063  ;;  %v4713_v30 = vpop.permute.xlu0 %2061 }
 0xec0   :  { %6709 = vst [vmem:[#allocation216_spill] sm:$0xff] %v4711_v7  ;;  %6710 = vst [vmem:[#allocation217_spill] sm:$0xff] %v4713_v30 }
 0xec3   :  { %v4715_v20 = vpop.permute.xlu0 %2065  ;;  %v4717_v55 = vpop.permute.xlu1 %2067 }
 0xec4   :  { %6711 = vst [vmem:[#allocation218_spill] sm:$0xff] %v4715_v20  ;;  %6712 = vst [vmem:[#allocation219_spill] sm:$0xff] %v4717_v55 }
 0xec7   :  { %v4719_v24 = vpop.permute.xlu0 %2069  ;;  %v4721_v22 = vpop.permute.xlu1 %2071 }
 0xec8   :  { %6713 = vst [vmem:[#allocation220_spill] sm:$0xff] %v4719_v24  ;;  %6714 = vst [vmem:[#allocation221_spill] sm:$0xff] %v4721_v22 }
 0xecb   :  { %v2101_v54 = vpop.permute.xlu0 %2100  ;;  %v2103_v31 = vpop.permute.xlu1 %2102 }
 0xecc   :  { %v2107_v28 = vmul.f32 %v4132_v25, %v2101_v54  ;;  %v2106_v38 = vmul.f32 %v4138_v15, %v2101_v54  ;;  %v2109_v7 = vmul.f32 %v4146_v21, %v2101_v54  ;;  %v2108_v30 = vmul.f32 %v4152_v39, %v2101_v54  ;;  %v3199_v54 = vld [vmem:[%s6302_s1 + $0x238] sm:$0xff] }
 0xecd   :  { %v2111_v20 = vmul.f32 %v4160_v14, %v2103_v31  ;;  %v2110_v24 = vmul.f32 %v4166_v29, %v2103_v31  ;;  %v2113_v22 = vmul.f32 %v4174_v19, %v2103_v31  ;;  %v2112_v55 = vmul.f32 %v4180_v26, %v2103_v31 }
 0xece   :  { %2124 = vrot.lane.b32.xlu1 %v2107_v28, %s3390_s27  ;;  %2122 = vrot.lane.b32.xlu0 %v2106_v38, %s3390_s27  ;;  %v3198_v28 = vld [vmem:[%s6302_s1 + $0x230] sm:$0xff] }
 0xed2   :  { %2128 = vrot.lane.b32.xlu1 %v2109_v7, %s3390_s27  ;;  %2126 = vrot.lane.b32.xlu0 %v2108_v30, %s3390_s27 }
 0xed6   :  { %2132 = vrot.lane.b32.xlu1 %v2111_v20, %s3390_s27  ;;  %2130 = vrot.lane.b32.xlu0 %v2110_v24, %s3390_s27 }
 0xeda   :  { %2136 = vrot.lane.b32.xlu1 %v2113_v22, %s3390_s27  ;;  %2134 = vrot.lane.b32.xlu0 %v2112_v55, %s3390_s27  ;;  %s3406_s27 = smov 120  }
 0xede   :  { %2162 = vrot.lane.b32.xlu0 %v3198_v28, %s3391_s7  ;;  %2164 = vrot.lane.b32.xlu1 %v3199_v54, %s3391_s7 }
 0xf40   :  { %v4737_v7 = vpop.permute.xlu1 %2124  ;;  %v4739_v24 = vpop.permute.xlu0 %2122 }
 0xf41   :  { %6715 = vst [vmem:[#allocation222_spill] sm:$0xff] %v4737_v7  ;;  %6716 = vst [vmem:[#allocation223_spill] sm:$0xff] %v4739_v24 }
 0xf44   :  { %v4741_v30 = vpop.permute.xlu1 %2128  ;;  %v4743_v31 = vpop.permute.xlu0 %2126 }
 0xf45   :  { %6717 = vst [vmem:[#allocation224_spill] sm:$0xff] %v4741_v30  ;;  %6718 = vst [vmem:[#allocation225_spill] sm:$0xff] %v4743_v31 }
 0xf48   :  { %v4745_v22 = vpop.permute.xlu0 %2130  ;;  %v4747_v20 = vpop.permute.xlu1 %2132 }
 0xf49   :  { %6719 = vst [vmem:[#allocation226_spill] sm:$0xff] %v4745_v22  ;;  %6720 = vst [vmem:[#allocation227_spill] sm:$0xff] %v4747_v20 }
 0xf4c   :  { %v4749_v55 = vpop.permute.xlu0 %2134  ;;  %v4751_v38 = vpop.permute.xlu1 %2136 }
 0xf4d   :  { %6721 = vst [vmem:[#allocation228_spill] sm:$0xff] %v4749_v55  ;;  %6722 = vst [vmem:[#allocation229_spill] sm:$0xff] %v4751_v38  ;;  %v4806_v38 = vld [vmem:[%s6303_s0 + $0x10] sm:$0xff] }
 0xf50   :  { %v2163_v23 = vpop.permute.xlu0 %2162  ;;  %v2165_v24 = vpop.permute.xlu1 %2164 }
 0xf51   :  { %v2169_v28 = vmul.f32 %v4132_v25, %v2163_v23  ;;  %v2168_v54 = vmul.f32 %v4138_v15, %v2163_v23  ;;  %v2171_v30 = vmul.f32 %v4146_v21, %v2163_v23  ;;  %v2170_v31 = vmul.f32 %v4152_v39, %v2163_v23  ;;  %v3200_v21 = vld [vmem:[%s6302_s1 + $0x240] sm:$0xff]  ;;  %v3201_v39 = vld [vmem:[%s6302_s1 + $0x248] sm:$0xff] }
 0xf52   :  { %v2173_v22 = vmul.f32 %v4160_v14, %v2165_v24  ;;  %v2172_v55 = vmul.f32 %v4166_v29, %v2165_v24  ;;  %v2175_v25 = vmul.f32 %v4174_v19, %v2165_v24  ;;  %v2174_v15 = vmul.f32 %v4180_v26, %v2165_v24 }
 0xf53   :  { %2186 = vrot.lane.b32.xlu1 %v2169_v28, %s3392_s8  ;;  %2184 = vrot.lane.b32.xlu0 %v2168_v54, %s3392_s8  ;;  %v4792_v54 = vld [vmem:[%s6303_s0] sm:$0xff] }
 0xf57   :  { %2190 = vrot.lane.b32.xlu1 %v2171_v30, %s3392_s8  ;;  %2188 = vrot.lane.b32.xlu0 %v2170_v31, %s3392_s8 }
 0xf5b   :  { %2194 = vrot.lane.b32.xlu1 %v2173_v22, %s3392_s8  ;;  %2192 = vrot.lane.b32.xlu0 %v2172_v55, %s3392_s8  ;;  %v4786_v55 = vld [vmem:[%s6303_s0 + $0x8] sm:$0xff] }
 0xf5f   :  { %2198 = vrot.lane.b32.xlu1 %v2175_v25, %s3392_s8  ;;  %2196 = vrot.lane.b32.xlu0 %v2174_v15, %s3392_s8 }
 0xf63   :  { %2228 = vrot.lane.b32.xlu0 %v3200_v21, %s3393_s16  ;;  %2230 = vrot.lane.b32.xlu1 %v3201_v39, %s3393_s16  ;;  %v4800_v21 = vld [vmem:[%s6303_s0 + $0x18] sm:$0xff]  ;;  %s3395_s16 = smov 112  }
 0xfc5   :  { %v4767_v29 = vpop.permute.xlu1 %2186  ;;  %v4769_v14 = vpop.permute.xlu0 %2184 }
 0xfc6   :  { %6723 = vst [vmem:[#allocation230_spill] sm:$0xff] %v4767_v29  ;;  %6724 = vst [vmem:[#allocation231_spill] sm:$0xff] %v4769_v14 }
 0xfc9   :  { %v4771_v19 = vpop.permute.xlu1 %2190  ;;  %v4773_v26 = vpop.permute.xlu0 %2188 }
 0xfca   :  { %6725 = vst [vmem:[#allocation232_spill] sm:$0xff] %v4771_v19  ;;  %6726 = vst [vmem:[#allocation233_spill] sm:$0xff] %v4773_v26 }
 0xfcd   :  { %v4775_v23 = vpop.permute.xlu0 %2192  ;;  %v4777_v24 = vpop.permute.xlu1 %2194 }
 0xfce   :  { %6727 = vst [vmem:[#allocation234_spill] sm:$0xff] %v4775_v23  ;;  %6728 = vst [vmem:[#allocation235_spill] sm:$0xff] %v4777_v24 }
 0xfd1   :  { %v4779_v30 = vpop.permute.xlu0 %2196  ;;  %v4781_v31 = vpop.permute.xlu1 %2198 }
 0xfd2   :  { %6729 = vst [vmem:[#allocation236_spill] sm:$0xff] %v4779_v30  ;;  %6730 = vst [vmem:[#allocation237_spill] sm:$0xff] %v4781_v31  ;;  %v4820_v31 = vld [vmem:[%s6303_s0 + $0x28] sm:$0xff] }
 0xfd5   :  { %v2229_v22 = vpop.permute.xlu0 %2228  ;;  %v2231_v15 = vpop.permute.xlu1 %2230 }
 0xfd6   :  { %v2235_v28 = vmul.f32 %v4786_v55, %v2229_v22  ;;  %v2234_v25 = vmul.f32 %v4792_v54, %v2229_v22  ;;  %v2237_v39 = vmul.f32 %v4800_v21, %v2229_v22  ;;  %v2236_v30 = vmul.f32 %v4806_v38, %v2229_v22 }
 0xfd7   :  { %v2238_v23 = vmul.f32 %v4820_v31, %v2231_v15 }
 0xfd8   :  { %2252 = vrot.lane.b32.xlu1 %v2235_v28, %s3394_s21  ;;  %2250 = vrot.lane.b32.xlu0 %v2234_v25, %s3394_s21  ;;  %v4814_v28 = vld [vmem:[%s6303_s0 + $0x30] sm:$0xff] }
 0xfd9   :  { %v2239_v25 = vmul.f32 %v4814_v28, %v2231_v15 }
 0xfdc   :  { %2256 = vrot.lane.b32.xlu1 %v2237_v39, %s3394_s21  ;;  %2254 = vrot.lane.b32.xlu0 %v2236_v30, %s3394_s21  ;;  %v4828_v30 = vld [vmem:[%s6303_s0 + $0x40] sm:$0xff]  ;;  %v4834_v39 = vld [vmem:[%s6303_s0 + $0x38] sm:$0xff] }
 0xfdd   :  { %6731 = vst [vmem:[#allocation238_spill] sm:$0xff] %v4828_v30  ;;  %v2241_v22 = vmul.f32 %v4828_v30, %v2231_v15  ;;  %v2240_v24 = vmul.f32 %v4834_v39, %v2231_v15 }
 0xfe0   :  { %2260 = vrot.lane.b32.xlu1 %v2239_v25, %s3394_s21  ;;  %2258 = vrot.lane.b32.xlu0 %v2238_v23, %s3394_s21  ;;  %v3202_v23 = vld [vmem:[%s6302_s1 + $0x250] sm:$0xff]  ;;  %v3203_v25 = vld [vmem:[%s6302_s1 + $0x258] sm:$0xff] }
 0xfe4   :  { %2264 = vrot.lane.b32.xlu1 %v2241_v22, %s3394_s21  ;;  %2262 = vrot.lane.b32.xlu0 %v2240_v24, %s3394_s21 }
 0xfe8   :  { %2290 = vrot.lane.b32.xlu0 %v3202_v23, %s3395_s16  ;;  %2292 = vrot.lane.b32.xlu1 %v3203_v25, %s3395_s16 }
0x104a   :  { %v4845_v26 = vpop.permute.xlu1 %2252  ;;  %v4847_v19 = vpop.permute.xlu0 %2250 }
0x104b   :  { %6732 = vst [vmem:[#allocation239_spill] sm:$0xff] %v4845_v26  ;;  %6733 = vst [vmem:[#allocation240_spill] sm:$0xff] %v4847_v19 }
0x104e   :  { %v4849_v15 = vpop.permute.xlu1 %2256  ;;  %v4851_v22 = vpop.permute.xlu0 %2254 }
0x104f   :  { %6734 = vst [vmem:[#allocation241_spill] sm:$0xff] %v4849_v15  ;;  %6735 = vst [vmem:[#allocation242_spill] sm:$0xff] %v4851_v22 }
0x1052   :  { %v4853_v24 = vpop.permute.xlu0 %2258  ;;  %v4855_v14 = vpop.permute.xlu1 %2260 }
0x1053   :  { %6736 = vst [vmem:[#allocation243_spill] sm:$0xff] %v4853_v24  ;;  %6737 = vst [vmem:[#allocation244_spill] sm:$0xff] %v4855_v14 }
0x1056   :  { %v4857_v29 = vpop.permute.xlu0 %2262  ;;  %v4859_v20 = vpop.permute.xlu1 %2264 }
0x1057   :  { %6738 = vst [vmem:[#allocation245_spill] sm:$0xff] %v4857_v29  ;;  %6739 = vst [vmem:[#allocation246_spill] sm:$0xff] %v4859_v20 }
0x105a   :  { %v2291_v7 = vpop.permute.xlu0 %2290  ;;  %v2293_v15 = vpop.permute.xlu1 %2292 }
0x105b   :  { %v2297_v23 = vmul.f32 %v4786_v55, %v2291_v7  ;;  %v2296_v25 = vmul.f32 %v4792_v54, %v2291_v7  ;;  %v2299_v22 = vmul.f32 %v4800_v21, %v2291_v7  ;;  %v2298_v24 = vmul.f32 %v4806_v38, %v2291_v7  ;;  %v3204_v7 = vld [vmem:[%s6302_s1 + $0x260] sm:$0xff] }
0x105c   :  { %v2301_v20 = vmul.f32 %v4814_v28, %v2293_v15  ;;  %v2300_v29 = vmul.f32 %v4820_v31, %v2293_v15 }
0x105d   :  { %2314 = vrot.lane.b32.xlu1 %v2297_v23, %s3394_s21  ;;  %2312 = vrot.lane.b32.xlu0 %v2296_v25, %s3394_s21  ;;  %v2303_v23 = vmul.f32 %v4828_v30, %v2293_v15  ;;  %v2302_v25 = vmul.f32 %v4834_v39, %v2293_v15 }
0x1061   :  { %2318 = vrot.lane.b32.xlu1 %v2299_v22, %s3394_s21  ;;  %2316 = vrot.lane.b32.xlu0 %v2298_v24, %s3394_s21  ;;  %v3205_v22 = vld [vmem:[%s6302_s1 + $0x268] sm:$0xff] }
0x1065   :  { %2322 = vrot.lane.b32.xlu1 %v2301_v20, %s3394_s21  ;;  %2320 = vrot.lane.b32.xlu0 %v2300_v29, %s3394_s21 }
0x1069   :  { %2326 = vrot.lane.b32.xlu1 %v2303_v23, %s3394_s21  ;;  %2324 = vrot.lane.b32.xlu0 %v2302_v25, %s3394_s21  ;;  %s3397_s21 = smov 15  }
0x106d   :  { %2355 = vrot.lane.b32.xlu0 %v3204_v7, %s3396_s22  ;;  %2357 = vrot.lane.b32.xlu1 %v3205_v22, %s3396_s22  ;;  %v3206_v7 = vld [vmem:[%s6302_s1 + $0x270] sm:$0xff] }
0x10cf   :  { %v4883_v20 = vpop.permute.xlu0 %2312  ;;  %v4893_v19 = vpop.permute.xlu1 %2314 }
0x10d0   :  { %6740 = vst [vmem:[#allocation247_spill] sm:$0xff] %v4883_v20  ;;  %6744 = vst [vmem:[#allocation251_spill] sm:$0xff] %v4893_v19 }
0x10d3   :  { %v4885_v29 = vpop.permute.xlu0 %2316 }
0x10d4   :  { %6741 = vst [vmem:[#allocation248_spill] sm:$0xff] %v4885_v29  ;;  %v3218_v29 = vld [vmem:[%s6302_s1 + $0x2d0] sm:$0xff] }
0x10d7   :  { %v4887_v15 = vpop.permute.xlu0 %2320 }
0x10d8   :  { %6742 = vst [vmem:[#allocation249_spill] sm:$0xff] %v4887_v15  ;;  %v3210_v15 = vld [vmem:[%s6302_s1 + $0x290] sm:$0xff] }
0x10db   :  { %v4889_v24 = vpop.permute.xlu0 %2324 }
0x10dc   :  { %6743 = vst [vmem:[#allocation250_spill] sm:$0xff] %v4889_v24  ;;  %v4902_v24 = vpop.permute.xlu1 %2318 }
0x10dd   :  { %6745 = vst [vmem:[#allocation252_spill] sm:$0xff] %v4902_v24 }
0x10df   :  { %v2356_v23 = vpop.permute.xlu0 %2355 }
0x10e0   :  { %v2362_v25 = vmul.f32 %v4786_v55, %v2356_v23  ;;  %v2361_v14 = vmul.f32 %v4792_v54, %v2356_v23  ;;  %v2363_v22 = vmul.f32 %v4806_v38, %v2356_v23 }
0x10e2   :  { %2379 = vrot.lane.b32.xlu1 %v2362_v25, %s3397_s21  ;;  %2377 = vrot.lane.b32.xlu0 %v2361_v14, %s3397_s21  ;;  %v3207_v14 = vld [vmem:[%s6302_s1 + $0x278] sm:$0xff]  ;;  %v3214_v25 = vld [vmem:[%s6302_s1 + $0x2b0] sm:$0xff] }
0x10e6   :  { %2417 = vrot.lane.b32.xlu1 %v3206_v7, %s3398_s25  ;;  %2381 = vrot.lane.b32.xlu0 %v2363_v22, %s3397_s21  ;;  %v3211_v7 = vld [vmem:[%s6302_s1 + $0x298] sm:$0xff]  ;;  %v4916_v22 = vpop.permute.xlu1 %2322 }
0x10e7   :  { %6746 = vst [vmem:[#allocation253_spill] sm:$0xff] %v4916_v22  ;;  %v3222_v22 = vld [vmem:[%s6302_s1 + $0x2f0] sm:$0xff] }
0x10ea   :  { %2544 = vrot.lane.b32.xlu1 %v3210_v15, %s3399_s30  ;;  %2419 = vrot.lane.b32.xlu0 %v3207_v14, %s3398_s25  ;;  %v3215_v15 = vld [vmem:[%s6302_s1 + $0x2b8] sm:$0xff]  ;;  %v4926_v14 = vpop.permute.xlu1 %2326 }
0x10eb   :  { %6747 = vst [vmem:[#allocation254_spill] sm:$0xff] %v4926_v14 }
0x10ee   :  { %2678 = vrot.lane.b32.xlu1 %v3214_v25, %s3342_s9  ;;  %2546 = vrot.lane.b32.xlu0 %v3211_v7, %s3399_s30  ;;  %v3219_v25 = vld [vmem:[%s6302_s1 + $0x2d8] sm:$0xff] }
0x10ef   :  { %v3223_v7 = vld [vmem:[%s6302_s1 + $0x2f8] sm:$0xff] }
0x10f2   :  { %2804 = vrot.lane.b32.xlu1 %v3218_v29, %s3400_s17  ;;  %2680 = vrot.lane.b32.xlu0 %v3215_v15, %s3342_s9  ;;  %v2358_v29 = vpop.permute.xlu1 %2357  ;;  %v2364_v15 = vmul.f32 %v4800_v21, %v2356_v23 }
0x10f3   :  { %v2366_v14 = vmul.f32 %v4814_v28, %v2358_v29  ;;  %v2365_v24 = vmul.f32 %v4820_v31, %v2358_v29 }
0x10f6   :  { %2931 = vrot.lane.b32.xlu1 %v3222_v22, %s3401_s23  ;;  %2806 = vrot.lane.b32.xlu0 %v3219_v25, %s3400_s17  ;;  %v2368_v22 = vmul.f32 %v4828_v30, %v2358_v29  ;;  %v2367_v25 = vmul.f32 %v4834_v39, %v2358_v29 }
0x10fa   :  { %2383 = vrot.lane.b32.xlu1 %v2364_v15, %s3397_s21  ;;  %2933 = vrot.lane.b32.xlu0 %v3223_v7, %s3401_s23 }
0x10fe   :  { %2387 = vrot.lane.b32.xlu1 %v2366_v14, %s3397_s21  ;;  %2385 = vrot.lane.b32.xlu0 %v2365_v24, %s3397_s21 }
0x1102   :  { %2391 = vrot.lane.b32.xlu1 %v2368_v22, %s3397_s21  ;;  %2389 = vrot.lane.b32.xlu0 %v2367_v25, %s3397_s21 }
0x1154   :  { %v4947_v23 = vpop.permute.xlu1 %2379  ;;  %v4949_v15 = vpop.permute.xlu0 %2377 }
0x1155   :  { %6748 = vst [vmem:[#allocation255_spill] sm:$0xff] %v4947_v23  ;;  %6749 = vst [vmem:[#allocation256_spill] sm:$0xff] %v4949_v15 }
0x1158   :  { %v2418_v7 = vpop.permute.xlu1 %2417  ;;  %v4951_v20 = vpop.permute.xlu0 %2381 }
0x1159   :  { %6750 = vst [vmem:[#allocation257_spill] sm:$0xff] %v4951_v20  ;;  %v2424_v19 = vmul.f32 %v4786_v55, %v2418_v7  ;;  %v2423_v14 = vmul.f32 %v4792_v54, %v2418_v7  ;;  %v2426_v24 = vmul.f32 %v4800_v21, %v2418_v7  ;;  %v2425_v29 = vmul.f32 %v4806_v38, %v2418_v7  ;;  %v3208_v7 = vld [vmem:[%s6302_s1 + $0x280] sm:$0xff] }
0x115b   :  { %2441 = vrot.lane.b32.xlu1 %v2424_v19, %s3397_s21  ;;  %2439 = vrot.lane.b32.xlu0 %v2423_v14, %s3397_s21 }
0x115c   :  { %v2420_v22 = vpop.permute.xlu0 %2419 }
0x115d   :  { %v2428_v25 = vmul.f32 %v4814_v28, %v2420_v22  ;;  %v2427_v20 = vmul.f32 %v4820_v31, %v2420_v22  ;;  %v2430_v19 = vmul.f32 %v4828_v30, %v2420_v22  ;;  %v2429_v14 = vmul.f32 %v4834_v39, %v2420_v22 }
0x115f   :  { %2445 = vrot.lane.b32.xlu1 %v2426_v24, %s3397_s21  ;;  %2443 = vrot.lane.b32.xlu0 %v2425_v29, %s3397_s21  ;;  %v3209_v24 = vld [vmem:[%s6302_s1 + $0x288] sm:$0xff] }
0x1163   :  { %2449 = vrot.lane.b32.xlu1 %v2428_v25, %s3397_s21  ;;  %2447 = vrot.lane.b32.xlu0 %v2427_v20, %s3397_s21  ;;  %v2545_v20 = vpop.permute.xlu1 %2544  ;;  %v2547_v25 = vpop.permute.xlu0 %2546 }
0x1167   :  { %2453 = vrot.lane.b32.xlu1 %v2430_v19, %s3397_s21  ;;  %2451 = vrot.lane.b32.xlu0 %v2429_v14, %s3397_s21  ;;  %v4975_v29 = vpop.permute.xlu1 %2678  ;;  %v4979_v19 = vpop.permute.xlu0 %2680  ;;  %s3403_s21 = smov 13  }
0x116b   :  { %2482 = vrot.lane.b32.xlu0 %v3208_v7, %s3402_s29  ;;  %2484 = vrot.lane.b32.xlu1 %v3209_v24, %s3402_s29  ;;  %v4977_v22 = vpop.permute.xlu1 %2804  ;;  %v4983_v15 = vpop.permute.xlu0 %2806 }
0x116c   :  { %6752 = vst [vmem:[#allocation259_spill] sm:$0xff] %v4983_v15 }
0x116f   :  { %v4981_v14 = vpop.permute.xlu1 %2931  ;;  %v4987_v26 = vpop.permute.xlu0 %2933 }
0x1170   :  { %6751 = vst [vmem:[#allocation258_spill] sm:$0xff] %v4981_v14  ;;  %6754 = vst [vmem:[#allocation261_spill] sm:$0xff] %v4987_v26 }
0x1173   :  { %v4985_v23 = vpop.permute.xlu1 %2383  ;;  %v4991_v7 = vpop.permute.xlu0 %2385 }
0x1174   :  { %6753 = vst [vmem:[#allocation260_spill] sm:$0xff] %v4985_v23  ;;  %6756 = vst [vmem:[#allocation263_spill] sm:$0xff] %v4991_v7 }
0x1177   :  { %v4989_v6 = vpop.permute.xlu1 %2387  ;;  %v4995_v16 = vpop.permute.xlu0 %2389 }
0x1178   :  { %6755 = vst [vmem:[#allocation262_spill] sm:$0xff] %v4989_v6  ;;  %6758 = vst [vmem:[#allocation265_spill] sm:$0xff] %v4995_v16 }
0x117b   :  { %v4993_v24 = vpop.permute.xlu1 %2391 }
0x117c   :  { %6757 = vst [vmem:[#allocation264_spill] sm:$0xff] %v4993_v24 }
0x11cd   :  { %v2442_v18 = vpop.permute.xlu1 %2441  ;;  %v2440_v12 = vpop.permute.xlu0 %2439 }
0x11ce   :  { %v4998_v13 = vsel %vm2393_vm0, %v2440_v12, %v2442_v18 }
0x11cf   :  { %6759 = vst [vmem:[#allocation266_spill] sm:$0xff] %v4998_v13 }
0x11d1   :  { %v5000_v14 = vpop.permute.xlu1 %2445  ;;  %v2444_v15 = vpop.permute.xlu0 %2443 }
0x11d2   :  { %6760 = vst [vmem:[#allocation267_spill] sm:$0xff] %v5000_v14  ;;  %v5003_v23 = vsel %vm2393_vm0, %v2442_v18, %v2444_v15  ;;  %v5007_v6 = vsel %vm2393_vm0, %v2444_v15, %v5000_v14 }
0x11d3   :  { %6761 = vst [vmem:[#allocation268_spill] sm:$0xff] %v5003_v23  ;;  %6762 = vst [vmem:[#allocation269_spill] sm:$0xff] %v5007_v6  ;;  %v5126_v6 = vld [vmem:[%s6303_s0 + $0x30] sm:$0xff] }
0x11d4   :  { %v2688_v10 = vmul.f32 %v4979_v19, %v5126_v6 }
0x11d5   :  { %v2450_v7 = vpop.permute.xlu1 %2449  ;;  %v2448_v24 = vpop.permute.xlu0 %2447 }
0x11d6   :  { %v5010_v16 = vsel %vm2393_vm0, %v2448_v24, %v2450_v7 }
0x11d7   :  { %6763 = vst [vmem:[#allocation270_spill] sm:$0xff] %v5010_v16  ;;  %v5121_v16 = vld [vmem:[%s6303_s0 + $0x38] sm:$0xff] }
0x11d9   :  { %v5012_v26 = vpop.permute.xlu1 %2453  ;;  %v2452_v11 = vpop.permute.xlu0 %2451 }
0x11da   :  { %6764 = vst [vmem:[#allocation271_spill] sm:$0xff] %v5012_v26  ;;  %v5015_v12 = vsel %vm2393_vm0, %v2450_v7, %v2452_v11  ;;  %v5019_v13 = vsel %vm2393_vm0, %v2452_v11, %v5012_v26 }
0x11db   :  { %6765 = vst [vmem:[#allocation272_spill] sm:$0xff] %v5015_v12  ;;  %6766 = vst [vmem:[#allocation273_spill] sm:$0xff] %v5019_v13  ;;  %v15_v12 = vld [vmem:[%s6304_s2 + $0x8] sm:$0xff] }
0x11dd   :  { %v2483_v18 = vpop.permute.xlu0 %2482  ;;  %v5025_v24 = vpop.permute.xlu1 %2484 }
0x11de   :  { %v2488_v23 = vmul.f32 %v4792_v54, %v2483_v18  ;;  %v2489_v15 = vmul.f32 %v4786_v55, %v2483_v18  ;;  %6767 = vst [vmem:[#allocation274_spill] sm:$0xff] %v5025_v24  ;;  %v2490_v14 = vmul.f32 %v4806_v38, %v2483_v18  ;;  %v2491_v7 = vmul.f32 %v4800_v21, %v2483_v18  ;;  %v3212_v18 = vld [vmem:[%s6302_s1 + $0x2a0] sm:$0xff] }
0x11df   :  { %v2492_v11 = vmul.f32 %v4820_v31, %v5025_v24  ;;  %v2493_v26 = vmul.f32 %v4814_v28, %v5025_v24  ;;  %v105_v24 = vsel %vm104_vm1, %v3617_v33, %v3615_v32  ;;  %v55_v33 = vmul.f32 %v4806_v38, %v3487_v17 }
0x11e0   :  { %2506 = vrot.lane.b32.xlu1 %v2489_v15, %s3403_s21  ;;  %2504 = vrot.lane.b32.xlu0 %v2488_v23, %s3403_s21  ;;  %v3213_v23 = vld [vmem:[%s6302_s1 + $0x2a8] sm:$0xff]  ;;  %v2550_v15 = vmul.f32 %v4792_v54, %v2545_v20 }
0x11e4   :  { %2510 = vrot.lane.b32.xlu1 %v2491_v7, %s3403_s21  ;;  %2508 = vrot.lane.b32.xlu0 %v2490_v14, %s3403_s21  ;;  %v2551_v14 = vmul.f32 %v4786_v55, %v2545_v20  ;;  %v2552_v7 = vmul.f32 %v4806_v38, %v2545_v20 }
0x11e8   :  { %2514 = vrot.lane.b32.xlu1 %v2493_v26, %s3403_s21  ;;  %2512 = vrot.lane.b32.xlu0 %v2492_v11, %s3403_s21  ;;  %v2553_v26 = vmul.f32 %v4800_v21, %v2545_v20  ;;  %v2555_v11 = vmul.f32 %v4814_v28, %v2547_v25  ;;  %v3217_v21 = vld [vmem:[%s6302_s1 + $0x2c8] sm:$0xff]  ;;  %v3216_v28 = vld [vmem:[%s6302_s1 + $0x2c0] sm:$0xff] }
0x11e9   :  { %v5070_v20 = vld [vmem:[%s6303_s0 + $0x10] sm:$0xff] }
0x11ec   :  { %2619 = vrot.lane.b32.xlu1 %v3213_v23, %s3341_s4  ;;  %2617 = vrot.lane.b32.xlu0 %v3212_v18, %s3341_s4  ;;  %v2554_v23 = vmul.f32 %v4820_v31, %v2547_v25  ;;  %v2557_v18 = vmul.f32 %v4828_v30, %v2547_v25 }
0x11f0   :  { %2568 = vrot.lane.b32.xlu1 %v2551_v14, %s3403_s21  ;;  %2566 = vrot.lane.b32.xlu0 %v2550_v15, %s3403_s21  ;;  %v2556_v14 = vmul.f32 %v4834_v39, %v2547_v25  ;;  %v5075_v25 = vld [vmem:[%s6303_s0 + $0x8] sm:$0xff]  ;;  %v20_v15 = vld [vmem:[%s6302_s1] sm:$0xff] }
0x11f1   :  { %6768 = vst [vmem:[#allocation275_spill] sm:$0xff] %v5075_v25 }
0x11f4   :  { %2572 = vrot.lane.b32.xlu1 %v2553_v26, %s3403_s21  ;;  %2570 = vrot.lane.b32.xlu0 %v2552_v7, %s3403_s21  ;;  %v2685_v26 = vmul.f32 %v4975_v29, %v5070_v20  ;;  %v2684_v7 = vmul.f32 %v4975_v29, %v5075_v25 }
0x11f8   :  { %2576 = vrot.lane.b32.xlu1 %v2555_v11, %s3403_s21  ;;  %2574 = vrot.lane.b32.xlu0 %v2554_v23, %s3403_s21  ;;  %v5089_v11 = vld [vmem:[%s6303_s0 + $0x20] sm:$0xff]  ;;  %v5094_v23 = vld [vmem:[%s6303_s0 + $0x18] sm:$0xff] }
0x11f9   :  { %6769 = vst [vmem:[#allocation276_spill] sm:$0xff] %v5089_v11  ;;  %6770 = vst [vmem:[#allocation277_spill] sm:$0xff] %v5094_v23  ;;  %v2687_v13 = vmul.f32 %v4975_v29, %v5089_v11  ;;  %v2689_v11 = vmul.f32 %v4979_v19, %v5121_v16 }
0x11fc   :  { %2580 = vrot.lane.b32.xlu1 %v2557_v18, %s3403_s21  ;;  %2578 = vrot.lane.b32.xlu0 %v2556_v14, %s3403_s21  ;;  %v5099_v18 = vld [vmem:[%s6302_s1 + $0x8] sm:$0xff]  ;;  %v28_v14 = vmul.f32 %v4792_v54, %v20_v15 }
0x11fd   :  { %6771 = vst [vmem:[#allocation278_spill] sm:$0xff] %v5099_v18 }
0x1200   :  { %2745 = vrot.lane.b32.xlu1 %v3217_v21, %s3343_s14  ;;  %2743 = vrot.lane.b32.xlu0 %v3216_v28, %s3343_s14  ;;  %v29_v21 = vmul.f32 %v4786_v55, %v20_v15  ;;  %v14_v28 = vld [vmem:[%s6304_s2] sm:$0xff]  ;;  %v31_v55 = vmul.f32 %v4820_v31, %v5099_v18 }
0x1201   :  { %v34_v18 = vadd.f32 %v28_v14, %v14_v28  ;;  %v53_v14 = vmul.f32 %v4792_v54, %v3487_v17  ;;  %v59_v28 = vmul.f32 %v4834_v39, %v3515_v27 }
0x1202   :  { %v35_v30 = vadd.f32 %v29_v21, %v15_v12  ;;  %v5151_v12 = vld [vmem:[%s6303_s0 + $0x48] sm:$0xff]  ;;  %v57_v21 = vmul.f32 %v4820_v31, %v3515_v27  ;;  %v166_v31 = vsel %vm104_vm1, %v3633_v41, %v3631_v40  ;;  %v232_v41 = vsel %vm231_vm2, %v3649_v49, %v3647_v48 }
0x1203   :  { %v117_v54 = vadd.f32 %v105_v24, %v34_v18  ;;  %v180_v49 = vadd.f32 %v166_v31, %v53_v14  ;;  %v2811_v31 = vmul.f32 %v4977_v22, %v5070_v20 }
0x1204   :  { %2702 = vrot.lane.b32.xlu1 %v2685_v26, %s3346_s12  ;;  %2700 = vrot.lane.b32.xlu0 %v2684_v7, %s3346_s12  ;;  %v2686_v26 = vmul.f32 %v4975_v29, %v5094_v23  ;;  %v30_v7 = vmul.f32 %v4806_v38, %v20_v15  ;;  %v16_v29 = vld [vmem:[%s6304_s2 + $0x10] sm:$0xff]  ;;  %v17_v15 = vld [vmem:[%s6304_s2 + $0x18] sm:$0xff]  ;;  %v106_v23 = vsel %vm104_vm1, %v3615_v32, %v3621_v35 }
0x1205   :  { %v5156_v32 = vld [vmem:[%s6303_s0 + $0x40] sm:$0xff]  ;;  %v108_v38 = vsel %vm104_vm1, %v3625_v37, %v3623_v36  ;;  %v171_v37 = vsel %vm104_vm1, %v3645_v47, %v3643_v46 }
0x1206   :  { %v36_v25 = vadd.f32 %v30_v7, %v16_v29  ;;  %v118_v7 = vadd.f32 %v106_v23, %v35_v30  ;;  %v233_v30 = vsel %vm231_vm2, %v3647_v48, %v3653_v51  ;;  %v293_v48 = vsel %vm231_vm2, %v3665_v57, %v3663_v56 }
0x1207   :  { %v244_v29 = vadd.f32 %v232_v41, %v117_v54  ;;  %v307_v57 = vadd.f32 %v293_v48, %v180_v49  ;;  %v362_v54 = vsel %vm358_vm3, %v3689_v5, %v3687_v4  ;;  %v6776_v5 = vld [vmem:[#allocation10_spill] sm:$0xff] }
0x1208   :  { %2706 = vrot.lane.b32.xlu1 %v2687_v13, %s3346_s12  ;;  %2704 = vrot.lane.b32.xlu0 %v2686_v26, %s3346_s12  ;;  %v37_v13 = vadd.f32 %v31_v55, %v17_v15  ;;  %v107_v26 = vsel %vm104_vm1, %v3621_v35, %v3619_v34  ;;  %v168_v34 = vsel %vm104_vm1, %v3637_v43, %v3635_v42 }
0x1209   :  { %v169_v35 = vsel %vm104_vm1, %v3641_v45, %v3639_v44  ;;  %v235_v45 = vsel %vm231_vm2, %v3657_v53, %v3655_v52  ;;  %v119_v24 = vadd.f32 %v107_v26, %v36_v25  ;;  %v182_v53 = vadd.f32 %v168_v34, %v55_v33  ;;  %v6773_v34 = vld [vmem:[#allocation8_spill] sm:$0xff] }
0x120a   :  { %v120_v23 = vadd.f32 %v108_v38, %v37_v13  ;;  %v184_v18 = vadd.f32 %v169_v35, %v57_v21  ;;  %v186_v55 = vadd.f32 %v171_v37, %v59_v28  ;;  %v295_v25 = vsel %vm231_vm2, %v3669_v59, %v3667_v58  ;;  %v6774_v35 = vld [vmem:[#allocation9_spill] sm:$0xff]  ;;  %v6775_v37 = vld [vmem:[#allocation11_spill] sm:$0xff] }
0x120b   :  { %v245_v15 = vadd.f32 %v233_v30, %v118_v7  ;;  %v296_v26 = vsel %vm231_vm2, %v3673_v61, %v3671_v60  ;;  %v298_v38 = vsel %vm231_vm2, %v3677_v63, %v3675_v62  ;;  %v309_v33 = vadd.f32 %v295_v25, %v182_v53  ;;  %v6777_v30 = vld [vmem:[#allocation13_spill] sm:$0xff] }
0x120c   :  { %2710 = vrot.lane.b32.xlu1 %v2689_v11, %s3346_s12  ;;  %2708 = vrot.lane.b32.xlu0 %v2688_v10, %s3346_s12  ;;  %v2691_v11 = vmul.f32 %v4979_v19, %v5151_v12  ;;  %v2690_v10 = vmul.f32 %v4979_v19, %v5156_v32  ;;  %v234_v19 = vsel %vm231_vm2, %v3653_v51, %v3651_v50  ;;  %v3221_v50 = vld [vmem:[%s6302_s1 + $0x2e8] sm:$0xff]  ;;  %v3220_v51 = vld [vmem:[%s6302_s1 + $0x2e0] sm:$0xff]  ;;  %v6782_v25 = vld [vmem:[#allocation277_spill] sm:$0xff] }
0x120d   :  { %v246_v13 = vadd.f32 %v234_v19, %v119_v24  ;;  %v247_v14 = vadd.f32 %v235_v45, %v120_v23  ;;  %v359_v21 = vsel %vm358_vm3, %v3681_v1, %v3679_v0  ;;  %v360_v28 = vsel %vm358_vm3, %v3679_v0, %v3685_v3  ;;  %v6772_v1 = vld [vmem:[#allocation275_spill] sm:$0xff] }
0x120e   :  { %v361_v61 = vsel %vm358_vm3, %v3685_v3, %v3683_v2  ;;  %v421_v7 = vsel %vm420_vm4, %v3697_v9, %v3695_v8  ;;  %v313_v0 = vadd.f32 %v298_v38, %v186_v55  ;;  %v423_v2 = vsel %vm420_vm4, %v6774_v35, %v6773_v34  ;;  %v6778_v9 = vld [vmem:[#allocation12_spill] sm:$0xff]  ;;  %v6800_v34 = vld [vmem:[#allocation35_spill] sm:$0xff] }
0x120f   :  { %v371_v3 = vadd.f32 %v359_v21, %v244_v29  ;;  %v424_v41 = vsel %vm420_vm4, %v6776_v5, %v6775_v37  ;;  %v426_v19 = vsel %vm420_vm4, %v6778_v9, %v6777_v30  ;;  %v372_v45 = vadd.f32 %v360_v28, %v245_v15  ;;  %v6783_v21 = vld [vmem:[#allocation17_spill] sm:$0xff] }
0x1210   :  { %2714 = vrot.lane.b32.xlu1 %v2691_v11, %s3346_s12  ;;  %2712 = vrot.lane.b32.xlu0 %v2690_v10, %s3346_s12  ;;  %v2810_v11 = vmul.f32 %v4977_v22, %v6772_v1  ;;  %v311_v10 = vadd.f32 %v296_v26, %v184_v18  ;;  %v373_v24 = vadd.f32 %v361_v61, %v246_v13  ;;  %v6781_v18 = vld [vmem:[#allocation276_spill] sm:$0xff]  ;;  %v6787_v61 = vld [vmem:[#allocation22_spill] sm:$0xff] }
0x1211   :  { %v374_v23 = vadd.f32 %v362_v54, %v247_v14  ;;  %v435_v49 = vadd.f32 %v421_v7, %v307_v57  ;;  %v437_v48 = vadd.f32 %v423_v2, %v309_v33  ;;  %v2813_v55 = vmul.f32 %v4977_v22, %v6781_v18  ;;  %v6784_v13 = vld [vmem:[#allocation16_spill] sm:$0xff]  ;;  %v6785_v57 = vld [vmem:[#allocation19_spill] sm:$0xff]  ;;  %v6786_v33 = vld [vmem:[#allocation18_spill] sm:$0xff] }
0x1212   :  { %v2812_v29 = vmul.f32 %v4977_v22, %v6782_v25  ;;  %v439_v26 = vadd.f32 %v424_v41, %v311_v10  ;;  %v441_v38 = vadd.f32 %v426_v19, %v313_v0  ;;  %v489_v14 = vsel %vm486_vm5, %v6783_v21, %v6784_v13  ;;  %v6788_v54 = vld [vmem:[#allocation23_spill] sm:$0xff]  ;;  %v6792_v2 = vld [vmem:[#allocation26_spill] sm:$0xff]  ;;  %v6793_v41 = vld [vmem:[#allocation29_spill] sm:$0xff] }
0x1213   :  { %v490_v28 = vsel %vm486_vm5, %v6786_v33, %v6785_v57  ;;  %v548_v7 = vsel %vm486_vm5, %v6788_v54, %v6787_v61  ;;  %v6791_v0 = vld [vmem:[#allocation27_spill] sm:$0xff]  ;;  %v6794_v19 = vld [vmem:[#allocation28_spill] sm:$0xff]  ;;  %v6801_v57 = vld [vmem:[#allocation34_spill] sm:$0xff] }
0x1214   :  { %2871 = vrot.lane.b32.xlu1 %v3221_v50, %s3404_s24  ;;  %2869 = vrot.lane.b32.xlu0 %v3220_v51, %s3404_s24  ;;  %v6779_v50 = vld [vmem:[#allocation14_spill] sm:$0xff]  ;;  %v6780_v51 = vld [vmem:[#allocation15_spill] sm:$0xff]  ;;  %v551_v5 = vsel %vm486_vm5, %v6792_v2, %v6791_v0  ;;  %v501_v2 = vadd.f32 %v489_v14, %v373_v24  ;;  %v562_v0 = vadd.f32 %v548_v7, %v435_v49 }
0x1215   :  { %v487_v53 = vsel %vm486_vm5, %v6780_v51, %v6779_v50  ;;  %v488_v15 = vsel %vm486_vm5, %v6779_v50, %v6783_v21  ;;  %v553_v50 = vsel %vm486_vm5, %v6794_v19, %v6793_v41  ;;  %v6795_v51 = vld [vmem:[#allocation30_spill] sm:$0xff]  ;;  %v6796_v21 = vld [vmem:[#allocation31_spill] sm:$0xff]  ;;  %v566_v41 = vadd.f32 %v551_v5, %v439_v26  ;;  %v6799_v19 = vld [vmem:[#allocation32_spill] sm:$0xff] }
0x1216   :  { %v499_v22 = vadd.f32 %v487_v53, %v371_v3  ;;  %v614_v13 = vsel %vm613_vm6, %v6796_v21, %v6795_v51  ;;  %v6798_v53 = vld [vmem:[#allocation259_spill] sm:$0xff]  ;;  %v500_v54 = vadd.f32 %v488_v15, %v372_v45  ;;  %v617_v45 = vsel %vm613_vm6, %v6801_v57, %v6800_v34  ;;  %v6802_v24 = vld [vmem:[#allocation38_spill] sm:$0xff]  ;;  %v6805_v26 = vld [vmem:[#allocation41_spill] sm:$0xff] }
0x1217   :  { %v2814_v33 = vmul.f32 %v6798_v53, %v5126_v6  ;;  %v2817_v14 = vmul.f32 %v6798_v53, %v5151_v12  ;;  %v6806_v7 = vld [vmem:[#allocation43_spill] sm:$0xff]  ;;  %v6808_v57 = vld [vmem:[#allocation45_spill] sm:$0xff]  ;;  %v6809_v5 = vld [vmem:[#allocation44_spill] sm:$0xff] }
0x1218   :  { %2828 = vrot.lane.b32.xlu1 %v2811_v31, %s3347_s13  ;;  %2826 = vrot.lane.b32.xlu0 %v2810_v11, %s3347_s13  ;;  %v6789_v31 = vld [vmem:[#allocation24_spill] sm:$0xff]  ;;  %v6790_v11 = vld [vmem:[#allocation25_spill] sm:$0xff] }
0x1219   :  { %v550_v10 = vsel %vm486_vm5, %v6790_v11, %v6789_v31  ;;  %v502_v31 = vadd.f32 %v490_v28, %v374_v23  ;;  %v626_v11 = vadd.f32 %v614_v13, %v499_v22  ;;  %v6803_v23 = vld [vmem:[#allocation39_spill] sm:$0xff]  ;;  %v6807_v22 = vld [vmem:[#allocation42_spill] sm:$0xff] }
0x121a   :  { %v564_v61 = vadd.f32 %v550_v10, %v437_v48  ;;  %v675_v49 = vsel %vm613_vm6, %v6803_v23, %v6802_v24  ;;  %v6804_v48 = vld [vmem:[#allocation40_spill] sm:$0xff]  ;;  %v678_v10 = vsel %vm613_vm6, %v6807_v22, %v6806_v7  ;;  %v6811_v13 = vld [vmem:[#allocation47_spill] sm:$0xff]  ;;  %v6821_v7 = vld [vmem:[#allocation58_spill] sm:$0xff] }
0x121b   :  { %v677_v15 = vsel %vm613_vm6, %v6805_v26, %v6804_v48  ;;  %v629_v23 = vadd.f32 %v617_v45, %v502_v31  ;;  %v689_v22 = vadd.f32 %v675_v49, %v562_v0  ;;  %v6816_v48 = vld [vmem:[#allocation54_spill] sm:$0xff]  ;;  %v6822_v24 = vld [vmem:[#allocation61_spill] sm:$0xff]  ;;  %v6823_v26 = vld [vmem:[#allocation60_spill] sm:$0xff] }
0x121c   :  { %2832 = vrot.lane.b32.xlu1 %v2813_v55, %s3347_s13  ;;  %2830 = vrot.lane.b32.xlu0 %v2812_v29, %s3347_s13  ;;  %v6797_v55 = vld [vmem:[#allocation33_spill] sm:$0xff]  ;;  %v2815_v29 = vmul.f32 %v6798_v53, %v5121_v16 }
0x121d   :  { %v615_v3 = vsel %vm613_vm6, %v6795_v51, %v6797_v55  ;;  %v616_v21 = vsel %vm613_vm6, %v6797_v55, %v6799_v19  ;;  %v568_v51 = vadd.f32 %v553_v50, %v441_v38  ;;  %v2816_v38 = vmul.f32 %v6798_v53, %v5156_v32  ;;  %v6810_v50 = vld [vmem:[#allocation46_spill] sm:$0xff] }
0x121e   :  { %v627_v30 = vadd.f32 %v615_v3, %v500_v54  ;;  %v628_v28 = vadd.f32 %v616_v21, %v501_v2  ;;  %v680_v19 = vsel %vm613_vm6, %v6809_v5, %v6808_v57  ;;  %v741_v55 = vsel %vm740_vm7, %v6811_v13, %v6810_v50  ;;  %v6812_v3 = vld [vmem:[#allocation49_spill] sm:$0xff]  ;;  %v6814_v54 = vld [vmem:[#allocation51_spill] sm:$0xff]  ;;  %v6815_v2 = vld [vmem:[#allocation50_spill] sm:$0xff] }
0x121f   :  { %v744_v21 = vsel %vm740_vm7, %v6815_v2, %v6814_v54  ;;  %v691_v57 = vadd.f32 %v677_v15, %v564_v61  ;;  %v3224_v13 = vld [vmem:[%s6302_s1 + $0x300] sm:$0xff]  ;;  %v6817_v2 = vld [vmem:[#allocation55_spill] sm:$0xff]  ;;  %v6818_v54 = vld [vmem:[#allocation56_spill] sm:$0xff]  ;;  %v753_v61 = vadd.f32 %v741_v55, %v626_v11 }
0x1220   :  { %2836 = vrot.lane.b32.xlu1 %v2815_v29, %s3347_s13  ;;  %2834 = vrot.lane.b32.xlu0 %v2814_v33, %s3347_s13  ;;  %v742_v29 = vsel %vm740_vm7, %v6810_v50, %v6812_v3  ;;  %v6813_v33 = vld [vmem:[#allocation48_spill] sm:$0xff]  ;;  %v3225_v50 = vld [vmem:[%s6302_s1 + $0x308] sm:$0xff]  ;;  %v756_v49 = vadd.f32 %v744_v21, %v629_v23  ;;  %s3405_s1 = smov 10   ;;  %v6830_v23 = vld [vmem:[#allocation70_spill] sm:$0xff] }
0x1221   :  { %v743_v53 = vsel %vm740_vm7, %v6812_v3, %v6813_v33  ;;  %v693_v3 = vadd.f32 %v678_v10, %v566_v41  ;;  %v695_v33 = vadd.f32 %v680_v19, %v568_v51  ;;  %v754_v0 = vadd.f32 %v742_v29, %v627_v30  ;;  %v6820_v15 = vld [vmem:[#allocation59_spill] sm:$0xff]  ;;  %v6824_v51 = vld [vmem:[#allocation62_spill] sm:$0xff]  ;;  %v6826_v30 = vld [vmem:[#allocation65_spill] sm:$0xff] }
0x1222   :  { %v755_v45 = vadd.f32 %v743_v53, %v628_v28  ;;  %v805_v5 = vsel %vm740_vm7, %v6821_v7, %v6820_v15  ;;  %v807_v41 = vsel %vm740_vm7, %v6823_v26, %v6822_v24  ;;  %v6825_v10 = vld [vmem:[#allocation63_spill] sm:$0xff]  ;;  %v869_v28 = vsel %vm6489_vm8, %v6824_v51, %v6826_v30  ;;  %v6827_v55 = vld [vmem:[#allocation64_spill] sm:$0xff]  ;;  %v6829_v53 = vld [vmem:[#allocation66_spill] sm:$0xff] }
0x1223   :  { %v868_v19 = vsel %vm6489_vm8, %v6825_v10, %v6824_v51  ;;  %v870_v7 = vsel %vm6489_vm8, %v6826_v30, %v6827_v55  ;;  %v6828_v29 = vld [vmem:[#allocation67_spill] sm:$0xff]  ;;  %v881_v51 = vadd.f32 %v869_v28, %v754_v0  ;;  %v6833_v30 = vld [vmem:[#allocation72_spill] sm:$0xff]  ;;  %v6834_v55 = vld [vmem:[#allocation73_spill] sm:$0xff] }
0x1224   :  { %2840 = vrot.lane.b32.xlu1 %v2817_v14, %s3347_s13  ;;  %2838 = vrot.lane.b32.xlu0 %v2816_v38, %s3347_s13  ;;  %v802_v14 = vsel %vm740_vm7, %v6817_v2, %v6816_v48  ;;  %v6819_v38 = vld [vmem:[#allocation57_spill] sm:$0xff]  ;;  %v871_v21 = vsel %vm6489_vm8, %v6829_v53, %v6828_v29  ;;  %v6831_v24 = vld [vmem:[#allocation71_spill] sm:$0xff]  ;;  %v6836_v29 = vld [vmem:[#allocation74_spill] sm:$0xff] }
0x1225   :  { %v804_v31 = vsel %vm740_vm7, %v6819_v38, %v6818_v54  ;;  %v816_v2 = vadd.f32 %v802_v14, %v689_v22  ;;  %v929_v10 = vsel %vm6489_vm8, %v6831_v24, %v6830_v23  ;;  %v822_v14 = vadd.f32 %v807_v41, %v695_v33  ;;  %v6835_v53 = vld [vmem:[#allocation75_spill] sm:$0xff]  ;;  %v6838_v33 = vld [vmem:[#allocation76_spill] sm:$0xff]  ;;  %v6839_v0 = vld [vmem:[#allocation78_spill] sm:$0xff] }
0x1226   :  { %v818_v11 = vadd.f32 %v804_v31, %v691_v57  ;;  %v880_v31 = vadd.f32 %v868_v19, %v753_v61  ;;  %v931_v54 = vsel %vm6489_vm8, %v6834_v55, %v6833_v30  ;;  %v932_v15 = vsel %vm6489_vm8, %v6836_v29, %v6835_v53  ;;  %v6840_v41 = vld [vmem:[#allocation79_spill] sm:$0xff]  ;;  %v6841_v28 = vld [vmem:[#allocation81_spill] sm:$0xff]  ;;  %v6847_v53 = vld [vmem:[#allocation88_spill] sm:$0xff] }
0x1227   :  { %v882_v24 = vadd.f32 %v870_v7, %v755_v45  ;;  %v883_v23 = vadd.f32 %v871_v21, %v756_v49  ;;  %v995_v19 = vsel %vm6488_vm9, %v6840_v41, %v6839_v0  ;;  %v996_v29 = vsel %vm6488_vm9, %v6839_v0, %v6841_v28  ;;  %v6842_v7 = vld [vmem:[#allocation80_spill] sm:$0xff]  ;;  %v6846_v30 = vld [vmem:[#allocation87_spill] sm:$0xff] }
0x1228   :  { %2998 = vrot.lane.b32.xlu1 %v3225_v50, %s3405_s1  ;;  %2996 = vrot.lane.b32.xlu0 %v3224_v13, %s3405_s1  ;;  %v6832_v50 = vld [vmem:[#allocation258_spill] sm:$0xff]  ;;  %v820_v13 = vadd.f32 %v805_v5, %v693_v3  ;;  %v943_v5 = vadd.f32 %v929_v10, %v816_v2  ;;  %v6837_v3 = vld [vmem:[#allocation77_spill] sm:$0xff]  ;;  %v945_v49 = vadd.f32 %v931_v54, %v818_v11  ;;  %v6843_v10 = vld [vmem:[#allocation83_spill] sm:$0xff] }
0x1229   :  { %v2938_v22 = vmul.f32 %v6832_v50, %v5070_v20  ;;  %v2937_v57 = vmul.f32 %v6832_v50, %v6772_v1  ;;  %v934_v61 = vsel %vm6489_vm8, %v6838_v33, %v6837_v3  ;;  %v2939_v45 = vmul.f32 %v6832_v50, %v6782_v25  ;;  %v6845_v3 = vld [vmem:[#allocation86_spill] sm:$0xff]  ;;  %v6848_v33 = vld [vmem:[#allocation89_spill] sm:$0xff]  ;;  %v6933_v38 = vld [vmem:[#allocation240_spill] sm:$0xff] }
0x122a   :  { %v947_v2 = vadd.f32 %v932_v15, %v820_v13  ;;  %v997_v21 = vsel %vm6488_vm9, %v6841_v28, %v6842_v7  ;;  %v1056_v0 = vsel %vm6488_vm9, %v6846_v30, %v6845_v3  ;;  %v1058_v55 = vsel %vm6488_vm9, %v6848_v33, %v6847_v53  ;;  %v6850_v13 = vld [vmem:[#allocation90_spill] sm:$0xff]  ;;  %v6851_v7 = vld [vmem:[#allocation93_spill] sm:$0xff]  ;;  %v6854_v3 = vld [vmem:[#allocation95_spill] sm:$0xff] }
0x122b   :  { %v949_v54 = vadd.f32 %v934_v61, %v822_v14  ;;  %v1007_v15 = vadd.f32 %v995_v19, %v880_v31  ;;  %v1008_v11 = vadd.f32 %v996_v29, %v881_v51  ;;  %v6853_v30 = vld [vmem:[#allocation94_spill] sm:$0xff]  ;;  %v6855_v53 = vld [vmem:[#allocation261_spill] sm:$0xff]  ;;  %v1009_v31 = vadd.f32 %v997_v21, %v882_v24 }
0x122c   :  { %2955 = vrot.lane.b32.xlu1 %v2938_v22, %s3406_s27  ;;  %2953 = vrot.lane.b32.xlu0 %v2937_v57, %s3406_s27  ;;  %v2940_v22 = vmul.f32 %v6832_v50, %v6781_v18  ;;  %v6844_v57 = vld [vmem:[#allocation82_spill] sm:$0xff]  ;;  %v6849_v50 = vld [vmem:[#allocation91_spill] sm:$0xff]  ;;  %v1122_v26 = vsel %vm6486_vm10, %v6854_v3, %v6853_v30  ;;  %v2941_v14 = vmul.f32 %v6855_v53, %v5126_v6  ;;  %v6856_v29 = vld [vmem:[#allocation97_spill] sm:$0xff]  ;;  %vm2520_vm8 = vcmask 105472  }
0x122d   :  { %v998_v41 = vsel %vm6488_vm9, %v6844_v57, %v6843_v10  ;;  %v1059_v28 = vsel %vm6488_vm9, %v6850_v13, %v6849_v50  ;;  %v6852_v57 = vld [vmem:[#allocation92_spill] sm:$0xff]  ;;  %v1070_v61 = vadd.f32 %v1056_v0, %v943_v5  ;;  %v1072_v19 = vadd.f32 %v1058_v55, %v945_v49  ;;  %v6858_v50 = vld [vmem:[#allocation99_spill] sm:$0xff]  ;;  %v6859_v3 = vld [vmem:[#allocation98_spill] sm:$0xff] }
0x122e   :  { %v1061_v10 = vsel %vm6488_vm9, %v6852_v57, %v6851_v7  ;;  %v1010_v51 = vadd.f32 %v998_v41, %v883_v23  ;;  %v6857_v13 = vld [vmem:[#allocation96_spill] sm:$0xff]  ;;  %v1125_v57 = vsel %vm6486_vm10, %v6859_v3, %v6858_v50  ;;  %v1074_v24 = vadd.f32 %v1059_v28, %v947_v2  ;;  %v6860_v55 = vld [vmem:[#allocation102_spill] sm:$0xff]  ;;  %v6861_v49 = vld [vmem:[#allocation103_spill] sm:$0xff] }
0x122f   :  { %v1124_v7 = vsel %vm6486_vm10, %v6856_v29, %v6857_v13  ;;  %v1076_v23 = vadd.f32 %v1061_v10, %v949_v54  ;;  %v1134_v5 = vadd.f32 %v1122_v26, %v1007_v15  ;;  %v1183_v21 = vsel %vm6486_vm10, %v6861_v49, %v6860_v55  ;;  %v6862_v41 = vld [vmem:[#allocation104_spill] sm:$0xff]  ;;  %v6863_v0 = vld [vmem:[#allocation105_spill] sm:$0xff]  ;;  %v6864_v26 = vld [vmem:[#allocation107_spill] sm:$0xff] }
0x1230   :  { %2959 = vrot.lane.b32.xlu1 %v2940_v22, %s3406_s27  ;;  %2957 = vrot.lane.b32.xlu0 %v2939_v45, %s3406_s27  ;;  %v2942_v22 = vmul.f32 %v6855_v53, %v5121_v16  ;;  %v1123_v45 = vsel %vm6486_vm10, %v6853_v30, %v6856_v29  ;;  %v1185_v30 = vsel %vm6486_vm10, %v6863_v0, %v6862_v41  ;;  %v6865_v10 = vld [vmem:[#allocation106_spill] sm:$0xff]  ;;  %v6866_v15 = vld [vmem:[#allocation109_spill] sm:$0xff]  ;;  %v6867_v28 = vld [vmem:[#allocation108_spill] sm:$0xff]  ;;  %vm2266_vm9 = vcmask 138240  }
0x1231   :  { %v2944_v29 = vmul.f32 %v6855_v53, %v5151_v12  ;;  %v1135_v13 = vadd.f32 %v1123_v45, %v1008_v11  ;;  %v1137_v2 = vadd.f32 %v1125_v57, %v1010_v51  ;;  %v1186_v54 = vsel %vm6486_vm10, %v6865_v10, %v6864_v26  ;;  %v6868_v49 = vld [vmem:[#allocation110_spill] sm:$0xff]  ;;  %v6869_v41 = vld [vmem:[#allocation111_spill] sm:$0xff]  ;;  %v6879_v50 = vld [vmem:[#allocation121_spill] sm:$0xff] }
0x1232   :  { %v1188_v3 = vsel %vm6486_vm10, %v6867_v28, %v6866_v15  ;;  %v1249_v55 = vsel %vm6485_vm11, %v6869_v41, %v6868_v49  ;;  %v1199_v11 = vadd.f32 %v1185_v30, %v1072_v19  ;;  %v6872_v45 = vld [vmem:[#allocation115_spill] sm:$0xff]  ;;  %v6873_v10 = vld [vmem:[#allocation114_spill] sm:$0xff]  ;;  %v1201_v30 = vadd.f32 %v1186_v54, %v1074_v24  ;;  %v6882_v24 = vld [vmem:[#allocation125_spill] sm:$0xff] }
0x1233   :  { %v1252_v15 = vsel %vm6485_vm11, %v6873_v10, %v6872_v45  ;;  %v6874_v26 = vld [vmem:[#allocation118_spill] sm:$0xff]  ;;  %v6875_v41 = vld [vmem:[#allocation119_spill] sm:$0xff]  ;;  %v6886_v54 = vld [vmem:[#allocation129_spill] sm:$0xff]  ;;  %vm2011_vm10 = vcmask 293888  }
0x1234   :  { %2963 = vrot.lane.b32.xlu1 %v2942_v22, %s3406_s27  ;;  %2961 = vrot.lane.b32.xlu0 %v2941_v14, %s3406_s27  ;;  %v2943_v22 = vmul.f32 %v6855_v53, %v5156_v32  ;;  %v1136_v14 = vadd.f32 %v1124_v7, %v1009_v31  ;;  %v1197_v53 = vadd.f32 %v1183_v21, %v1070_v61  ;;  %v6870_v7 = vld [vmem:[#allocation113_spill] sm:$0xff]  ;;  %v6871_v31 = vld [vmem:[#allocation112_spill] sm:$0xff]  ;;  %v6876_v28 = vld [vmem:[#allocation274_spill] sm:$0xff] }
0x1235   :  { %v1250_v57 = vsel %vm6485_vm11, %v6868_v49, %v6870_v7  ;;  %v1251_v51 = vsel %vm6485_vm11, %v6870_v7, %v6871_v31  ;;  %v2494_v61 = vmul.f32 %v4834_v39, %v6876_v28  ;;  %v6877_v19 = vld [vmem:[#allocation238_spill] sm:$0xff]  ;;  %v1261_v49 = vadd.f32 %v1249_v55, %v1134_v5  ;;  %v6878_v31 = vld [vmem:[#allocation120_spill] sm:$0xff]  ;;  %v6880_v39 = vld [vmem:[#allocation123_spill] sm:$0xff] }
0x1236   :  { %v2495_v21 = vmul.f32 %v6877_v19, %v6876_v28  ;;  %v1262_v0 = vadd.f32 %v1250_v57, %v1135_v13  ;;  %v1263_v7 = vadd.f32 %v1251_v51, %v1136_v14  ;;  %v1313_v10 = vsel %vm6484_vm12, %v6879_v50, %v6878_v31  ;;  %v6881_v45 = vld [vmem:[#allocation122_spill] sm:$0xff]  ;;  %v6885_v13 = vld [vmem:[#allocation127_spill] sm:$0xff]  ;;  %v6887_v57 = vld [vmem:[#allocation128_spill] sm:$0xff] }
0x1237   :  { %v1314_v28 = vsel %vm6484_vm12, %v6881_v45, %v6880_v39  ;;  %v6884_v55 = vld [vmem:[#allocation126_spill] sm:$0xff]  ;;  %v6894_v39 = vld [vmem:[#allocation139_spill] sm:$0xff]  ;;  %vm1884_vm11 = vcmask 310272  }
0x1238   :  { %2967 = vrot.lane.b32.xlu1 %v2944_v29, %s3406_s27  ;;  %2965 = vrot.lane.b32.xlu0 %v2943_v22, %s3406_s27  ;;  %v1311_v29 = vsel %vm6484_vm12, %v6875_v41, %v6874_v26  ;;  %v1203_v22 = vadd.f32 %v1188_v3, %v1076_v23  ;;  %v1264_v41 = vadd.f32 %v1252_v15, %v1137_v2  ;;  %v6883_v23 = vld [vmem:[#allocation124_spill] sm:$0xff]  ;;  %v6889_v51 = vld [vmem:[#allocation130_spill] sm:$0xff] }
0x1239   :  { %v1325_v26 = vadd.f32 %v1311_v29, %v1197_v53  ;;  %v1316_v5 = vsel %vm6484_vm12, %v6883_v23, %v6882_v24  ;;  %v1377_v14 = vsel %vm6487_vm13, %v6885_v13, %v6884_v55  ;;  %v1378_v3 = vsel %vm6487_vm13, %v6884_v55, %v6886_v54  ;;  %v6888_v53 = vld [vmem:[#allocation131_spill] sm:$0xff]  ;;  %v6890_v29 = vld [vmem:[#allocation134_spill] sm:$0xff]  ;;  %v6893_v13 = vld [vmem:[#allocation137_spill] sm:$0xff] }
0x123a   :  { %v1379_v2 = vsel %vm6487_vm13, %v6886_v54, %v6887_v57  ;;  %v1327_v15 = vadd.f32 %v1313_v10, %v1199_v11  ;;  %v1380_v45 = vsel %vm6487_vm13, %v6889_v51, %v6888_v53  ;;  %v1329_v31 = vadd.f32 %v1314_v28, %v1201_v30  ;;  %v6895_v23 = vld [vmem:[#allocation138_spill] sm:$0xff]  ;;  %v6897_v53 = vld [vmem:[#allocation143_spill] sm:$0xff]  ;;  %v6898_v30 = vld [vmem:[#allocation145_spill] sm:$0xff] }
0x123b   :  { %v5490_v55 = vadd.f32 %v1316_v5, %v1203_v22  ;;  %v1441_v54 = vsel %vm6487_vm13, %v6895_v23, %v6894_v39  ;;  %v1389_v11 = vadd.f32 %v1377_v14, %v1261_v49  ;;  %v1390_v10 = vadd.f32 %v1378_v3, %v1262_v0  ;;  %v6896_v51 = vld [vmem:[#allocation142_spill] sm:$0xff]  ;;  %v6899_v28 = vld [vmem:[#allocation144_spill] sm:$0xff]  ;;  %v6902_v14 = vld [vmem:[#allocation147_spill] sm:$0xff] }
0x123c   :  { %2518 = vrot.lane.b32.xlu1 %v2495_v21, %s3403_s21  ;;  %2516 = vrot.lane.b32.xlu0 %v2494_v61, %s3403_s21  ;;  %v6891_v61 = vld [vmem:[#allocation135_spill] sm:$0xff]  ;;  %v6892_v21 = vld [vmem:[#allocation136_spill] sm:$0xff]  ;;  %v1391_v57 = vadd.f32 %v1379_v2, %v1263_v7  ;;  %v1504_v50 = vsel %vm1503_vm14, %v6897_v53, %v6896_v51  ;;  %vm1757_vm12 = vcmask 326656   ;;  %v1505_v22 = vsel %vm1503_vm14, %v6896_v51, %v6898_v30  ;;  %v6900_v0 = vld [vmem:[#allocation158_spill] sm:$0xff] }
0x123d   :  { %v1438_v19 = vsel %vm6487_vm13, %v6891_v61, %v6890_v29  ;;  %v1440_v24 = vsel %vm6487_vm13, %v6893_v13, %v6892_v21  ;;  %v1392_v61 = vadd.f32 %v1380_v45, %v1264_v41  ;;  %v5498_v21 = vadd.f32 %v1441_v54, %v1329_v31  ;;  %v6901_v7 = vld [vmem:[#allocation159_spill] sm:$0xff]  ;;  %v6903_v41 = vld [vmem:[#allocation146_spill] sm:$0xff]  ;;  %v6906_v2 = vld [vmem:[#allocation141_spill] sm:$0xff] }
0x123e   :  { %v1452_v29 = vadd.f32 %v1438_v19, %v1325_v26  ;;  %v1454_v33 = vadd.f32 %v1440_v24, %v1327_v15  ;;  %v1506_v49 = vsel %vm1503_vm14, %v6898_v30, %v6899_v28  ;;  %v1631_v23 = vsel %vm1630_vm15, %v6901_v7, %v6900_v0  ;;  %v6904_v24 = vld [vmem:[#allocation150_spill] sm:$0xff]  ;;  %v6905_v31 = vld [vmem:[#allocation151_spill] sm:$0xff]  ;;  %v6907_v15 = vld [vmem:[#allocation140_spill] sm:$0xff] }
0x123f   :  { %v1516_v5 = vadd.f32 %v1504_v50, %v1389_v11  ;;  %v1507_v26 = vsel %vm1503_vm14, %v6903_v41, %v6902_v14  ;;  %v1565_v3 = vsel %vm1503_vm14, %v6905_v31, %v6904_v24  ;;  %v5518_v53 = vsel %vm6487_vm13, %v6907_v15, %v6906_v2  ;;  %v6908_v45 = vld [vmem:[#allocation152_spill] sm:$0xff]  ;;  %v6909_v19 = vld [vmem:[#allocation153_spill] sm:$0xff]  ;;  %v6911_v11 = vld [vmem:[#allocation174_spill] sm:$0xff] }
0x1240   :  { %v1567_v54 = vsel %vm1503_vm14, %v6909_v19, %v6908_v45  ;;  %v6910_v51 = vld [vmem:[#allocation161_spill] sm:$0xff]  ;;  %v6912_v30 = vld [vmem:[#allocation175_spill] sm:$0xff]  ;;  %v1517_v7 = vadd.f32 %v1505_v22, %v1390_v10  ;;  %v1518_v41 = vadd.f32 %v1506_v49, %v1391_v57  ;;  %v1519_v24 = vadd.f32 %v1507_v26, %v1392_v61  ;;  %v6913_v2 = vld [vmem:[#allocation160_spill] sm:$0xff] }
0x1241   :  { %v1632_v50 = vsel %vm1630_vm15, %v6900_v0, %v6910_v51  ;;  %v1758_v28 = vsel %vm1757_vm12, %v6912_v30, %v6911_v11  ;;  %v1643_v31 = vadd.f32 %v1631_v23, %v1516_v5  ;;  %v1579_v14 = vadd.f32 %v1565_v3, %v1452_v29  ;;  %v6914_v15 = vld [vmem:[#allocation190_spill] sm:$0xff]  ;;  %v6915_v45 = vld [vmem:[#allocation191_spill] sm:$0xff]  ;;  %v6918_v22 = vld [vmem:[#allocation177_spill] sm:$0xff] }
0x1242   :  { %v1633_v39 = vsel %vm1630_vm15, %v6910_v51, %v6913_v2  ;;  %v1885_v19 = vsel %vm1884_vm11, %v6915_v45, %v6914_v15  ;;  %v5535_v13 = vadd.f32 %v1567_v54, %v1454_v33  ;;  %v1644_v0 = vadd.f32 %v1632_v50, %v1517_v7  ;;  %v6916_v30 = vld [vmem:[#allocation163_spill] sm:$0xff]  ;;  %v6917_v10 = vld [vmem:[#allocation162_spill] sm:$0xff]  ;;  %v6919_v61 = vld [vmem:[#allocation176_spill] sm:$0xff] }
0x1243   :  { %v1770_v48 = vadd.f32 %v1758_v28, %v1643_v31  ;;  %vm6490_vm13 = vcmask 277504   ;;  %v1634_v57 = vsel %vm1630_vm15, %v6917_v10, %v6916_v30  ;;  %v1759_v29 = vsel %vm1757_vm12, %v6911_v11, %v6918_v22  ;;  %v6920_v23 = vld [vmem:[#allocation206_spill] sm:$0xff]  ;;  %v6921_v5 = vld [vmem:[#allocation207_spill] sm:$0xff]  ;;  %v6926_v11 = vld [vmem:[#allocation193_spill] sm:$0xff] }
0x1244   :  { %v1760_v49 = vsel %vm1757_vm12, %v6918_v22, %v6919_v61  ;;  %v2012_v33 = vsel %vm2011_vm10, %v6921_v5, %v6920_v23  ;;  %v1645_v26 = vadd.f32 %v1633_v39, %v1518_v41  ;;  %v6922_v3 = vld [vmem:[#allocation166_spill] sm:$0xff]  ;;  %v6923_v2 = vld [vmem:[#allocation167_spill] sm:$0xff]  ;;  %v1886_v7 = vsel %vm1884_vm11, %v6914_v15, %v6926_v11  ;;  %v6927_v31 = vld [vmem:[#allocation192_spill] sm:$0xff] }
0x1245   :  { %v1692_v45 = vsel %vm1630_vm15, %v6923_v2, %v6922_v3  ;;  %v1897_v54 = vadd.f32 %v1885_v19, %v1770_v48  ;;  %v6924_v51 = vld [vmem:[#allocation179_spill] sm:$0xff]  ;;  %v6925_v50 = vld [vmem:[#allocation178_spill] sm:$0xff]  ;;  %v1887_v10 = vsel %vm1884_vm11, %v6926_v11, %v6927_v31  ;;  %v1646_v61 = vadd.f32 %v1634_v57, %v1519_v24  ;;  %v6930_v3 = vld [vmem:[#allocation209_spill] sm:$0xff] }
0x1246   :  { %v1761_v28 = vsel %vm1757_vm12, %v6925_v50, %v6924_v51  ;;  %v6928_v22 = vld [vmem:[#allocation222_spill] sm:$0xff]  ;;  %v6929_v39 = vld [vmem:[#allocation223_spill] sm:$0xff]  ;;  %v1771_v5 = vadd.f32 %v1759_v29, %v1644_v0  ;;  %v1772_v48 = vadd.f32 %v1760_v49, %v1645_v26  ;;  %v1706_v2 = vadd.f32 %v1692_v45, %v1579_v14  ;;  %v6931_v51 = vld [vmem:[#allocation208_spill] sm:$0xff] }
0x1247   :  { %v2139_v41 = vsel %vm6490_vm13, %v6929_v39, %v6928_v22  ;;  %v2024_v19 = vadd.f32 %v2012_v33, %v1897_v54  ;;  %v2013_v50 = vsel %vm2011_vm10, %v6920_v23, %v6930_v3  ;;  %v2014_v15 = vsel %vm2011_vm10, %v6930_v3, %v6931_v51  ;;  %v6932_v30 = vld [vmem:[#allocation239_spill] sm:$0xff]  ;;  %v6935_v57 = vld [vmem:[#allocation194_spill] sm:$0xff]  ;;  %v6936_v29 = vld [vmem:[#allocation225_spill] sm:$0xff] }
0x1248   :  { %v2267_v11 = vsel %vm2266_vm9, %v6933_v38, %v6932_v30  ;;  %v1773_v31 = vadd.f32 %v1761_v28, %v1646_v61  ;;  %v1898_v34 = vadd.f32 %v1886_v7, %v1771_v5  ;;  %v1899_v39 = vadd.f32 %v1887_v10, %v1772_v48  ;;  %v6934_v0 = vld [vmem:[#allocation195_spill] sm:$0xff]  ;;  %v6937_v23 = vld [vmem:[#allocation224_spill] sm:$0xff]  ;;  %v6940_v28 = vld [vmem:[#allocation182_spill] sm:$0xff] }
0x1249   :  { %v2151_v24 = vadd.f32 %v2139_v41, %v2024_v19  ;;  %v1888_v14 = vsel %vm1884_vm11, %v6935_v57, %v6934_v0  ;;  %v2140_v49 = vsel %vm6490_vm13, %v6928_v22, %v6936_v29  ;;  %v2141_v33 = vsel %vm6490_vm13, %v6936_v29, %v6937_v23  ;;  %v6938_v26 = vld [vmem:[#allocation255_spill] sm:$0xff]  ;;  %v6939_v3 = vld [vmem:[#allocation256_spill] sm:$0xff]  ;;  %v6943_v61 = vld [vmem:[#allocation210_spill] sm:$0xff] }
0x124a   :  { %v2394_v38 = vsel %vm2393_vm0, %v6939_v3, %v6938_v26  ;;  %v2025_v45 = vadd.f32 %v2013_v50, %v1898_v34  ;;  %v2026_v54 = vadd.f32 %v2014_v15, %v1899_v39  ;;  %v6941_v7 = vld [vmem:[#allocation183_spill] sm:$0xff]  ;;  %v6944_v5 = vld [vmem:[#allocation242_spill] sm:$0xff]  ;;  %v6945_v19 = vld [vmem:[#allocation241_spill] sm:$0xff]  ;;  %v1900_v34 = vadd.f32 %v1888_v14, %v1773_v31 }
0x124b   :  { %v2279_v51 = vadd.f32 %v2267_v11, %v2151_v24  ;;  %v1819_v10 = vsel %vm1757_vm12, %v6941_v7, %v6940_v28  ;;  %v6942_v41 = vld [vmem:[#allocation211_spill] sm:$0xff]  ;;  %v2268_v48 = vsel %vm2266_vm9, %v6932_v30, %v6944_v5  ;;  %v2269_v57 = vsel %vm2266_vm9, %v6944_v5, %v6945_v19  ;;  %v6947_v23 = vld [vmem:[#allocation226_spill] sm:$0xff]  ;;  %v6948_v7 = vld [vmem:[#allocation257_spill] sm:$0xff] }
0x124c   :  { %v2015_v22 = vsel %vm2011_vm10, %v6943_v61, %v6942_v41  ;;  %v2152_v50 = vadd.f32 %v2140_v49, %v2025_v45  ;;  %v2153_v15 = vadd.f32 %v2141_v33, %v2026_v54  ;;  %v6946_v29 = vld [vmem:[#allocation227_spill] sm:$0xff]  ;;  %v2395_v61 = vsel %vm2393_vm0, %v6938_v26, %v6948_v7  ;;  %v6949_v41 = vld [vmem:[#allocation260_spill] sm:$0xff]  ;;  %v6952_v45 = vld [vmem:[#allocation154_spill] sm:$0xff] }
0x124d   :  { %v2406_v11 = vadd.f32 %v2394_v38, %v2279_v51  ;;  %v2142_v3 = vsel %vm6490_vm13, %v6947_v23, %v6946_v29  ;;  %v2396_v30 = vsel %vm2393_vm0, %v6948_v7, %v6949_v41  ;;  %v2027_v31 = vadd.f32 %v2015_v22, %v1900_v34  ;;  %v6951_v38 = vld [vmem:[#allocation155_spill] sm:$0xff]  ;;  %v6953_v51 = vld [vmem:[#allocation168_spill] sm:$0xff]  ;;  %v6954_v19 = vld [vmem:[#allocation169_spill] sm:$0xff] }
0x124e   :  { %v2280_v14 = vadd.f32 %v2268_v48, %v2152_v50  ;;  %v2281_v49 = vadd.f32 %v2269_v57, %v2153_v15  ;;  %v1568_v54 = vsel %vm1503_vm14, %v6952_v45, %v6951_v38  ;;  %v1694_v23 = vsel %vm1630_vm15, %v6954_v19, %v6953_v51  ;;  %v6955_v29 = vld [vmem:[#allocation244_spill] sm:$0xff]  ;;  %v6956_v0 = vld [vmem:[#allocation243_spill] sm:$0xff] }
0x124f   :  { %v1833_v26 = vadd.f32 %v1819_v10, %v1706_v2  ;;  %v2270_v41 = vsel %vm2266_vm9, %v6956_v0, %v6955_v29  ;;  %v6957_v7 = vld [vmem:[#allocation184_spill] sm:$0xff]  ;;  %v2154_v48 = vadd.f32 %v2142_v3, %v2027_v31  ;;  %v6962_v28 = vld [vmem:[#allocation263_spill] sm:$0xff]  ;;  %vm2200_vm13 = vcmask 154624  }
0x1250   :  { %v2407_v57 = vadd.f32 %v2395_v61, %v2280_v14  ;;  %v2408_v34 = vadd.f32 %v2396_v30, %v2281_v49  ;;  %v1458_v61 = vadd.f32 %v5518_v53, %v5490_v55  ;;  %v1583_v30 = vadd.f32 %v1568_v54, %v5498_v21  ;;  %v6965_v14 = vld [vmem:[#allocation214_spill] sm:$0xff]  ;;  %v6966_v49 = vld [vmem:[#allocation215_spill] sm:$0xff]  ;;  %v6972_v21 = vld [vmem:[#allocation157_spill] sm:$0xff] }
0x1251   :  { %v2282_v29 = vadd.f32 %v2270_v41, %v2154_v48  ;;  %v1708_v31 = vadd.f32 %v1694_v23, %v5535_v13  ;;  %v6969_v48 = vld [vmem:[#allocation200_spill] sm:$0xff]  ;;  %v6974_v23 = vld [vmem:[#allocation230_spill] sm:$0xff] }
0x1252   :  { %v2507_v39 = vpop.permute.xlu1 %2506  ;;  %v2505_v24 = vpop.permute.xlu0 %2504  ;;  %v6973_v53 = vld [vmem:[#allocation156_spill] sm:$0xff] }
0x1253   :  { %v2521_v5 = vsel %vm2520_vm8, %v2505_v24, %v2507_v39  ;;  %v6958_v24 = vld [vmem:[#allocation185_spill] sm:$0xff]  ;;  %v1570_v13 = vsel %vm1503_vm14, %v6973_v53, %v6972_v21 }
0x1254   :  { %v5607_v33 = vadd.f32 %v2521_v5, %v2406_v11  ;;  %v1821_v22 = vsel %vm1757_vm12, %v6958_v24, %v6957_v7  ;;  %v6959_v11 = vld [vmem:[#allocation198_spill] sm:$0xff]  ;;  %v6960_v5 = vld [vmem:[#allocation199_spill] sm:$0xff] }
0x1255   :  { %v1946_v45 = vsel %vm1884_vm11, %v6960_v5, %v6959_v11  ;;  %v6968_v5 = vld [vmem:[#allocation170_spill] sm:$0xff]  ;;  %v1835_v54 = vadd.f32 %v1821_v22, %v1708_v31  ;;  %v6981_v31 = vld [vmem:[#allocation251_spill] sm:$0xff] }
0x1256   :  { %6950 = vst [vmem:[#allocation275_spill] sm:$0xff] %v5607_v33  ;;  %v2511_v50 = vpop.permute.xlu1 %2510  ;;  %v2509_v15 = vpop.permute.xlu0 %2508  ;;  %v6961_v33 = vld [vmem:[#allocation262_spill] sm:$0xff]  ;;  %v1960_v41 = vadd.f32 %v1946_v45, %v1833_v26  ;;  %v6976_v45 = vld [vmem:[#allocation187_spill] sm:$0xff] }
0x1257   :  { %v2397_v2 = vsel %vm2393_vm0, %v6962_v28, %v6961_v33  ;;  %v2522_v10 = vsel %vm2520_vm8, %v2507_v39, %v2509_v15  ;;  %v2523_v0 = vsel %vm2520_vm8, %v2509_v15, %v2511_v50  ;;  %v2073_v28 = vsel %vm2011_vm10, %v6966_v49, %v6965_v14  ;;  %v6967_v39 = vld [vmem:[#allocation171_spill] sm:$0xff] }
0x1258   :  { %v5629_v7 = vadd.f32 %v2522_v10, %v2407_v57  ;;  %v5631_v3 = vadd.f32 %v2523_v0, %v2408_v34  ;;  %v1695_v50 = vsel %vm1630_vm15, %v6968_v5, %v6967_v39  ;;  %v6970_v57 = vld [vmem:[#allocation201_spill] sm:$0xff]  ;;  %v2409_v15 = vadd.f32 %v2397_v2, %v2282_v29  ;;  %v6975_v0 = vld [vmem:[#allocation231_spill] sm:$0xff]  ;;  %v6977_v5 = vld [vmem:[#allocation186_spill] sm:$0xff] }
0x1259   :  { %v1948_v34 = vsel %vm1884_vm11, %v6970_v57, %v6969_v48  ;;  %v2201_v49 = vsel %vm2200_vm13, %v6975_v0, %v6974_v23  ;;  %v2087_v29 = vadd.f32 %v2073_v28, %v1960_v41  ;;  %v6978_v2 = vld [vmem:[#allocation216_spill] sm:$0xff]  ;;  %v1710_v48 = vadd.f32 %v1695_v50, %v1583_v30  ;;  %v6982_v11 = vld [vmem:[#allocation247_spill] sm:$0xff]  ;;  %v6983_v57 = vld [vmem:[#allocation173_spill] sm:$0xff] }
0x125a   :  { %6963 = vst [vmem:[#allocation9_spill] sm:$0xff] %v5629_v7  ;;  %6964 = vst [vmem:[#allocation11_spill] sm:$0xff] %v5631_v3  ;;  %v5646_v10 = vpop.permute.xlu1 %2514  ;;  %v2513_v55 = vpop.permute.xlu0 %2512  ;;  %v1822_v3 = vsel %vm1757_vm12, %v6977_v5, %v6976_v45  ;;  %v6979_v7 = vld [vmem:[#allocation217_spill] sm:$0xff]  ;;  %v1962_v22 = vadd.f32 %v1948_v34, %v1835_v54  ;;  %v2328_v0 = vsel %vm2266_vm9, %v6982_v11, %v6981_v31  ;;  %v6985_v24 = vld [vmem:[#allocation203_spill] sm:$0xff] }
0x125b   :  { %6971 = vst [vmem:[#allocation10_spill] sm:$0xff] %v5646_v10  ;;  %v2524_v26 = vsel %vm2520_vm8, %v2513_v55, %v5646_v10  ;;  %v2075_v33 = vsel %vm2011_vm10, %v6979_v7, %v6978_v2  ;;  %v1585_v23 = vadd.f32 %v1570_v13, %v1458_v61  ;;  %v6984_v55 = vld [vmem:[#allocation172_spill] sm:$0xff]  ;;  %v6986_v5 = vld [vmem:[#allocation202_spill] sm:$0xff]  ;;  %v2215_v41 = vadd.f32 %v2201_v49, %v2087_v29  ;;  %v6990_v11 = vld [vmem:[#allocation233_spill] sm:$0xff] }
0x125c   :  { %v5662_v14 = vadd.f32 %v2524_v26, %v2409_v15  ;;  %v1697_v10 = vsel %vm1630_vm15, %v6984_v55, %v6983_v57  ;;  %v1949_v28 = vsel %vm1884_vm11, %v6986_v5, %v6985_v24  ;;  %v1837_v15 = vadd.f32 %v1822_v3, %v1710_v48  ;;  %v6987_v26 = vld [vmem:[#allocation189_spill] sm:$0xff]  ;;  %v6988_v30 = vld [vmem:[#allocation188_spill] sm:$0xff]  ;;  %v6991_v13 = vld [vmem:[#allocation219_spill] sm:$0xff] }
0x125d   :  { %v1824_v50 = vsel %vm1757_vm12, %v6988_v30, %v6987_v26  ;;  %v2089_v34 = vadd.f32 %v2075_v33, %v1962_v22  ;;  %v6989_v54 = vld [vmem:[#allocation232_spill] sm:$0xff]  ;;  %v2342_v7 = vadd.f32 %v2328_v0, %v2215_v41  ;;  %v1712_v29 = vadd.f32 %v1697_v10, %v1585_v23  ;;  %v6993_v48 = vld [vmem:[#allocation205_spill] sm:$0xff]  ;;  %v6998_v57 = vld [vmem:[#allocation234_spill] sm:$0xff] }
0x125e   :  { %6980 = vst [vmem:[#allocation12_spill] sm:$0xff] %v5662_v14  ;;  %v2620_v45 = vpop.permute.xlu1 %2619  ;;  %v2618_v2 = vpop.permute.xlu0 %2617  ;;  %v2203_v61 = vsel %vm2200_vm13, %v6990_v11, %v6989_v54  ;;  %v6992_v14 = vld [vmem:[#allocation218_spill] sm:$0xff]  ;;  %v1964_v3 = vadd.f32 %v1949_v28, %v1837_v15  ;;  %v6994_v24 = vld [vmem:[#allocation204_spill] sm:$0xff]  ;;  %v6997_v11 = vld [vmem:[#allocation235_spill] sm:$0xff] }
0x125f   :  { %v2076_v31 = vsel %vm2011_vm10, %v6992_v14, %v6991_v13  ;;  %v2623_v5 = vmul.f32 %v2618_v2, %v6772_v1  ;;  %v2624_v49 = vmul.f32 %v2618_v2, %v5070_v20  ;;  %v1951_v26 = vsel %vm1884_vm11, %v6994_v24, %v6993_v48  ;;  %v6995_v33 = vld [vmem:[#allocation252_spill] sm:$0xff]  ;;  %v6999_v0 = vld [vmem:[#allocation266_spill] sm:$0xff]  ;;  %v7005_v48 = vld [vmem:[#allocation249_spill] sm:$0xff] }
0x1260   :  { %v6996_v22 = vld [vmem:[#allocation248_spill] sm:$0xff]  ;;  %v2217_v54 = vadd.f32 %v2203_v61, %v2089_v34  ;;  %v2204_v14 = vsel %vm2200_vm13, %v6998_v57, %v6997_v11  ;;  %v2469_v41 = vadd.f32 %v6999_v0, %v2342_v7  ;;  %v1839_v28 = vadd.f32 %v1824_v50, %v1712_v29  ;;  %v7002_v0 = vld [vmem:[#allocation221_spill] sm:$0xff] }
0x1261   :  { %v2330_v30 = vsel %vm2266_vm9, %v6996_v22, %v6995_v33  ;;  %2641 = vrot.lane.b32.xlu1 %v2624_v49, %s3346_s12  ;;  %2639 = vrot.lane.b32.xlu0 %v2623_v5, %s3346_s12  ;;  %v2091_v15 = vadd.f32 %v2076_v31, %v1964_v3  ;;  %v2625_v34 = vmul.f32 %v2618_v2, %v6782_v25  ;;  %v7003_v49 = vld [vmem:[#allocation220_spill] sm:$0xff]  ;;  %v7004_v22 = vld [vmem:[#allocation253_spill] sm:$0xff]  ;;  %v7009_v3 = vld [vmem:[#allocation278_spill] sm:$0xff] }
0x1262   :  { %v5696_v10 = vpop.permute.xlu1 %2568  ;;  %v2567_v23 = vpop.permute.xlu0 %2566  ;;  %v2344_v33 = vadd.f32 %v2330_v30, %v2217_v54  ;;  %v2626_v61 = vmul.f32 %v2618_v2, %v6781_v18  ;;  %v1966_v7 = vadd.f32 %v1951_v26, %v1839_v28  ;;  %v2078_v5 = vsel %vm2011_vm10, %v7003_v49, %v7002_v0  ;;  %v7006_v50 = vld [vmem:[#allocation269_spill] sm:$0xff]  ;;  %v18_v28 = vld [vmem:[%s6304_s2 + $0x20] sm:$0xff] }
0x1263   :  { %7000 = vst [vmem:[#allocation14_spill] sm:$0xff] %v5696_v10  ;;  %v2582_v13 = vsel %vm2520_vm8, %v2567_v23, %v5696_v10  ;;  %v2219_v11 = vadd.f32 %v2204_v14, %v2091_v15  ;;  %v2331_v31 = vsel %vm2266_vm9, %v7005_v48, %v7004_v22  ;;  %v2627_v30 = vmul.f32 %v2620_v45, %v5126_v6  ;;  %v7010_v14 = vld [vmem:[#allocation237_spill] sm:$0xff]  ;;  %v7013_v10 = vld [vmem:[#allocation254_spill] sm:$0xff] }
0x1264   :  { %v5702_v57 = vadd.f32 %v2582_v13, %v2469_v41  ;;  %v2471_v29 = vadd.f32 %v7006_v50, %v2344_v33  ;;  %v2628_v54 = vmul.f32 %v2620_v45, %v5121_v16  ;;  %v3325_v13 = vld [vmem:[%s6303_s0 + $0x30] sm:$0xff]  ;;  %v2093_v15 = vadd.f32 %v2078_v5, %v1966_v7  ;;  %v3326_v50 = vld [vmem:[%s6303_s0 + $0x38] sm:$0xff]  ;;  %v7014_v22 = vld [vmem:[#allocation250_spill] sm:$0xff] }
0x1265   :  { %2645 = vrot.lane.b32.xlu1 %v2626_v61, %s3346_s12  ;;  %2643 = vrot.lane.b32.xlu0 %v2625_v34, %s3346_s12  ;;  %v32_v48 = vmul.f32 %v3325_v13, %v7009_v3  ;;  %v7011_v33 = vld [vmem:[#allocation236_spill] sm:$0xff]  ;;  %v2346_v34 = vadd.f32 %v2331_v31, %v2219_v11 }
0x1266   :  { %7001 = vst [vmem:[#allocation15_spill] sm:$0xff] %v5702_v57  ;;  %v5715_v2 = vpop.permute.xlu1 %2572  ;;  %v5717_v26 = vpop.permute.xlu0 %2570  ;;  %v2206_v41 = vsel %vm2200_vm13, %v7011_v33, %v7010_v14  ;;  %v33_v57 = vmul.f32 %v3326_v50, %v7009_v3  ;;  %v2333_v14 = vsel %vm2266_vm9, %v7014_v22, %v7013_v10  ;;  %v7015_v33 = vld [vmem:[#allocation270_spill] sm:$0xff]  ;;  %v2630_v50 = vmul.f32 %v2620_v45, %v5151_v12 }
0x1267   :  { %7007 = vst [vmem:[#allocation276_spill] sm:$0xff] %v5715_v2  ;;  %7008 = vst [vmem:[#allocation277_spill] sm:$0xff] %v5717_v26  ;;  %v2584_v23 = vsel %vm2520_vm8, %v5717_v26, %v5715_v2  ;;  %v19_v2 = vld [vmem:[%s6304_s2 + $0x28] sm:$0xff]  ;;  %v2221_v26 = vadd.f32 %v2206_v41, %v2093_v15  ;;  %v2473_v7 = vadd.f32 %v7015_v33, %v2346_v34  ;;  %v7017_v12 = vld [vmem:[#allocation2_spill] sm:$0xff] }
0x1268   :  { %v5732_v61 = vadd.f32 %v2584_v23, %v2471_v29  ;;  %v38_v31 = vadd.f32 %v32_v48, %v18_v28  ;;  %v2629_v23 = vmul.f32 %v2620_v45, %v5156_v32  ;;  %v39_v41 = vadd.f32 %v33_v57, %v19_v2  ;;  %v7016_v33 = vld [vmem:[#allocation3_spill] sm:$0xff]  ;;  %v7018_v57 = vld [vmem:[#allocation273_spill] sm:$0xff] }
0x1269   :  { %2649 = vrot.lane.b32.xlu1 %v2628_v54, %s3346_s12  ;;  %2647 = vrot.lane.b32.xlu0 %v2627_v30, %s3346_s12  ;;  %v2348_v3 = vadd.f32 %v2333_v14, %v2221_v26  ;;  %v109_v54 = vsel %vm104_vm1, %v3623_v36, %v7016_v33  ;;  %v3327_v30 = vld [vmem:[%s6303_s0 + $0x18] sm:$0xff]  ;;  %v3328_v26 = vld [vmem:[%s6303_s0 + $0x8] sm:$0xff]  ;;  %v110_v45 = vsel %vm104_vm1, %v7016_v33, %v7017_v12 }
0x126a   :  { %7012 = vst [vmem:[#allocation17_spill] sm:$0xff] %v5732_v61  ;;  %v5747_v11 = vpop.permute.xlu1 %2576  ;;  %v2575_v5 = vpop.permute.xlu0 %2574  ;;  %v56_v48 = vmul.f32 %v3327_v30, %v3487_v17  ;;  %v54_v32 = vmul.f32 %v3328_v26, %v3487_v17  ;;  %v167_v36 = vsel %vm104_vm1, %v3631_v40, %v3637_v43  ;;  %v3329_v17 = vld [vmem:[%s6303_s0 + $0x40] sm:$0xff]  ;;  %v58_v34 = vmul.f32 %v3325_v13, %v3515_v27 }
0x126b   :  { %v2585_v29 = vsel %vm2520_vm8, %v2575_v5, %v5747_v11  ;;  %v2475_v2 = vadd.f32 %v7018_v57, %v2348_v3  ;;  %v60_v15 = vmul.f32 %v3329_v17, %v3515_v27  ;;  %v170_v40 = vsel %vm104_vm1, %v3639_v44, %v3645_v47  ;;  %v7019_v5 = vld [vmem:[#allocation5_spill] sm:$0xff]  ;;  %v7020_v3 = vld [vmem:[#allocation4_spill] sm:$0xff]  ;;  %v7025_v17 = vld [vmem:[#allocation19_spill] sm:$0xff] }
0x126c   :  { %v5753_v61 = vadd.f32 %v2585_v29, %v2473_v7  ;;  %v121_v7 = vadd.f32 %v109_v54, %v38_v31  ;;  %v236_v29 = vsel %vm231_vm2, %v3655_v52, %v7019_v5  ;;  %v122_v27 = vadd.f32 %v110_v45, %v39_v41  ;;  %v7022_v54 = vld [vmem:[#allocation7_spill] sm:$0xff] }
0x126d   :  { %2653 = vrot.lane.b32.xlu1 %v2630_v50, %s3346_s12  ;;  %2651 = vrot.lane.b32.xlu0 %v2629_v23, %s3346_s12  ;;  %v237_v23 = vsel %vm231_vm2, %v7019_v5, %v7020_v3  ;;  %v183_v13 = vadd.f32 %v3635_v42, %v56_v48  ;;  %v181_v33 = vadd.f32 %v167_v36, %v54_v32  ;;  %v7023_v32 = vld [vmem:[#allocation6_spill] sm:$0xff]  ;;  %v7031_v3 = vld [vmem:[#allocation28_spill] sm:$0xff]  ;;  %vm7053_vm1 = vcmask 687104  }
0x126e   :  { %v5775_v14 = vpop.permute.xlu1 %2580  ;;  %v5777_v28 = vpop.permute.xlu0 %2578  ;;  %v187_v44 = vadd.f32 %v3643_v46, %v60_v15  ;;  %v185_v47 = vadd.f32 %v170_v40, %v58_v34  ;;  %v294_v31 = vsel %vm231_vm2, %v3663_v56, %v3669_v59  ;;  %v297_v52 = vsel %vm231_vm2, %v3671_v60, %v3677_v63  ;;  %v7026_v34 = vld [vmem:[#allocation21_spill] sm:$0xff]  ;;  %v7030_v5 = vld [vmem:[#allocation22_spill] sm:$0xff] }
0x126f   :  { %v2587_v43 = vsel %vm2520_vm8, %v5777_v28, %v5775_v14  ;;  %v363_v30 = vsel %vm358_vm3, %v3687_v4, %v7022_v54  ;;  %v248_v42 = vadd.f32 %v236_v29, %v121_v7  ;;  %v249_v48 = vadd.f32 %v237_v23, %v122_v27  ;;  %v7029_v7 = vld [vmem:[#allocation25_spill] sm:$0xff]  ;;  %v7032_v23 = vld [vmem:[#allocation27_spill] sm:$0xff] }
0x1270   :  { %v5796_v50 = vadd.f32 %v2587_v43, %v2475_v2  ;;  %v310_v46 = vadd.f32 %v3667_v58, %v183_v13  ;;  %v364_v12 = vsel %vm358_vm3, %v7022_v54, %v7023_v32  ;;  %v422_v56 = vsel %vm420_vm4, %v3695_v8, %v6774_v35  ;;  %v7024_v2 = vld [vmem:[#allocation20_spill] sm:$0xff] }
0x1271   :  { %v425_v59 = vsel %vm420_vm4, %v6775_v37, %v6778_v9  ;;  %v308_v4 = vadd.f32 %v294_v31, %v181_v33  ;;  %v314_v45 = vadd.f32 %v3675_v62, %v187_v44  ;;  %v312_v58 = vadd.f32 %v297_v52, %v185_v47  ;;  %v7027_v62 = vld [vmem:[#allocation8_spill] sm:$0xff]  ;;  %v7028_v9 = vld [vmem:[#allocation13_spill] sm:$0xff]  ;;  %v7034_v52 = vld [vmem:[#allocation35_spill] sm:$0xff] }
0x1272   :  { %7021 = vst [vmem:[#allocation16_spill] sm:$0xff] %v5796_v50  ;;  %v5809_v26 = vpop.permute.xlu1 %2745  ;;  %v2744_v41 = vpop.permute.xlu0 %2743  ;;  %v375_v36 = vadd.f32 %v363_v30, %v248_v42  ;;  %v376_v57 = vadd.f32 %v364_v12, %v249_v48  ;;  %v491_v15 = vsel %vm486_vm5, %v7025_v17, %v7024_v2  ;;  %v492_v8 = vsel %vm486_vm5, %v7024_v2, %v7026_v34  ;;  %v7033_v31 = vld [vmem:[#allocation36_spill] sm:$0xff]  ;;  %v7035_v30 = vld [vmem:[#allocation37_spill] sm:$0xff]  ;;  %v7043_v2 = vld [vmem:[#allocation51_spill] sm:$0xff] }
0x1273   :  { %v2749_v60 = vmul.f32 %v2744_v41, %v6772_v1  ;;  %v2750_v63 = vmul.f32 %v2744_v41, %v5070_v20  ;;  %v438_v35 = vadd.f32 %v7027_v62, %v310_v46  ;;  %v436_v37 = vadd.f32 %v422_v56, %v308_v4  ;;  %v7036_v48 = vld [vmem:[#allocation41_spill] sm:$0xff]  ;;  %v7037_v46 = vld [vmem:[#allocation38_spill] sm:$0xff]  ;;  %v7038_v56 = vld [vmem:[#allocation24_spill] sm:$0xff] }
0x1274   :  { %v442_v40 = vadd.f32 %v7028_v9, %v314_v45  ;;  %v440_v43 = vadd.f32 %v425_v59, %v312_v58  ;;  %v549_v29 = vsel %vm486_vm5, %v7030_v5, %v7029_v7  ;;  %v552_v27 = vsel %vm486_vm5, %v7032_v23, %v7031_v3  ;;  %v7045_v62 = vld [vmem:[#allocation40_spill] sm:$0xff]  ;;  %v7046_v9 = vld [vmem:[#allocation45_spill] sm:$0xff]  ;;  %v7048_v7 = vld [vmem:[#allocation54_spill] sm:$0xff] }
0x1275   :  { %2767 = vrot.lane.b32.xlu1 %v2750_v63, %s3347_s13  ;;  %2765 = vrot.lane.b32.xlu0 %v2749_v60, %s3347_s13  ;;  %v2751_v13 = vmul.f32 %v2744_v41, %v6782_v25  ;;  %v2752_v33 = vmul.f32 %v2744_v41, %v6781_v18  ;;  %v503_v44 = vadd.f32 %v491_v15, %v375_v36  ;;  %v7039_v63 = vld [vmem:[#allocation29_spill] sm:$0xff]  ;;  %v7040_v36 = vld [vmem:[#allocation44_spill] sm:$0xff]  ;;  %v7050_v3 = vld [vmem:[#allocation59_spill] sm:$0xff] }
0x1276   :  { %v5832_v1 = vpop.permute.xlu1 %2702  ;;  %v5834_v20 = vpop.permute.xlu0 %2700  ;;  %v504_v47 = vadd.f32 %v492_v8, %v376_v57  ;;  %v618_v54 = vsel %vm613_vm6, %v7034_v52, %v7033_v31  ;;  %v619_v42 = vsel %vm613_vm6, %v7033_v31, %v7035_v30  ;;  %v676_v32 = vsel %vm613_vm6, %v7037_v46, %v7036_v48  ;;  %v7044_v15 = vld [vmem:[#allocation53_spill] sm:$0xff]  ;;  %v7054_v30 = vld [vmem:[#allocation56_spill] sm:$0xff]  ;;  %vm7056_vm4 = vmmov %vm7053_vm1 }
0x1277   :  { %v2753_v12 = vmul.f32 %v5809_v26, %v5126_v6  ;;  %v2754_v18 = vmul.f32 %v5809_v26, %v5121_v16  ;;  %v565_v59 = vadd.f32 %v7038_v56, %v438_v35  ;;  %v563_v60 = vadd.f32 %v549_v29, %v436_v37  ;;  %v7041_v6 = vld [vmem:[#allocation43_spill] sm:$0xff]  ;;  %v7042_v16 = vld [vmem:[#allocation52_spill] sm:$0xff]  ;;  %v7055_v48 = vld [vmem:[#allocation69_spill] sm:$0xff] }
0x1278   :  { %v569_v4 = vadd.f32 %v7039_v63, %v442_v40  ;;  %v567_v45 = vadd.f32 %v552_v27, %v440_v43  ;;  %v630_v58 = vadd.f32 %v618_v54, %v503_v44  ;;  %v679_v57 = vsel %vm613_vm6, %v7041_v6, %v7040_v36  ;;  %v7047_v43 = vld [vmem:[#allocation57_spill] sm:$0xff]  ;;  %v7049_v29 = vld [vmem:[#allocation60_spill] sm:$0xff]  ;;  %v7058_v56 = vld [vmem:[#allocation70_spill] sm:$0xff] }
0x1279   :  { %2771 = vrot.lane.b32.xlu1 %v2752_v33, %s3347_s13  ;;  %2769 = vrot.lane.b32.xlu0 %v2751_v13, %s3347_s13  ;;  %v745_v17 = vsel %vm740_vm7, %v7043_v2, %v7042_v16  ;;  %v746_v34 = vsel %vm740_vm7, %v7042_v16, %v7044_v15  ;;  %v631_v8 = vadd.f32 %v619_v42, %v504_v47  ;;  %v7051_v27 = vld [vmem:[#allocation68_spill] sm:$0xff]  ;;  %v7052_v13 = vld [vmem:[#allocation67_spill] sm:$0xff]  ;;  %vm7059_vm5 = vmmov %vm7053_vm1 }
0x127a   :  { %v5861_v25 = vpop.permute.xlu1 %2706  ;;  %v5863_v41 = vpop.permute.xlu0 %2704  ;;  %v692_v35 = vadd.f32 %v7045_v62, %v565_v59  ;;  %v690_v37 = vadd.f32 %v676_v32, %v563_v60  ;;  %v696_v40 = vadd.f32 %v7046_v9, %v569_v4  ;;  %v803_v5 = vsel %vm740_vm7, %v7048_v7, %v7047_v43  ;;  %v7057_v32 = vld [vmem:[#allocation73_spill] sm:$0xff]  ;;  %v5910_v60 = vld [vmem:[%s6303_s0 + $0x48] sm:$0xff]  ;;  %vm7063_vm6 = vmmov %vm7053_vm1 }
0x127b   :  { %v806_v23 = vsel %vm740_vm7, %v7050_v3, %v7049_v29  ;;  %v872_v33 = vsel %vm7053_vm1, %v7052_v13, %v7051_v27  ;;  %v694_v31 = vadd.f32 %v679_v57, %v567_v45  ;;  %v757_v52 = vadd.f32 %v745_v17, %v630_v58  ;;  %v7060_v45 = vld [vmem:[#allocation61_spill] sm:$0xff]  ;;  %v7061_v57 = vld [vmem:[#allocation76_spill] sm:$0xff]  ;;  %v7062_v16 = vld [vmem:[#allocation75_spill] sm:$0xff] }
0x127c   :  { %v758_v54 = vadd.f32 %v746_v34, %v631_v8  ;;  %v819_v42 = vadd.f32 %v7054_v30, %v692_v35  ;;  %v873_v46 = vsel %vm7056_vm4, %v7051_v27, %v7055_v48  ;;  %v930_v59 = vsel %vm7059_vm5, %v7058_v56, %v7057_v32  ;;  %v7064_v17 = vld [vmem:[#allocation84_spill] sm:$0xff]  ;;  %v7065_v15 = vld [vmem:[#allocation83_spill] sm:$0xff]  ;;  %v7067_v8 = vld [vmem:[#allocation85_spill] sm:$0xff] }
0x127d   :  { %2775 = vrot.lane.b32.xlu1 %v2754_v18, %s3347_s13  ;;  %2773 = vrot.lane.b32.xlu0 %v2753_v12, %s3347_s13  ;;  %v5903_v12 = vld [vmem:[%s6303_s0 + $0x40] sm:$0xff]  ;;  %v2756_v63 = vmul.f32 %v5910_v60, %v5809_v26  ;;  %v817_v4 = vadd.f32 %v803_v5, %v690_v37  ;;  %v823_v58 = vadd.f32 %v7060_v45, %v696_v40  ;;  %vm7066_vm7 = vcmask 670720   ;;  %v7069_v9 = vld [vmem:[#allocation72_spill] sm:$0xff]  ;;  %v7070_v7 = vld [vmem:[#allocation89_spill] sm:$0xff] }
0x127e   :  { %v5889_v44 = vpop.permute.xlu1 %2710  ;;  %v5891_v47 = vpop.permute.xlu0 %2708  ;;  %v2755_v18 = vmul.f32 %v5903_v12, %v5809_v26  ;;  %v821_v36 = vadd.f32 %v806_v23, %v694_v31  ;;  %v884_v6 = vadd.f32 %v872_v33, %v757_v52  ;;  %v933_v2 = vsel %vm7063_vm6, %v7062_v16, %v7061_v57  ;;  %vm7068_vm1 = vmmov %vm7066_vm7  ;;  %v7071_v5 = vld [vmem:[#allocation86_spill] sm:$0xff]  ;;  %v7073_v3 = vld [vmem:[#allocation77_spill] sm:$0xff] }
0x127f   :  { %v999_v34 = vsel %vm7066_vm7, %v7065_v15, %v7064_v17  ;;  %v1000_v62 = vsel %vm7068_vm1, %v7064_v17, %v7067_v8  ;;  %v885_v37 = vadd.f32 %v873_v46, %v758_v54  ;;  %v946_v40 = vadd.f32 %v7069_v9, %v819_v42  ;;  %vm7072_vm4 = vmmov %vm7068_vm1  ;;  %v7074_v27 = vld [vmem:[#allocation92_spill] sm:$0xff]  ;;  %v7075_v13 = vld [vmem:[#allocation91_spill] sm:$0xff] }
0x1280   :  { %v944_v43 = vadd.f32 %v930_v59, %v817_v4  ;;  %v1057_v29 = vsel %vm7072_vm4, %v7071_v5, %v7070_v7  ;;  %v950_v23 = vadd.f32 %v7073_v3, %v823_v58  ;;  %vm7076_vm5 = vmmov %vm7068_vm1  ;;  %v7077_v31 = vld [vmem:[#allocation100_spill] sm:$0xff]  ;;  %v7078_v52 = vld [vmem:[#allocation99_spill] sm:$0xff]  ;;  %vm7079_vm6 = vcmask 654336  }
0x1281   :  { %2779 = vrot.lane.b32.xlu1 %v2756_v63, %s3347_s13  ;;  %2777 = vrot.lane.b32.xlu0 %v2755_v18, %s3347_s13  ;;  %v1060_v33 = vsel %vm7076_vm5, %v7075_v13, %v7074_v27  ;;  %v1126_v30 = vsel %vm7079_vm6, %v7078_v52, %v7077_v31  ;;  %v7080_v48 = vld [vmem:[#allocation101_spill] sm:$0xff]  ;;  %vm7081_vm7 = vmmov %vm7079_vm6  ;;  %v948_v42 = vadd.f32 %v933_v2, %v821_v36  ;;  %v7082_v56 = vld [vmem:[#allocation88_spill] sm:$0xff]  ;;  %vm7092_vm5 = vcmask 637952  }
0x1282   :  { %v5926_v26 = vpop.permute.xlu1 %2714  ;;  %v5928_v35 = vpop.permute.xlu0 %2712  ;;  %v1127_v54 = vsel %vm7081_vm7, %v7077_v31, %v7080_v48  ;;  %v1011_v46 = vadd.f32 %v999_v34, %v884_v6  ;;  %v1012_v32 = vadd.f32 %v1000_v62, %v885_v37  ;;  %v1073_v59 = vadd.f32 %v7082_v56, %v946_v40  ;;  %v7083_v63 = vld [vmem:[#allocation93_spill] sm:$0xff]  ;;  %v7085_v58 = vld [vmem:[#allocation102_spill] sm:$0xff]  ;;  %vm7086_vm1 = vmmov %vm7079_vm6 }
0x1283   :  { %v1071_v18 = vadd.f32 %v1057_v29, %v944_v43  ;;  %v1077_v4 = vadd.f32 %v7083_v63, %v950_v23  ;;  %v7084_v45 = vld [vmem:[#allocation105_spill] sm:$0xff]  ;;  %v7087_v16 = vld [vmem:[#allocation108_spill] sm:$0xff]  ;;  %v7088_v17 = vld [vmem:[#allocation107_spill] sm:$0xff]  ;;  %v1075_v7 = vadd.f32 %v1060_v33, %v948_v42  ;;  %vm7097_vm7 = vcmask 515072  }
0x1284   :  { %v1184_v57 = vsel %vm7086_vm1, %v7085_v58, %v7084_v45  ;;  %vm7089_vm4 = vmmov %vm7086_vm1  ;;  %v1138_v36 = vadd.f32 %v1126_v30, %v1011_v46  ;;  %v1139_v6 = vadd.f32 %v1127_v54, %v1012_v32  ;;  %v7090_v2 = vld [vmem:[#allocation116_spill] sm:$0xff]  ;;  %v7091_v34 = vld [vmem:[#allocation115_spill] sm:$0xff] }
0x1285   :  { %v1187_v15 = vsel %vm7089_vm4, %v7088_v17, %v7087_v16  ;;  %v1253_v62 = vsel %vm7092_vm5, %v7091_v34, %v7090_v2  ;;  %v7093_v37 = vld [vmem:[#allocation117_spill] sm:$0xff]  ;;  %vm7094_vm6 = vmmov %vm7092_vm5  ;;  %v7096_v5 = vld [vmem:[#allocation118_spill] sm:$0xff]  ;;  %v1198_v52 = vadd.f32 %v1184_v57, %v1071_v18  ;;  %vm7105_vm4 = vcmask 498688  }
0x1286   :  { %v5952_v8 = vpop.permute.xlu1 %2871  ;;  %v2870_v9 = vpop.permute.xlu0 %2869  ;;  %v1254_v40 = vsel %vm7094_vm6, %v7090_v2, %v7093_v37  ;;  %v7095_v43 = vld [vmem:[#allocation121_spill] sm:$0xff]  ;;  %v5966_v3 = vld [vmem:[%s6303_s0 + $0x8] sm:$0xff]  ;;  %v5972_v27 = vld [vmem:[%s6303_s0 + $0x10] sm:$0xff]  ;;  %v1202_v54 = vadd.f32 %v1187_v15, %v1075_v7  ;;  %v1265_v42 = vadd.f32 %v1253_v62, %v1138_v36 }
0x1287   :  { %v1312_v29 = vsel %vm7097_vm7, %v7096_v5, %v7095_v43  ;;  %v2875_v23 = vmul.f32 %v5966_v3, %v2870_v9  ;;  %v2876_v13 = vmul.f32 %v5972_v27, %v2870_v9  ;;  %v7098_v33 = vld [vmem:[#allocation104_spill] sm:$0xff]  ;;  %v7099_v30 = vld [vmem:[#allocation109_spill] sm:$0xff]  ;;  %v7101_v32 = vld [vmem:[#allocation123_spill] sm:$0xff]  ;;  %v1266_v18 = vadd.f32 %v1254_v40, %v1139_v6 }
0x1288   :  { %v1200_v31 = vadd.f32 %v7098_v33, %v1073_v59  ;;  %v1204_v48 = vadd.f32 %v7099_v30, %v1077_v4  ;;  %v7100_v46 = vld [vmem:[#allocation124_spill] sm:$0xff]  ;;  %vm7102_vm1 = vmmov %vm7097_vm7  ;;  %v7104_v45 = vld [vmem:[#allocation131_spill] sm:$0xff]  ;;  %v1326_v17 = vadd.f32 %v1312_v29, %v1198_v52 }
0x1289   :  { %v1315_v56 = vsel %vm7102_vm1, %v7101_v32, %v7100_v46  ;;  %v7103_v63 = vld [vmem:[#allocation132_spill] sm:$0xff]  ;;  %2893 = vrot.lane.b32.xlu1 %v2876_v13, %s3406_s27  ;;  %2891 = vrot.lane.b32.xlu0 %v2875_v23, %s3406_s27  ;;  %v7107_v15 = vld [vmem:[#allocation125_spill] sm:$0xff]  ;;  %vm7109_vm5 = vmmov %vm7105_vm4 }
0x128a   :  { %v1381_v58 = vsel %vm7105_vm4, %v7104_v45, %v7103_v63  ;;  %v5985_v16 = vpop.permute.xlu1 %2828  ;;  %v5987_v59 = vpop.permute.xlu0 %2826  ;;  %v7106_v4 = vld [vmem:[#allocation120_spill] sm:$0xff]  ;;  %v1332_v7 = vadd.f32 %v7107_v15, %v1204_v48  ;;  %v7108_v36 = vld [vmem:[#allocation133_spill] sm:$0xff]  ;;  %v7111_v62 = vld [vmem:[#allocation134_spill] sm:$0xff]  ;;  %v1330_v29 = vadd.f32 %v1315_v56, %v1202_v54 }
0x128b   :  { %v1328_v57 = vadd.f32 %v7106_v4, %v1200_v31  ;;  %v1382_v2 = vsel %vm7109_vm5, %v7103_v63, %v7108_v36  ;;  %v7110_v34 = vld [vmem:[#allocation137_spill] sm:$0xff]  ;;  %vm7112_vm6 = vmmov %vm7105_vm4  ;;  %v6006_v40 = vld [vmem:[%s6303_s0 + $0x20] sm:$0xff]  ;;  %v1393_v23 = vadd.f32 %v1381_v58, %v1265_v42 }
0x128c   :  { %v1439_v37 = vsel %vm7112_vm6, %v7111_v62, %v7110_v34  ;;  %v6000_v43 = vld [vmem:[%s6303_s0 + $0x18] sm:$0xff]  ;;  %v2878_v5 = vmul.f32 %v6006_v40, %v2870_v9  ;;  %v7113_v13 = vld [vmem:[#allocation140_spill] sm:$0xff]  ;;  %v7114_v33 = vld [vmem:[#allocation139_spill] sm:$0xff]  ;;  %v1394_v58 = vadd.f32 %v1382_v2, %v1266_v18 }
0x128d   :  { %v2877_v6 = vmul.f32 %v6000_v43, %v2870_v9  ;;  %vm7115_vm7 = vmmov %vm7105_vm4  ;;  %v7116_v52 = vld [vmem:[#allocation148_spill] sm:$0xff]  ;;  %v7117_v30 = vld [vmem:[#allocation147_spill] sm:$0xff]  ;;  %v1453_v36 = vadd.f32 %v1439_v37, %v1326_v17 }
0x128e   :  { %v1442_v31 = vsel %vm7115_vm7, %v7114_v33, %v7113_v13  ;;  %v1508_v48 = vsel %vm1503_vm14, %v7117_v30, %v7116_v52  ;;  %v7118_v46 = vld [vmem:[#allocation149_spill] sm:$0xff]  ;;  %v6021_v63 = vld [vmem:[%s6303_s0 + $0x30] sm:$0xff]  ;;  %2897 = vrot.lane.b32.xlu1 %v2878_v5, %s3406_s27  ;;  %v6034_v56 = vpop.permute.xlu1 %2832  ;;  %v6036_v45 = vpop.permute.xlu0 %2830  ;;  %v7121_v62 = vld [vmem:[#allocation150_spill] sm:$0xff]  ;;  %v1569_v5 = vsel %vm1503_vm14, %v6951_v38, %v6973_v53 }
0x128f   :  { %v1509_v32 = vsel %vm1503_vm14, %v7116_v52, %v7118_v46  ;;  %v2879_v9 = vmul.f32 %v6021_v63, %v5952_v8  ;;  %v6028_v54 = vld [vmem:[%s6303_s0 + $0x38] sm:$0xff]  ;;  %2895 = vrot.lane.b32.xlu0 %v2877_v6, %s3406_s27  ;;  %v7119_v4 = vld [vmem:[#allocation136_spill] sm:$0xff]  ;;  %v7124_v6 = vld [vmem:[#allocation163_spill] sm:$0xff]  ;;  %v1520_v17 = vadd.f32 %v1508_v48, %v1393_v23  ;;  %s3407_s0 = smov 118  }
0x1290   :  { %v2880_v42 = vmul.f32 %v6028_v54, %v5952_v8  ;;  %v1455_v15 = vadd.f32 %v7119_v4, %v1328_v57  ;;  %v7120_v34 = vld [vmem:[#allocation153_spill] sm:$0xff]  ;;  %v7123_v30 = vld [vmem:[#allocation164_spill] sm:$0xff]  ;;  %v1457_v57 = vadd.f32 %v1442_v31, %v1330_v29  ;;  %v1521_v2 = vadd.f32 %v1509_v32, %v1394_v58  ;;  %v7129_v48 = vld [vmem:[#allocation179_spill] sm:$0xff] }
0x1291   :  { %v1566_v13 = vsel %vm1503_vm14, %v7121_v62, %v7120_v34  ;;  %v7122_v33 = vld [vmem:[#allocation141_spill] sm:$0xff]  ;;  %v1635_v46 = vsel %vm1630_vm15, %v7124_v6, %v7123_v30  ;;  %v7126_v37 = vld [vmem:[#allocation152_spill] sm:$0xff]  ;;  %v7127_v62 = vld [vmem:[#allocation166_spill] sm:$0xff]  ;;  %v1696_v31 = vsel %vm1630_vm15, %v6967_v39, %v6984_v55  ;;  %v2882_v58 = vmul.f32 %v5910_v60, %v5952_v8 }
0x1292   :  { %v1459_v52 = vadd.f32 %v7122_v33, %v1332_v7  ;;  %v7125_v50 = vld [vmem:[#allocation165_spill] sm:$0xff]  ;;  %v1582_v4 = vadd.f32 %v7126_v37, %v1455_v15  ;;  %v1580_v34 = vadd.f32 %v1566_v13, %v1453_v36  ;;  %v1693_v38 = vsel %vm1630_vm15, %v7127_v62, %v6954_v19  ;;  %2901 = vrot.lane.b32.xlu1 %v2880_v42, %s3406_s27  ;;  %v6059_v53 = vpop.permute.xlu1 %2836  ;;  %v6061_v33 = vpop.permute.xlu0 %2834  ;;  %v7133_v55 = vld [vmem:[#allocation182_spill] sm:$0xff]  ;;  %v7135_v6 = vld [vmem:[#allocation187_spill] sm:$0xff] }
0x1293   :  { %v1636_v18 = vsel %vm1630_vm15, %v7123_v30, %v7125_v50  ;;  %2899 = vrot.lane.b32.xlu0 %v2879_v9, %s3406_s27  ;;  %v1584_v50 = vadd.f32 %v1569_v5, %v1457_v57  ;;  %v1647_v29 = vadd.f32 %v1635_v46, %v1520_v17  ;;  %v7130_v19 = vld [vmem:[#allocation181_spill] sm:$0xff]  ;;  %v2881_v9 = vmul.f32 %v5903_v12, %v5952_v8  ;;  %v7134_v30 = vld [vmem:[#allocation188_spill] sm:$0xff]  ;;  %v7137_v57 = vld [vmem:[#allocation195_spill] sm:$0xff] }
0x1294   :  { %v1586_v7 = vadd.f32 %v6972_v21, %v1459_v52  ;;  %v1648_v23 = vadd.f32 %v1636_v18, %v1521_v2  ;;  %v7128_v21 = vld [vmem:[#allocation180_spill] sm:$0xff]  ;;  %v1709_v15 = vadd.f32 %v6953_v51, %v1582_v4  ;;  %v1707_v36 = vadd.f32 %v1693_v38, %v1580_v34  ;;  %v7131_v13 = vld [vmem:[#allocation173_spill] sm:$0xff] }
0x1295   :  { %v1762_v32 = vsel %vm1757_vm12, %v7129_v48, %v7128_v21  ;;  %v1763_v42 = vsel %vm1757_vm12, %v7128_v21, %v7130_v19  ;;  %v7132_v39 = vld [vmem:[#allocation185_spill] sm:$0xff]  ;;  %v1823_v46 = vsel %vm1757_vm12, %v7135_v6, %v7134_v30  ;;  %v7136_v18 = vld [vmem:[#allocation196_spill] sm:$0xff]  ;;  %v1711_v4 = vadd.f32 %v1696_v31, %v1584_v50 }
0x1296   :  { %v1713_v52 = vadd.f32 %v7131_v13, %v1586_v7  ;;  %v1820_v5 = vsel %vm1757_vm12, %v7133_v55, %v7132_v39  ;;  %v1889_v17 = vsel %vm1884_vm11, %v7137_v57, %v7136_v18  ;;  %v7138_v2 = vld [vmem:[#allocation197_spill] sm:$0xff]  ;;  %2905 = vrot.lane.b32.xlu1 %v2882_v58, %s3406_s27  ;;  %v6092_v51 = vpop.permute.xlu1 %2840  ;;  %v6094_v37 = vpop.permute.xlu0 %2838  ;;  %v1774_v34 = vadd.f32 %v1762_v32, %v1647_v29  ;;  %v7139_v62 = vld [vmem:[#allocation184_spill] sm:$0xff]  ;;  %v7142_v39 = vld [vmem:[#allocation198_spill] sm:$0xff] }
0x1297   :  { %v1890_v8 = vsel %vm1884_vm11, %v7136_v18, %v7138_v2  ;;  %2903 = vrot.lane.b32.xlu0 %v2881_v9, %s3406_s27  ;;  %v1775_v7 = vadd.f32 %v1763_v42, %v1648_v23  ;;  %v1836_v38 = vadd.f32 %v7139_v62, %v1709_v15  ;;  %v1834_v21 = vadd.f32 %v1820_v5, %v1707_v36  ;;  %v7140_v48 = vld [vmem:[#allocation189_spill] sm:$0xff]  ;;  %v7143_v9 = vld [vmem:[#allocation200_spill] sm:$0xff]  ;;  %v7144_v57 = vld [vmem:[#allocation203_spill] sm:$0xff]  ;;  %s3408_s27 = smov 127  }
0x1298   :  { %v1840_v19 = vadd.f32 %v7140_v48, %v1713_v52  ;;  %v7141_v13 = vld [vmem:[#allocation201_spill] sm:$0xff]  ;;  %v1838_v30 = vadd.f32 %v1823_v46, %v1711_v4  ;;  %v1901_v58 = vadd.f32 %v1889_v17, %v1774_v34  ;;  %v1950_v50 = vsel %vm1884_vm11, %v7144_v57, %v6994_v24  ;;  %v7145_v29 = vld [vmem:[#allocation212_spill] sm:$0xff]  ;;  %v7146_v23 = vld [vmem:[#allocation211_spill] sm:$0xff] }
0x1299   :  { %v1947_v55 = vsel %vm1884_vm11, %v7142_v39, %v7141_v13  ;;  %v1902_v6 = vadd.f32 %v1890_v8, %v1775_v7  ;;  %v1963_v18 = vadd.f32 %v7143_v9, %v1836_v38  ;;  %v2016_v31 = vsel %vm2011_vm10, %v7146_v23, %v7145_v29  ;;  %v7147_v32 = vld [vmem:[#allocation213_spill] sm:$0xff]  ;;  %v7149_v36 = vld [vmem:[#allocation214_spill] sm:$0xff]  ;;  %v7151_v24 = vld [vmem:[#allocation219_spill] sm:$0xff] }
0x129a   :  { %v2017_v42 = vsel %vm2011_vm10, %v7145_v29, %v7147_v32  ;;  %v7148_v15 = vld [vmem:[#allocation217_spill] sm:$0xff]  ;;  %v6114_v5 = vpop.permute.xlu1 %2998  ;;  %v2997_v46 = vpop.permute.xlu0 %2996  ;;  %v1961_v17 = vadd.f32 %v1947_v55, %v1834_v21  ;;  %v2077_v4 = vsel %vm2011_vm10, %v7151_v24, %v7003_v49  ;;  %v7152_v34 = vld [vmem:[#allocation228_spill] sm:$0xff]  ;;  %v7153_v7 = vld [vmem:[#allocation227_spill] sm:$0xff]  ;;  %vm7154_vm11 = vcmask 277504  }
0x129b   :  { %v2074_v52 = vsel %vm2011_vm10, %v7149_v36, %v7148_v15  ;;  %v7150_v2 = vld [vmem:[#allocation205_spill] sm:$0xff]  ;;  %v2143_v62 = vsel %vm7154_vm11, %v7153_v7, %v7152_v34  ;;  %vm7156_vm12 = vmmov %vm7154_vm11  ;;  %v7158_v39 = vld [vmem:[#allocation230_spill] sm:$0xff]  ;;  %v3002_v21 = vmul.f32 %v5966_v3, %v2997_v46  ;;  %v1965_v55 = vadd.f32 %v1950_v50, %v1838_v30 }
0x129c   :  { %v1967_v8 = vadd.f32 %v7150_v2, %v1840_v19  ;;  %v7155_v38 = vld [vmem:[#allocation229_spill] sm:$0xff]  ;;  %v3003_v19 = vmul.f32 %v5972_v27, %v2997_v46  ;;  %v2028_v57 = vadd.f32 %v2016_v31, %v1901_v58  ;;  %v2029_v29 = vadd.f32 %v2017_v42, %v1902_v6  ;;  %v7159_v23 = vld [vmem:[#allocation216_spill] sm:$0xff]  ;;  %v7161_v2 = vld [vmem:[#allocation251_spill] sm:$0xff] }
0x129d   :  { %v2144_v48 = vsel %vm7156_vm12, %v7152_v34, %v7155_v38  ;;  %v7157_v13 = vld [vmem:[#allocation233_spill] sm:$0xff]  ;;  %v2088_v49 = vadd.f32 %v2074_v52, %v1961_v17  ;;  %v2090_v32 = vadd.f32 %v7159_v23, %v1963_v18  ;;  %v7160_v36 = vld [vmem:[#allocation248_spill] sm:$0xff]  ;;  %3018 = vrot.lane.b32.xlu0 %v3002_v21, %s3407_s0  ;;  %v2092_v27 = vadd.f32 %v2077_v4, %v1965_v55  ;;  %v7163_v31 = vld [vmem:[#allocation235_spill] sm:$0xff] }
0x129e   :  { %v2202_v9 = vsel %vm2200_vm13, %v7158_v39, %v7157_v13  ;;  %v2094_v15 = vadd.f32 %v7002_v0, %v1967_v8  ;;  %v2329_v24 = vsel %vm2266_vm9, %v7161_v2, %v7160_v36  ;;  %3020 = vrot.lane.b32.xlu1 %v3003_v19, %s3407_s0  ;;  %v2956_v3 = vpop.permute.xlu1 %2955  ;;  %v2954_v34 = vpop.permute.xlu0 %2953  ;;  %v2155_v30 = vadd.f32 %v2143_v62, %v2028_v57  ;;  %v7162_v50 = vld [vmem:[#allocation236_spill] sm:$0xff]  ;;  %v7164_v0 = vld [vmem:[#allocation245_spill] sm:$0xff]  ;;  %v7168_v4 = vld [vmem:[#allocation246_spill] sm:$0xff] }
0x129f   :  { %v2156_v58 = vadd.f32 %v2144_v48, %v2029_v29  ;;  %v2216_v6 = vadd.f32 %v2202_v9, %v2088_v49  ;;  %v2205_v18 = vsel %vm2200_vm13, %v7163_v31, %v7162_v50  ;;  %v7165_v42 = vld [vmem:[#allocation244_spill] sm:$0xff]  ;;  %v3004_v17 = vmul.f32 %v6000_v43, %v2997_v46  ;;  %v7167_v13 = vld [vmem:[#allocation237_spill] sm:$0xff]  ;;  %v7171_v49 = vld [vmem:[#allocation14_spill] sm:$0xff] }
0x12a0   :  { %v2271_v52 = vsel %vm2266_vm9, %v7165_v42, %v7164_v0  ;;  %v3005_v8 = vmul.f32 %v6006_v40, %v2997_v46  ;;  %v7166_v7 = vld [vmem:[#allocation232_spill] sm:$0xff]  ;;  %v2222_v39 = vadd.f32 %v7167_v13, %v2094_v15  ;;  %v2272_v62 = vsel %vm2266_vm9, %v7164_v0, %v7168_v4  ;;  %v7169_v9 = vld [vmem:[#allocation253_spill] sm:$0xff] }
0x12a1   :  { %v2218_v38 = vadd.f32 %v7166_v7, %v2090_v32  ;;  %v2343_v48 = vadd.f32 %v2329_v24, %v2216_v6  ;;  %v2332_v21 = vsel %vm2266_vm9, %v7169_v9, %v7014_v22  ;;  %v3006_v19 = vmul.f32 %v6021_v63, %v6114_v5  ;;  %3022 = vrot.lane.b32.xlu0 %v3004_v17, %s3407_s0  ;;  %v7170_v29 = vld [vmem:[#allocation277_spill] sm:$0xff]  ;;  %v7172_v32 = vld [vmem:[#allocation252_spill] sm:$0xff]  ;;  %v7175_v6 = vld [vmem:[#allocation262_spill] sm:$0xff] }
0x12a2   :  { %v3007_v43 = vmul.f32 %v6028_v54, %v6114_v5  ;;  %3024 = vrot.lane.b32.xlu1 %v3005_v8, %s3407_s0  ;;  %v6160_v40 = vpop.permute.xlu1 %2959  ;;  %v2958_v46 = vpop.permute.xlu0 %2957  ;;  %v2220_v55 = vadd.f32 %v2205_v18, %v2092_v27  ;;  %v2283_v57 = vadd.f32 %v2271_v52, %v2155_v30  ;;  %v2583_v23 = vsel %vm2520_vm8, %v7171_v49, %v7170_v29  ;;  %v7173_v36 = vld [vmem:[#allocation268_spill] sm:$0xff]  ;;  %v7174_v24 = vld [vmem:[#allocation265_spill] sm:$0xff] }
0x12a3   :  { %v2284_v22 = vadd.f32 %v2272_v62, %v2156_v58  ;;  %v2345_v15 = vadd.f32 %v7172_v32, %v2218_v38  ;;  %v2349_v63 = vadd.f32 %v7013_v10, %v2222_v39  ;;  %v2470_v54 = vadd.f32 %v7173_v36, %v2343_v48  ;;  %v7176_v58 = vld [vmem:[#allocation264_spill] sm:$0xff]  ;;  %v7177_v10 = vld [vmem:[#allocation267_spill] sm:$0xff] }
0x12a4   :  { %v2347_v2 = vadd.f32 %v2332_v21, %v2220_v55  ;;  %v2398_v50 = vsel %vm2393_vm0, %v7175_v6, %v7174_v24  ;;  %v2716_v27 = vsel %vm231_vm2, %v5834_v20, %v5832_v1  ;;  %v2717_v30 = vsel %vm231_vm2, %v5832_v1, %v5863_v41  ;;  %v7178_v17 = vld [vmem:[#allocation272_spill] sm:$0xff]  ;;  %v7179_v38 = vld [vmem:[#allocation15_spill] sm:$0xff] }
0x12a5   :  { %v2399_v31 = vsel %vm2393_vm0, %v7174_v24, %v7176_v58  ;;  %v2472_v18 = vadd.f32 %v7177_v10, %v2345_v15  ;;  %v2597_v0 = vadd.f32 %v2583_v23, %v2470_v54  ;;  %vm2907_vm9 = vcmask 982016   ;;  %3026 = vrot.lane.b32.xlu0 %v3006_v19, %s3407_s0  ;;  %v7180_v48 = vld [vmem:[#allocation276_spill] sm:$0xff]  ;;  %v7182_v32 = vld [vmem:[#allocation271_spill] sm:$0xff] }
0x12a6   :  { %3028 = vrot.lane.b32.xlu1 %v3007_v43, %s3407_s0  ;;  %v2964_v42 = vpop.permute.xlu1 %2963  ;;  %v2962_v52 = vpop.permute.xlu0 %2961  ;;  %v2474_v20 = vadd.f32 %v7178_v17, %v2347_v2  ;;  %v2586_v1 = vsel %vm2520_vm8, %v5747_v11, %v5777_v28  ;;  %v2842_v8 = vsel %vm358_vm3, %v5987_v59, %v5985_v16  ;;  %v2843_v7 = vsel %vm358_vm3, %v5985_v16, %v6036_v45 }
0x12a7   :  { %v2730_v13 = vadd.f32 %v2716_v27, %v7179_v38  ;;  %v2731_v39 = vadd.f32 %v2717_v30, %v2597_v0  ;;  %v3008_v4 = vmul.f32 %v5903_v12, %v6114_v5  ;;  %v3009_v62 = vmul.f32 %v5910_v60, %v6114_v5  ;;  %v7184_v0 = vld [vmem:[#allocation16_spill] sm:$0xff]  ;;  %v7185_v38 = vld [vmem:[#allocation275_spill] sm:$0xff] }
0x12a8   :  { %v2599_v9 = vadd.f32 %v7180_v48, %v2472_v18  ;;  %v2718_v11 = vsel %vm231_vm2, %v5863_v41, %v5861_v25  ;;  %v2969_v28 = vsel %vm2907_vm9, %v2954_v34, %v2956_v3  ;;  %v2970_v59 = vsel %vm2907_vm9, %v2956_v3, %v2958_v46  ;;  %v7181_v34 = vld [vmem:[#allocation17_spill] sm:$0xff] }
0x12a9   :  { %v2719_v16 = vsel %vm231_vm2, %v5891_v47, %v5889_v44  ;;  %v2856_v21 = vadd.f32 %v2842_v8, %v2730_v13  ;;  %v2857_v19 = vadd.f32 %v2843_v7, %v2731_v39  ;;  %3030 = vrot.lane.b32.xlu0 %v3008_v4, %s3407_s0  ;;  %v2410_v5 = vadd.f32 %v2398_v50, %v2283_v57  ;;  %v7186_v48 = vld [vmem:[#allocation9_spill] sm:$0xff] }
0x12aa   :  { %3032 = vrot.lane.b32.xlu1 %v3009_v62, %s3407_s0  ;;  %v2968_v12 = vpop.permute.xlu1 %2967  ;;  %v2966_v60 = vpop.permute.xlu0 %2965  ;;  %v2601_v43 = vadd.f32 %v2586_v1, %v2474_v20  ;;  %v2720_v41 = vsel %vm231_vm2, %v5889_v44, %v5928_v35  ;;  %v2844_v3 = vsel %vm358_vm3, %v6036_v45, %v6034_v56  ;;  %v2733_v47 = vadd.f32 %v5861_v25, %v2599_v9 }
0x12ab   :  { %v2732_v55 = vadd.f32 %v2718_v11, %v7181_v34  ;;  %v2983_v29 = vadd.f32 %v2969_v28, %v2856_v21  ;;  %v2984_v49 = vadd.f32 %v2970_v59, %v2857_v19  ;;  %v2411_v23 = vadd.f32 %v2399_v31, %v2284_v22  ;;  %v7187_v11 = vld [vmem:[#allocation11_spill] sm:$0xff] }
0x12ac   :  { %v2476_v15 = vadd.f32 %v7182_v32, %v2349_v63  ;;  %v2734_v57 = vadd.f32 %v2719_v16, %v5753_v61  ;;  %v2971_v36 = vsel %vm2907_vm9, %v2958_v46, %v6160_v40  ;;  %v2735_v54 = vadd.f32 %v2720_v41, %v2601_v43  ;;  %v7183_v46 = vld [vmem:[#allocation10_spill] sm:$0xff] }
0x12ad   :  { %v2859_v44 = vadd.f32 %v6034_v56, %v2733_v47  ;;  %v2858_v2 = vadd.f32 %v2844_v3, %v2732_v55  ;;  %3061 = vrot.lane.b32.xlu0 %v2983_v29, %s3408_s27  ;;  %v2845_v22 = vsel %vm358_vm3, %v6061_v33, %v6059_v53  ;;  %v2846_v61 = vsel %vm358_vm3, %v6059_v53, %v6094_v37 }
0x12ae   :  { %3063 = vrot.lane.b32.xlu1 %v2984_v49, %s3408_s27  ;;  %v2519_v25 = vpop.permute.xlu1 %2518  ;;  %v2517_v45 = vpop.permute.xlu0 %2516  ;;  %v2721_v33 = vsel %vm231_vm2, %v5928_v35, %v5926_v26  ;;  %v2972_v30 = vsel %vm2907_vm9, %v2962_v52, %v2964_v42  ;;  %v2973_v53 = vsel %vm2907_vm9, %v2964_v42, %v2966_v60  ;;  %v2603_v58 = vadd.f32 %v5775_v14, %v2476_v15 }
0x12af   :  { %v2525_v63 = vsel %vm2520_vm8, %v7183_v46, %v2517_v45  ;;  %v2526_v56 = vsel %vm2520_vm8, %v2517_v45, %v2519_v25  ;;  %v2986_v24 = vadd.f32 %v6160_v40, %v2859_v44  ;;  %v2985_v6 = vadd.f32 %v2971_v36, %v2858_v2 }
0x12b0   :  { %v6234_v50 = vadd.f32 %v2525_v63, %v2410_v5  ;;  %v6236_v27 = vadd.f32 %v2526_v56, %v2411_v23  ;;  %v2860_v31 = vadd.f32 %v2845_v22, %v2734_v57  ;;  %v2861_v10 = vadd.f32 %v2846_v61, %v2735_v54 }
0x12b1   :  { %3065 = vrot.lane.b32.xlu0 %v2985_v6, %s3408_s27  ;;  %v2847_v40 = vsel %vm358_vm3, %v6094_v37, %v6092_v51  ;;  %v2737_v18 = vadd.f32 %v5926_v26, %v2603_v58  ;;  %v2736_v35 = vadd.f32 %v2721_v33, %v7184_v0  ;;  %v2974_v42 = vsel %vm2907_vm9, %v2966_v60, %v2968_v12 }
0x12b2   :  { %3067 = vrot.lane.b32.xlu1 %v2986_v24, %s3408_s27  ;;  %v2987_v17 = vadd.f32 %v2972_v30, %v2860_v31  ;;  %v2988_v52 = vadd.f32 %v2973_v53, %v2861_v10  ;;  %vm3034_vm0 = vcmask 965632   ;;  %v7188_v53 = vld [vmem:[#allocation12_spill] sm:$0xff]  ;;  %vm3077_vm8 = vcmask 1039360  }
0x12b3   :  { %v2863_v14 = vadd.f32 %v6092_v51, %v2737_v18  ;;  %v2862_v20 = vadd.f32 %v2847_v40, %v2736_v35 }
0x12b5   :  { %3069 = vrot.lane.b32.xlu0 %v2987_v17, %s3408_s27  ;;  %v2990_v1 = vadd.f32 %v2968_v12, %v2863_v14  ;;  %v2989_v8 = vadd.f32 %v2974_v42, %v2862_v20 }
0x12b6   :  { %3071 = vrot.lane.b32.xlu1 %v2988_v52, %s3408_s27 }
0x12b9   :  { %3073 = vrot.lane.b32.xlu0 %v2989_v8, %s3408_s27 }
0x12ba   :  { %3075 = vrot.lane.b32.xlu1 %v2990_v1, %s3408_s27 }
0x12d3   :  { %v2642_v26 = vpop.permute.xlu1 %2641  ;;  %v2640_v37 = vpop.permute.xlu0 %2639 }
0x12d4   :  { %v2655_v7 = vsel %vm231_vm2, %v2640_v37, %v2642_v26 }
0x12d5   :  { %v2667_v13 = vadd.f32 %v2655_v7, %v7185_v38 }
0x12d7   :  { %v2646_v39 = vpop.permute.xlu1 %2645  ;;  %v2644_v4 = vpop.permute.xlu0 %2643 }
0x12d8   :  { %v2656_v51 = vsel %vm231_vm2, %v2642_v26, %v2644_v4  ;;  %v2657_v62 = vsel %vm231_vm2, %v2644_v4, %v2646_v39 }
0x12d9   :  { %v2668_v9 = vadd.f32 %v2656_v51, %v7186_v48  ;;  %v2669_v28 = vadd.f32 %v2657_v62, %v7187_v11 }
0x12db   :  { %v2650_v59 = vpop.permute.xlu1 %2649  ;;  %v2648_v16 = vpop.permute.xlu0 %2647 }
0x12dc   :  { %v2658_v63 = vsel %vm231_vm2, %v2648_v16, %v2650_v59 }
0x12dd   :  { %v2670_v58 = vadd.f32 %v2658_v63, %v7188_v53 }
0x12df   :  { %v2654_v21 = vpop.permute.xlu1 %2653  ;;  %v2652_v19 = vpop.permute.xlu0 %2651 }
0x12e0   :  { %v2659_v56 = vsel %vm231_vm2, %v2650_v59, %v2652_v19  ;;  %v2660_v24 = vsel %vm231_vm2, %v2652_v19, %v2654_v21 }
0x12e1   :  { %v2671_v40 = vadd.f32 %v2659_v56, %v6234_v50  ;;  %v2672_v18 = vadd.f32 %v2660_v24, %v6236_v27 }
0x12e7   :  { %v2768_v12 = vpop.permute.xlu1 %2767  ;;  %v2766_v60 = vpop.permute.xlu0 %2765 }
0x12e8   :  { %v2781_v6 = vsel %vm358_vm3, %v2766_v60, %v2768_v12 }
0x12e9   :  { %v2793_v0 = vadd.f32 %v2781_v6, %v2667_v13 }
0x12eb   :  { %v2772_v5 = vpop.permute.xlu1 %2771  ;;  %v2770_v43 = vpop.permute.xlu0 %2769 }
0x12ec   :  { %v2782_v31 = vsel %vm358_vm3, %v2768_v12, %v2770_v43  ;;  %v2783_v35 = vsel %vm358_vm3, %v2770_v43, %v2772_v5 }
0x12ed   :  { %v2794_v20 = vadd.f32 %v2782_v31, %v2668_v9  ;;  %v2795_v27 = vadd.f32 %v2783_v35, %v2669_v28 }
0x12ef   :  { %v2776_v41 = vpop.permute.xlu1 %2775  ;;  %v2774_v3 = vpop.permute.xlu0 %2773 }
0x12f0   :  { %v2784_v10 = vsel %vm358_vm3, %v2774_v3, %v2776_v41 }
0x12f1   :  { %v2796_v1 = vadd.f32 %v2784_v10, %v2670_v58 }
0x12f3   :  { %v2780_v47 = vpop.permute.xlu1 %2779  ;;  %v2778_v34 = vpop.permute.xlu0 %2777 }
0x12f4   :  { %v2785_v17 = vsel %vm358_vm3, %v2776_v41, %v2778_v34  ;;  %v2786_v52 = vsel %vm358_vm3, %v2778_v34, %v2780_v47 }
0x12f5   :  { %v2797_v39 = vadd.f32 %v2785_v17, %v2671_v40  ;;  %v2798_v4 = vadd.f32 %v2786_v52, %v2672_v18 }
0x12fb   :  { %v2894_v55 = vpop.permute.xlu1 %2893  ;;  %v2892_v29 = vpop.permute.xlu0 %2891 }
0x12fc   :  { %v2908_v42 = vsel %vm2907_vm9, %v2892_v29, %v2894_v55 }
0x12fd   :  { %v2920_v51 = vadd.f32 %v2908_v42, %v2793_v0 }
0x1300   :  { %v2898_v49 = vpop.permute.xlu1 %2897 }
0x1301   :  { %v2896_v23 = vpop.permute.xlu0 %2895 }
0x1302   :  { %v2909_v8 = vsel %vm2907_vm9, %v2894_v55, %v2896_v23  ;;  %v2910_v26 = vsel %vm2907_vm9, %v2896_v23, %v2898_v49 }
0x1303   :  { %v2921_v48 = vadd.f32 %v2909_v8, %v2794_v20  ;;  %v2922_v9 = vadd.f32 %v2910_v26, %v2795_v27 }
0x1304   :  { %v2902_v32 = vpop.permute.xlu1 %2901 }
0x1305   :  { %v2900_v15 = vpop.permute.xlu0 %2899 }
0x1306   :  { %v2911_v14 = vsel %vm2907_vm9, %v2900_v15, %v2902_v32 }
0x1307   :  { %v2923_v62 = vadd.f32 %v2911_v14, %v2796_v1 }
0x1308   :  { %v2906_v57 = vpop.permute.xlu1 %2905 }
0x1309   :  { %v2904_v36 = vpop.permute.xlu0 %2903 }
0x130a   :  { %v2912_v7 = vsel %vm2907_vm9, %v2902_v32, %v2904_v36  ;;  %v2913_v11 = vsel %vm2907_vm9, %v2904_v36, %v2906_v57 }
0x130b   :  { %v2924_v16 = vadd.f32 %v2912_v7, %v2797_v39  ;;  %v2925_v47 = vadd.f32 %v2913_v11, %v2798_v4 }
0x130f   :  { %v3019_v44 = vpop.permute.xlu0 %3018 }
0x1310   :  { %v3021_v54 = vpop.permute.xlu1 %3020 }
0x1311   :  { %v3035_v38 = vsel %vm3034_vm0, %v3019_v44, %v3021_v54 }
0x1312   :  { %v3047_v21 = vadd.f32 %v3035_v38, %v2920_v51 }
0x1313   :  { %v3023_v25 = vpop.permute.xlu0 %3022 }
0x1314   :  { %v3025_v2 = vpop.permute.xlu1 %3024  ;;  %v3036_v28 = vsel %vm3034_vm0, %v3021_v54, %v3023_v25 }
0x1315   :  { %v3037_v5 = vsel %vm3034_vm0, %v3023_v25, %v3025_v2  ;;  %v3048_v49 = vadd.f32 %v3036_v28, %v2921_v48 }
0x1316   :  { %v3049_v32 = vadd.f32 %v3037_v5, %v2922_v9 }
0x1317   :  { %v3027_v22 = vpop.permute.xlu0 %3026 }
0x1318   :  { %v3029_v45 = vpop.permute.xlu1 %3028 }
0x1319   :  { %v3038_v13 = vsel %vm3034_vm0, %v3027_v22, %v3029_v45 }
0x131a   :  { %v3050_v19 = vadd.f32 %v3038_v13, %v2923_v62 }
0x131b   :  { %v3031_v46 = vpop.permute.xlu0 %3030 }
0x131c   :  { %v3033_v61 = vpop.permute.xlu1 %3032  ;;  %v3039_v43 = vsel %vm3034_vm0, %v3029_v45, %v3031_v46 }
0x131d   :  { %v3040_v41 = vsel %vm3034_vm0, %v3031_v46, %v3033_v61  ;;  %v3051_v15 = vadd.f32 %v3039_v43, %v2924_v16 }
0x131e   :  { %v3052_v57 = vadd.f32 %v3040_v41, %v2925_v47 }
0x131f   :  { %v3062_v30 = vpop.permute.xlu0 %3061 }
0x1320   :  { %v3064_v33 = vpop.permute.xlu1 %3063 }
0x1321   :  { %v3078_v59 = vsel %vm3077_vm8, %v3062_v30, %v3064_v33 }
0x1322   :  { %v3090_v34 = vadd.f32 %v3078_v59, %v3047_v21 }
0x1323   :  { %v3066_v37 = vpop.permute.xlu0 %3065 }
0x1324   :  { %v3068_v50 = vpop.permute.xlu1 %3067  ;;  %v3079_v55 = vsel %vm3077_vm8, %v3064_v33, %v3066_v37 }
0x1325   :  { %v3080_v23 = vsel %vm3077_vm8, %v3066_v37, %v3068_v50  ;;  %v3091_v2 = vadd.f32 %v3079_v55, %v3048_v49 }
0x1326   :  { %v3092_v22 = vadd.f32 %v3080_v23, %v3049_v32 }
0x1327   :  { %v3070_v60 = vpop.permute.xlu0 %3069 }
0x1328   :  { %v3072_v12 = vpop.permute.xlu1 %3071 }
0x1329   :  { %v3081_v3 = vsel %vm3077_vm8, %v3070_v60, %v3072_v12 }
0x132a   :  { %v3093_v29 = vadd.f32 %v3081_v3, %v3050_v19 }
0x132b   :  { %v3074_v44 = vpop.permute.xlu0 %3073 }
0x132c   :  { %v3096_v36 = vadd.f32 %v3093_v29, %v3090_v34  ;;  %v3076_v54 = vpop.permute.xlu1 %3075  ;;  %v3082_v25 = vsel %vm3077_vm8, %v3072_v12, %v3074_v44 }
0x132d   :  { %v3083_v45 = vsel %vm3077_vm8, %v3074_v44, %v3076_v54  ;;  %v3094_v46 = vadd.f32 %v3082_v25, %v3051_v15 }
0x132e   :  { %v3099_v61 = vsub.f32 0.0, %v3096_v36  ;;  %v3095_v63 = vadd.f32 %v3083_v45, %v3052_v57 }
0x132f   :  { %v3097_v24 = vadd.f32 %v3094_v46, %v3091_v2 }
0x1330   :  { %v3102_v56 = vmul.f32 1.442695, %v3099_v61  ;;  %v3098_v6 = vadd.f32 %v3095_v63, %v3092_v22 }
0x1331   :  { %v3100_v33 = vsub.f32 0.0, %v3097_v24 }
0x1332   :  { %3297 = vpow2.f32 %v3102_v56  ;;  %v3101_v30 = vsub.f32 0.0, %v3098_v6 }
0x1333   :  { %v3104_v53 = vmul.f32 1.442695, %v3100_v33 }
0x1334   :  { %v3106_v58 = vmul.f32 1.442695, %v3101_v30 }
0x1335   :  { %3299 = vpow2.f32 %v3104_v53 }
0x1336   :  { %3301 = vpow2.f32 %v3106_v58 }
0x133c   :  { %v3298_v31 = vpop.eup %3297 }
0x133d   :  { %v3108_v10 = vadd.f32 1.0, %v3298_v31 }
0x133f   :  { %3303 = vrcp.f32 %v3108_v10  ;;  %v3300_v40 = vpop.eup %3299 }
0x1340   :  { %v3302_v18 = vpop.eup %3301  ;;  %v3109_v0 = vadd.f32 1.0, %v3300_v40 }
0x1341   :  { %v3110_v35 = vadd.f32 1.0, %v3302_v18 }
0x1342   :  { %3305 = vrcp.f32 %v3109_v0 }
0x1343   :  { %3307 = vrcp.f32 %v3110_v35 }
0x1349   :  { %v3304_v17 = vpop.eup %3303 }
0x134a   :  { %v3114_v52 = vmul.f32 %v3304_v17, %v3108_v10 }
0x134c   :  { %v3117_v42 = vsub.f32 2.0, %v3114_v52  ;;  %v3306_v14 = vpop.eup %3305 }
0x134d   :  { %v3308_v20 = vpop.eup %3307  ;;  %v3115_v8 = vmul.f32 %v3306_v14, %v3109_v0 }
0x134e   :  { %v3120_v1 = vmul.f32 %v3304_v17, %v3117_v42  ;;  %v3116_v26 = vmul.f32 %v3308_v20, %v3110_v35 }
0x134f   :  { %v3118_v50 = vsub.f32 2.0, %v3115_v8 }
0x1350   :  { %3123 = vst [vmem:[%s6305_s3] sm:$0xff] %v3120_v1  ;;  %v3119_v37 = vsub.f32 2.0, %v3116_v26 }
0x1351   :  { %v3121_v27 = vmul.f32 %v3306_v14, %v3118_v50 }
0x1352   :  { %v3122_v7 = vmul.f32 %v3308_v20, %v3119_v37 }
0x1353   :  { %3124 = vst [vmem:[%s6305_s3 + $0x8] sm:$0xff] %v3121_v27 }
0x1354   :  { %3125 = vst [vmem:[%s6305_s3 + $0x10] sm:$0xff] %v3122_v7 }

</bundles_post_ra>
